<compile_context>
chip_gen: v5e
topology: v5e:2x2
jax: 0.10.0
libtpu: 0.0.40
codegen_flags: <defaults>
</compile_context>

<pallas_src>
import functools

import jax
import jax.numpy as jnp
from jax import lax
from jax.experimental import pallas as pl
from jax.experimental.pallas import tpu as pltpu


def _round_up(v, m):
    return ((v + m - 1) // m) * m


def _largest_divisor_leq(n, cap):
    cap = max(1, min(n, cap))
    for d in range(cap, 0, -1):
        if n % d == 0:
            return d
    return 1


def _default_vmem_limit_bytes():
    # v5e/v6e: 128 MiB physical VMEM -> raise the scoped default.
    # v7x: only 64 MiB physical -> stay <= ~48 MiB and rely on seq chunking.
    # Unknown chips: leave the compiler default alone.
    try:
        kind = jax.devices()[0].device_kind.lower()
    except Exception:
        kind = ""
    if "7" in kind:
        return 48 * 1024 * 1024
    if "v5" in kind or "v6" in kind:
        return 96 * 1024 * 1024
    return None


# ---------------------------------------------------------------------------
# Pallas kernel
# ---------------------------------------------------------------------------
def _encoder_kernel(x_ref,                        # [Sc, Bb, Ip]  bf16
                    wl_ref, bl_ref,               # [Ip, Ep] bf16, [1, Ep] f32
                    wih0_ref, whh0_ref, b0_ref,   # [Ep,4Hp] bf16, [Hp,4Hp] bf16, [1,4Hp] f32
                    wih1_ref, whh1_ref, b1_ref,   # [Hp,4Hp] bf16 x2, [1,4Hp] f32
                    hidden_ref, cell_ref,         # [2, Bb, Hp] f32 (resident across seq axis)
                    g0_ref):                      # VMEM scratch [Sc, Bb, 4Hp] bf16
    Sc, Bb, Ip = x_ref.shape
    Hp = hidden_ref.shape[2]
    G = 4 * Hp
    s_idx = pl.program_id(1)

    # ---- init the carried h/c state (held in the resident output blocks) ----
    @pl.when(s_idx == 0)
    def _():
        hidden_ref[...] = jnp.zeros_like(hidden_ref)
        cell_ref[...] = jnp.zeros_like(cell_ref)

    # ---- time-parallel work for this chunk (off the serial recurrence) ------
    # Linear + ReLU over all Sc*Bb rows, then the layer-0 input projection,
    # stored as bf16 in VMEM scratch.  (dropout == identity in eval mode)
    x_all = x_ref[...].reshape(Sc * Bb, Ip)
    emb = jnp.maximum(
        jnp.dot(x_all, wl_ref[...], preferred_element_type=jnp.float32)
        + bl_ref[...], 0.0)
    g0 = (jnp.dot(emb.astype(jnp.bfloat16), wih0_ref[...],
                  preferred_element_type=jnp.float32)
          + b0_ref[...])
    g0_ref[...] = g0.reshape(Sc, Bb, G).astype(jnp.bfloat16)

    b1 = b1_ref[...]                      # (1, 4Hp) f32 -- tiny, safe to hoist

    def gates_to_hc(gates, c):
        # PyTorch gate order [i | f | g | o]; Hp % 128 == 0 -> lane-aligned slices.
        i_g = jax.nn.sigmoid(gates[:, 0 * Hp:1 * Hp])
        f_g = jax.nn.sigmoid(gates[:, 1 * Hp:2 * Hp])
        g_g = jnp.tanh(gates[:, 2 * Hp:3 * Hp])
        o_g = jax.nn.sigmoid(gates[:, 3 * Hp:4 * Hp])
        c_new = f_g * c + i_g * g_g
        h_new = o_g * jnp.tanh(c_new)
        return h_new, c_new

    def step(t, carry):
        h0, c0, h1, c1 = carry
        # Layer 0: only the recurrent matmul is left on the serial chain.
        # Weight refs are read inside the loop (Mosaic streams matmul operands
        # from VMEM; hoisting 128x512 operands as SSA values invites spills).
        gates0 = (g0_ref[t].astype(jnp.float32)
                  + jnp.dot(h0.astype(jnp.bfloat16), whh0_ref[...],
                            preferred_element_type=jnp.float32))
        h0, c0 = gates_to_hc(gates0, c0)
        # Layer 1: two dots summed into one f32 accumulator (no concatenate on
        # the per-step critical path).
        gates1 = (jnp.dot(h0.astype(jnp.bfloat16), wih1_ref[...],
                          preferred_element_type=jnp.float32)
                  + jnp.dot(h1.astype(jnp.bfloat16), whh1_ref[...],
                            preferred_element_type=jnp.float32)
                  + b1)
        h1, c1 = gates_to_hc(gates1, c1)
        return h0, c0, h1, c1

    carry0 = (hidden_ref[0], cell_ref[0], hidden_ref[1], cell_ref[1])

    # Unroll tuned to batch-block size: big blocks -> many vregs per gate
    # tensor, so deep unrolls would spill.
    if Bb <= 16:
        unroll = min(Sc, 8)
    elif Bb <= 64:
        unroll = min(Sc, 4)
    else:
        unroll = min(Sc, 2)
    h0, c0, h1, c1 = lax.fori_loop(0, Sc, step, carry0, unroll=unroll)

    # Lane-dense (Hp multiple of 128) stores; also the carry for the next chunk.
    hidden_ref[0] = h0
    hidden_ref[1] = h1
    cell_ref[0] = c0
    cell_ref[1] = c1


# ---------------------------------------------------------------------------
# Wrapper: padding / packing + pallas_call
# ---------------------------------------------------------------------------
@functools.partial(jax.jit, static_argnames=("hidden_size", "batch_block", "seq_chunk"))
def encoder_forward(x, packed, hidden_size, batch_block=None, seq_chunk=None):
    S, B, I = x.shape
    Ip, Ep = packed["wl"].shape
    Hp = packed["whh0"].shape[0]
    G = 4 * Hp
    n_layers = 2

    # Batch block: one block covering the whole (sublane-padded) batch up to
    # 256 rows so the recurrent matmuls get the largest possible M; bigger
    # batches split into parallel blocks (megacore-shardable on v7x).
    if batch_block is None:
        bp8 = _round_up(B, 8)
        if bp8 <= 256:
            batch_block = bp8
        else:
            nb = -(-bp8 // 256)
            batch_block = _round_up(-(-bp8 // nb), 16)
    Bp = _round_up(B, batch_block)

    # Sequence chunk: bounds the O(S) VMEM footprint (x block + g0 scratch);
    # chunks are auto-pipelined along the second ("arbitrary") grid axis.
    if seq_chunk is None:
        rows = max(1, (8 * 1024 * 1024) // (batch_block * G * 2))   # ~8 MiB bf16 g0
        seq_chunk = _largest_divisor_leq(S, rows)

    # x kept at Ip = round_up(I, 16) features in HBM (no 128-lane padding).
    x_pad = (jnp.zeros((S, Bp, Ip), jnp.bfloat16)
             .at[:, :B, :I].set(x.astype(jnp.bfloat16)))

    grid = (Bp // batch_block, S // seq_chunk)

    # Weights: unblocked, VMEM-resident (single copy, no double buffering).
    w_vmem = pl.BlockSpec(memory_space=pltpu.MemorySpace.VMEM)
    in_specs = [
        pl.BlockSpec((seq_chunk, batch_block, Ip), lambda b, s: (s, b, 0)),
        w_vmem, w_vmem,                      # wl, bl
        w_vmem, w_vmem, w_vmem,              # wih0, whh0, b0
        w_vmem, w_vmem, w_vmem,              # wih1, whh1, b1
    ]
    out_specs = (
        pl.BlockSpec((n_layers, batch_block, Hp), lambda b, s: (0, b, 0)),
        pl.BlockSpec((n_layers, batch_block, Hp), lambda b, s: (0, b, 0)),
    )
    out_shape = (
        jax.ShapeDtypeStruct((n_layers, Bp, Hp), jnp.float32),
        jax.ShapeDtypeStruct((n_layers, Bp, Hp), jnp.float32),
    )

    weight_bytes = sum(int(v.size) * v.dtype.itemsize for v in packed.values())
    cost = pl.CostEstimate(
        flops=2 * S * Bp * (Ip * Ep + Ep * G + 3 * Hp * G),
        transcendentals=10 * S * Bp * Hp,
        bytes_accessed=int(x_pad.size) * 2 + weight_bytes
                       + 2 * n_layers * Bp * Hp * 4,
    )

    hidden_p, cell_p = pl.pallas_call(
        _encoder_kernel,
        out_shape=out_shape,
        grid_spec=pltpu.PrefetchScalarGridSpec(
            num_scalar_prefetch=0,
            grid=grid,
            in_specs=in_specs,
            out_specs=out_specs,
            scratch_shapes=[pltpu.VMEM((seq_chunk, batch_block, G), jnp.bfloat16)],
        ),
        compiler_params=pltpu.CompilerParams(
            # batch axis parallel (megacore on v7x when >=2 batch blocks),
            # sequence-chunk axis is a carried recurrence -> arbitrary, last.
            dimension_semantics=("parallel", "arbitrary"),
            vmem_limit_bytes=_default_vmem_limit_bytes(),
        ),
        cost_estimate=cost,
    )(x_pad,
      packed["wl"], packed["bl"],
      packed["wih0"], packed["whh0"], packed["b0"],
      packed["wih1"], packed["whh1"], packed["b1"])

    return hidden_p[:, :B, :hidden_size], cell_p[:, :B, :hidden_size]


# ---------------------------------------------------------------------------
# Parameter construction (PyTorch-style init, [in, out] layout) and packing
# into lane-aligned, bf16 (weights) / f32 (biases) kernel layout.
# ---------------------------------------------------------------------------
def make_params(key, input_size, embedding_size, hidden_size):
    ks = jax.random.split(key, 10)
    bound_l = 1.0 / jnp.sqrt(input_size)
    bound_h = 1.0 / jnp.sqrt(hidden_size)
    u = lambda k, shape, b: jax.random.uniform(k, shape, jnp.float32, -b, b)

    H4 = 4 * hidden_size
    return {
        # nn.Linear(input_size, embedding_size): weight [E, I] -> store W^T [I, E]
        "wl": u(ks[0], (input_size, embedding_size), bound_l),
        "bl": u(ks[1], (1, embedding_size), bound_l),
        # LSTM layer 0
        "wih0": u(ks[2], (embedding_size, H4), bound_h),
        "whh0": u(ks[3], (hidden_size, H4), bound_h),
        "b0": u(ks[4], (1, H4), bound_h) + u(ks[5], (1, H4), bound_h),
        # LSTM layer 1
        "wih1": u(ks[6], (hidden_size, H4), bound_h),
        "whh1": u(ks[7], (hidden_size, H4), bound_h),
        "b1": u(ks[8], (1, H4), bound_h) + u(ks[9], (1, H4), bound_h),
    }


def pack_params(params, input_size, embedding_size, hidden_size):
    """Pad dims to TPU tiles (I only to a 16-row sublane tile; E, H to 128
    lanes), re-block the 4H gate axis so each gate is a lane-aligned Hp slab,
    and store matmul weights in bf16 (biases stay f32).  Zero padding keeps
    padded h/c columns exactly zero through the recurrence."""
    I, E, H = input_size, embedding_size, hidden_size
    Ip, Ep, Hp = _round_up(I, 16), _round_up(E, 128), _round_up(H, 128)

    def pad2(w, r, c, dtype):
        return (jnp.zeros((r, c), dtype)
                .at[:w.shape[0], :w.shape[1]].set(w.astype(dtype)))

    def pad_gates_mat(w, rows_pad):      # [in, 4H] -> [rows_pad, 4*Hp] bf16
        inn = w.shape[0]
        w4 = w.reshape(inn, 4, H)
        out = (jnp.zeros((rows_pad, 4, Hp), jnp.bfloat16)
               .at[:inn, :, :H].set(w4.astype(jnp.bfloat16)))
        return out.reshape(rows_pad, 4 * Hp)

    def pad_gates_bias(b):               # [1, 4H] -> [1, 4*Hp] f32
        b4 = b.reshape(1, 4, H)
        out = jnp.zeros((1, 4, Hp), jnp.float32).at[:, :, :H].set(b4)
        return out.reshape(1, 4 * Hp)

    return {
        "wl": pad2(params["wl"], Ip, Ep, jnp.bfloat16),
        "bl": pad2(params["bl"], 1, Ep, jnp.float32),
        "wih0": pad_gates_mat(params["wih0"], Ep),
        "whh0": pad_gates_mat(params["whh0"], Hp),
        "b0": pad_gates_bias(params["b0"]),
        "wih1": pad_gates_mat(params["wih1"], Hp),
        "whh1": pad_gates_mat(params["whh1"], Hp),
        "b1": pad_gates_bias(params["b1"]),
    }


# ---------------------------------------------------------------------------
# Pure-JAX f32 reference (unpadded math) for a correctness check.
# ---------------------------------------------------------------------------
def encoder_reference(x, params):
    S, B, _ = x.shape
    H = params["whh0"].shape[1] // 4

    def cell(x_in, h, c, w_ih, w_hh, b):
        g = x_in @ w_ih + h @ w_hh + b
        i = jax.nn.sigmoid(g[:, 0 * H:1 * H])
        f = jax.nn.sigmoid(g[:, 1 * H:2 * H])
        gg = jnp.tanh(g[:, 2 * H:3 * H])
        o = jax.nn.sigmoid(g[:, 3 * H:4 * H])
        c = f * c + i * gg
        h = o * jnp.tanh(c)
        return h, c

    h0 = c0 = h1 = c1 = jnp.zeros((B, H), jnp.float32)
    for t in range(S):
        emb = jnp.maximum(x[t] @ params["wl"] + params["bl"], 0.0)
        h0, c0 = cell(emb, h0, c0, params["wih0"], params["whh0"], params["b0"])
        h1, c1 = cell(h0, h1, c1, params["wih1"], params["whh1"], params["b1"])
    return jnp.stack([h0, h1], axis=0), jnp.stack([c0, c1], axis=0)


if __name__ == "__main__":
    # Encoder(input_size=4, embedding_size=8, hidden_size=16, n_layers=2)
    SEQ, BATCH = 8, 2
    INPUT_SIZE, EMB_SIZE, HIDDEN = 4, 8, 16

    key = jax.random.PRNGKey(0)
    k_x, k_p = jax.random.split(key)
    x = jax.random.normal(k_x, (SEQ, BATCH, INPUT_SIZE), dtype=jnp.float32)
    params = make_params(k_p, INPUT_SIZE, EMB_SIZE, HIDDEN)
    packed = pack_params(params, INPUT_SIZE, EMB_SIZE, HIDDEN)

    hidden, cell = encoder_forward(x, packed, hidden_size=HIDDEN)
    jax.block_until_ready((hidden, cell))

    h_ref, c_ref = encoder_reference(x, params)
    assert hidden.shape == (2, BATCH, HIDDEN) and cell.shape == (2, BATCH, HIDDEN)
    # bf16 matmuls (f32 accumulation) over an S-step recurrence: tolerances
    # loosened vs. the pure-f32 reference accordingly.
    assert jnp.allclose(hidden, h_ref, rtol=5e-2, atol=5e-2), \
        float(jnp.max(jnp.abs(hidden - h_ref)))
    assert jnp.allclose(cell, c_ref, rtol=5e-2, atol=5e-2), \
        float(jnp.max(jnp.abs(cell - c_ref)))

    print("KERNEL_OK")
</pallas_src>

<mosaic_0001>
module attributes {stable_mosaic.version = 11 : i64} {
  func.func @_encoder_kernel(%arg0: i32, %arg1: i32, %arg2: memref<8x8x16xbf16, #tpu.memory_space<vmem>>, %arg3: memref<16x128xbf16, #tpu.memory_space<vmem>>, %arg4: memref<1x128xf32, #tpu.memory_space<vmem>>, %arg5: memref<128x512xbf16, #tpu.memory_space<vmem>>, %arg6: memref<128x512xbf16, #tpu.memory_space<vmem>>, %arg7: memref<1x512xf32, #tpu.memory_space<vmem>>, %arg8: memref<128x512xbf16, #tpu.memory_space<vmem>>, %arg9: memref<128x512xbf16, #tpu.memory_space<vmem>>, %arg10: memref<1x512xf32, #tpu.memory_space<vmem>>, %arg11: memref<2x8x128xf32, #tpu.memory_space<vmem>>, %arg12: memref<2x8x128xf32, #tpu.memory_space<vmem>>, %arg13: memref<8x8x512xbf16, #tpu.memory_space<vmem>>) attributes {dimension_semantics = [#tpu.dimension_semantics<parallel>, #tpu.dimension_semantics<arbitrary>], iteration_bounds = array<i64: 1, 1>, scalar_prefetch = 0 : i64, scratch_operands = 1 : i64, tpu.core_type = #tpu.core_type<tc>, window_params = [{transform_indices = @transform_0, window_bounds = array<i64: 8, 8, 16>}, {pipeline_mode = #tpu.pipeline_mode<synchronous>, transform_indices = @transform_1, window_bounds = array<i64: 16, 128>}, {pipeline_mode = #tpu.pipeline_mode<synchronous>, transform_indices = @transform_2, window_bounds = array<i64: 1, 128>}, {pipeline_mode = #tpu.pipeline_mode<synchronous>, transform_indices = @transform_3, window_bounds = array<i64: 128, 512>}, {pipeline_mode = #tpu.pipeline_mode<synchronous>, transform_indices = @transform_4, window_bounds = array<i64: 128, 512>}, {pipeline_mode = #tpu.pipeline_mode<synchronous>, transform_indices = @transform_5, window_bounds = array<i64: 1, 512>}, {pipeline_mode = #tpu.pipeline_mode<synchronous>, transform_indices = @transform_6, window_bounds = array<i64: 128, 512>}, {pipeline_mode = #tpu.pipeline_mode<synchronous>, transform_indices = @transform_7, window_bounds = array<i64: 128, 512>}, {pipeline_mode = #tpu.pipeline_mode<synchronous>, transform_indices = @transform_8, window_bounds = array<i64: 1, 512>}, {transform_indices = @transform_9, window_bounds = array<i64: 2, 8, 128>}, {transform_indices = @transform_10, window_bounds = array<i64: 2, 8, 128>}]} {
    %c0_i32 = arith.constant 0 : i32
    %0 = arith.cmpi eq, %arg1, %c0_i32 : i32
    %1 = arith.extui %0 : i1 to i32
    %c0_i32_0 = arith.constant 0 : i32
    %2 = arith.cmpi ne, %1, %c0_i32_0 : i32
    scf.if %2 {
      %cst_178 = arith.constant 0.000000e+00 : f32
      %578 = vector.broadcast %cst_178 : f32 to vector<2x8x128xf32>
      %c0_179 = arith.constant 0 : index
      %c0_180 = arith.constant 0 : index
      %c0_181 = arith.constant 0 : index
      %579 = vector.load %arg11[%c0_179, %c0_180, %c0_181] : memref<2x8x128xf32, #tpu.memory_space<vmem>>, vector<2x8x128xf32>
      tpu.vector_store %arg11[%c0_179, %c0_180, %c0_181], %578 {strides = array<i32>} : memref<2x8x128xf32, #tpu.memory_space<vmem>>, vector<2x8x128xf32>,
      %cst_182 = arith.constant 0.000000e+00 : f32
      %580 = vector.broadcast %cst_182 : f32 to vector<2x8x128xf32>
      %c0_183 = arith.constant 0 : index
      %c0_184 = arith.constant 0 : index
      %c0_185 = arith.constant 0 : index
      %581 = vector.load %arg12[%c0_183, %c0_184, %c0_185] : memref<2x8x128xf32, #tpu.memory_space<vmem>>, vector<2x8x128xf32>
      tpu.vector_store %arg12[%c0_183, %c0_184, %c0_185], %580 {strides = array<i32>} : memref<2x8x128xf32, #tpu.memory_space<vmem>>, vector<2x8x128xf32>,
    } else {
    }
    %c0 = arith.constant 0 : index
    %c0_1 = arith.constant 0 : index
    %c0_2 = arith.constant 0 : index
    %3 = vector.load %arg2[%c0, %c0_1, %c0_2] : memref<8x8x16xbf16, #tpu.memory_space<vmem>>, vector<8x8x16xbf16>
    %4 = vector.shape_cast %3 : vector<8x8x16xbf16> to vector<64x16xbf16>
    %c0_3 = arith.constant 0 : index
    %c0_4 = arith.constant 0 : index
    %5 = vector.load %arg3[%c0_3, %c0_4] : memref<16x128xbf16, #tpu.memory_space<vmem>>, vector<16x128xbf16>
    %cst = arith.constant dense<0.000000e+00> : vector<64x128xf32>
    %6 = tpu.matmul %4, %5, %cst {dimension_numbers = #tpu.dot_dimension_numbers<[1], [0], [0], [1], [0, 0, 1, 1], [], []>} : vector<64x16xbf16>, vector<16x128xbf16>, vector<64x128xf32> -> vector<64x128xf32>
    %c0_5 = arith.constant 0 : index
    %c0_6 = arith.constant 0 : index
    %7 = vector.load %arg4[%c0_5, %c0_6] : memref<1x128xf32, #tpu.memory_space<vmem>>, vector<1x128xf32>
    %8 = vector.broadcast %7 : vector<1x128xf32> to vector<64x128xf32>
    %9 = arith.addf %6, %8 : vector<64x128xf32>
    %cst_7 = arith.constant 0.000000e+00 : f32
    %10 = vector.broadcast %cst_7 : f32 to vector<64x128xf32>
    %11 = arith.maximumf %9, %10 : vector<64x128xf32>
    %12 = arith.truncf %11 : vector<64x128xf32> to vector<64x128xbf16>
    %c0_8 = arith.constant 0 : index
    %c0_9 = arith.constant 0 : index
    %13 = vector.load %arg5[%c0_8, %c0_9] : memref<128x512xbf16, #tpu.memory_space<vmem>>, vector<128x512xbf16>
    %cst_10 = arith.constant dense<0.000000e+00> : vector<64x512xf32>
    %14 = tpu.matmul %12, %13, %cst_10 {dimension_numbers = #tpu.dot_dimension_numbers<[1], [0], [0], [1], [0, 0, 1, 1], [], []>} : vector<64x128xbf16>, vector<128x512xbf16>, vector<64x512xf32> -> vector<64x512xf32>
    %c0_11 = arith.constant 0 : index
    %c0_12 = arith.constant 0 : index
    %15 = vector.load %arg7[%c0_11, %c0_12] : memref<1x512xf32, #tpu.memory_space<vmem>>, vector<1x512xf32>
    %16 = vector.broadcast %15 : vector<1x512xf32> to vector<64x512xf32>
    %17 = arith.addf %14, %16 : vector<64x512xf32>
    %18 = vector.shape_cast %17 : vector<64x512xf32> to vector<8x8x512xf32>
    %19 = arith.truncf %18 : vector<8x8x512xf32> to vector<8x8x512xbf16>
    %c0_13 = arith.constant 0 : index
    %c0_14 = arith.constant 0 : index
    %c0_15 = arith.constant 0 : index
    %20 = vector.load %arg13[%c0_13, %c0_14, %c0_15] : memref<8x8x512xbf16, #tpu.memory_space<vmem>>, vector<8x8x512xbf16>
    tpu.vector_store %arg13[%c0_13, %c0_14, %c0_15], %19 {strides = array<i32>} : memref<8x8x512xbf16, #tpu.memory_space<vmem>>, vector<8x8x512xbf16>,
    %c0_16 = arith.constant 0 : index
    %c0_17 = arith.constant 0 : index
    %21 = vector.load %arg10[%c0_16, %c0_17] : memref<1x512xf32, #tpu.memory_space<vmem>>, vector<1x512xf32>
    %c0_18 = arith.constant 0 : index
    %c0_19 = arith.constant 0 : index
    %c0_20 = arith.constant 0 : index
    %22 = vector.load %arg11[%c0_18, %c0_19, %c0_20] : memref<2x8x128xf32, #tpu.memory_space<vmem>>, vector<1x8x128xf32>
    %23 = vector.shape_cast %22 : vector<1x8x128xf32> to vector<8x128xf32>
    %c0_21 = arith.constant 0 : index
    %c0_22 = arith.constant 0 : index
    %c0_23 = arith.constant 0 : index
    %24 = vector.load %arg12[%c0_21, %c0_22, %c0_23] : memref<2x8x128xf32, #tpu.memory_space<vmem>>, vector<1x8x128xf32>
    %25 = vector.shape_cast %24 : vector<1x8x128xf32> to vector<8x128xf32>
    %c1 = arith.constant 1 : index
    %c0_24 = arith.constant 0 : index
    %c0_25 = arith.constant 0 : index
    %26 = vector.load %arg11[%c1, %c0_24, %c0_25] : memref<2x8x128xf32, #tpu.memory_space<vmem>>, vector<1x8x128xf32>
    %27 = vector.shape_cast %26 : vector<1x8x128xf32> to vector<8x128xf32>
    %c1_26 = arith.constant 1 : index
    %c0_27 = arith.constant 0 : index
    %c0_28 = arith.constant 0 : index
    %28 = vector.load %arg12[%c1_26, %c0_27, %c0_28] : memref<2x8x128xf32, #tpu.memory_space<vmem>>, vector<1x8x128xf32>
    %29 = vector.shape_cast %28 : vector<1x8x128xf32> to vector<8x128xf32>
    %c0_i32_29 = arith.constant 0 : i32
    %30 = arith.index_cast %c0_i32_29 : i32 to index
    %c0_30 = arith.constant 0 : index
    %c0_31 = arith.constant 0 : index
    %31 = vector.load %arg13[%30, %c0_30, %c0_31] : memref<8x8x512xbf16, #tpu.memory_space<vmem>>, vector<1x8x512xbf16>
    %32 = vector.shape_cast %31 : vector<1x8x512xbf16> to vector<8x512xbf16>
    %33 = arith.extf %32 : vector<8x512xbf16> to vector<8x512xf32>
    %34 = arith.truncf %23 : vector<8x128xf32> to vector<8x128xbf16>
    %c0_32 = arith.constant 0 : index
    %c0_33 = arith.constant 0 : index
    %35 = vector.load %arg6[%c0_32, %c0_33] : memref<128x512xbf16, #tpu.memory_space<vmem>>, vector<128x512xbf16>
    %cst_34 = arith.constant dense<0.000000e+00> : vector<8x512xf32>
    %36 = tpu.matmul %34, %35, %cst_34 {dimension_numbers = #tpu.dot_dimension_numbers<[1], [0], [0], [1], [0, 0, 1, 1], [], []>} : vector<8x128xbf16>, vector<128x512xbf16>, vector<8x512xf32> -> vector<8x512xf32>
    %37 = arith.addf %33, %36 : vector<8x512xf32>
    %38 = vector.extract_strided_slice %37 {offsets = [0, 0], sizes = [8, 128], strides = [1, 1]} : vector<8x512xf32> to vector<8x128xf32>
    %39 = arith.negf %38 : vector<8x128xf32>
    %40 = math.exp %39 : vector<8x128xf32>
    %cst_35 = arith.constant 1.000000e+00 : f32
    %41 = vector.broadcast %cst_35 : f32 to vector<8x128xf32>
    %42 = arith.addf %41, %40 : vector<8x128xf32>
    %43 = arith.divf %41, %42 : vector<8x128xf32>
    %44 = vector.extract_strided_slice %37 {offsets = [0, 128], sizes = [8, 128], strides = [1, 1]} : vector<8x512xf32> to vector<8x128xf32>
    %45 = arith.negf %44 : vector<8x128xf32>
    %46 = math.exp %45 : vector<8x128xf32>
    %cst_36 = arith.constant 1.000000e+00 : f32
    %47 = vector.broadcast %cst_36 : f32 to vector<8x128xf32>
    %48 = arith.addf %47, %46 : vector<8x128xf32>
    %49 = arith.divf %47, %48 : vector<8x128xf32>
    %50 = vector.extract_strided_slice %37 {offsets = [0, 256], sizes = [8, 128], strides = [1, 1]} : vector<8x512xf32> to vector<8x128xf32>
    %51 = math.tanh %50 : vector<8x128xf32>
    %52 = vector.extract_strided_slice %37 {offsets = [0, 384], sizes = [8, 128], strides = [1, 1]} : vector<8x512xf32> to vector<8x128xf32>
    %53 = arith.negf %52 : vector<8x128xf32>
    %54 = math.exp %53 : vector<8x128xf32>
    %cst_37 = arith.constant 1.000000e+00 : f32
    %55 = vector.broadcast %cst_37 : f32 to vector<8x128xf32>
    %56 = arith.addf %55, %54 : vector<8x128xf32>
    %57 = arith.divf %55, %56 : vector<8x128xf32>
    %58 = arith.mulf %49, %25 : vector<8x128xf32>
    %59 = arith.mulf %43, %51 : vector<8x128xf32>
    %60 = arith.addf %58, %59 : vector<8x128xf32>
    %61 = math.tanh %60 : vector<8x128xf32>
    %62 = arith.mulf %57, %61 : vector<8x128xf32>
    %63 = arith.truncf %62 : vector<8x128xf32> to vector<8x128xbf16>
    %c0_38 = arith.constant 0 : index
    %c0_39 = arith.constant 0 : index
    %64 = vector.load %arg8[%c0_38, %c0_39] : memref<128x512xbf16, #tpu.memory_space<vmem>>, vector<128x512xbf16>
    %cst_40 = arith.constant dense<0.000000e+00> : vector<8x512xf32>
    %65 = tpu.matmul %63, %64, %cst_40 {dimension_numbers = #tpu.dot_dimension_numbers<[1], [0], [0], [1], [0, 0, 1, 1], [], []>} : vector<8x128xbf16>, vector<128x512xbf16>, vector<8x512xf32> -> vector<8x512xf32>
    %66 = arith.truncf %27 : vector<8x128xf32> to vector<8x128xbf16>
    %c0_41 = arith.constant 0 : index
    %c0_42 = arith.constant 0 : index
    %67 = vector.load %arg9[%c0_41, %c0_42] : memref<128x512xbf16, #tpu.memory_space<vmem>>, vector<128x512xbf16>
    %cst_43 = arith.constant dense<0.000000e+00> : vector<8x512xf32>
    %68 = tpu.matmul %66, %67, %cst_43 {dimension_numbers = #tpu.dot_dimension_numbers<[1], [0], [0], [1], [0, 0, 1, 1], [], []>} : vector<8x128xbf16>, vector<128x512xbf16>, vector<8x512xf32> -> vector<8x512xf32>
    %69 = arith.addf %65, %68 : vector<8x512xf32>
    %70 = vector.broadcast %21 : vector<1x512xf32> to vector<8x512xf32>
    %71 = arith.addf %69, %70 : vector<8x512xf32>
    %72 = vector.extract_strided_slice %71 {offsets = [0, 0], sizes = [8, 128], strides = [1, 1]} : vector<8x512xf32> to vector<8x128xf32>
    %73 = arith.negf %72 : vector<8x128xf32>
    %74 = math.exp %73 : vector<8x128xf32>
    %cst_44 = arith.constant 1.000000e+00 : f32
    %75 = vector.broadcast %cst_44 : f32 to vector<8x128xf32>
    %76 = arith.addf %75, %74 : vector<8x128xf32>
    %77 = arith.divf %75, %76 : vector<8x128xf32>
    %78 = vector.extract_strided_slice %71 {offsets = [0, 128], sizes = [8, 128], strides = [1, 1]} : vector<8x512xf32> to vector<8x128xf32>
    %79 = arith.negf %78 : vector<8x128xf32>
    %80 = math.exp %79 : vector<8x128xf32>
    %cst_45 = arith.constant 1.000000e+00 : f32
    %81 = vector.broadcast %cst_45 : f32 to vector<8x128xf32>
    %82 = arith.addf %81, %80 : vector<8x128xf32>
    %83 = arith.divf %81, %82 : vector<8x128xf32>
    %84 = vector.extract_strided_slice %71 {offsets = [0, 256], sizes = [8, 128], strides = [1, 1]} : vector<8x512xf32> to vector<8x128xf32>
    %85 = math.tanh %84 : vector<8x128xf32>
    %86 = vector.extract_strided_slice %71 {offsets = [0, 384], sizes = [8, 128], strides = [1, 1]} : vector<8x512xf32> to vector<8x128xf32>
    %87 = arith.negf %86 : vector<8x128xf32>
    %88 = math.exp %87 : vector<8x128xf32>
    %cst_46 = arith.constant 1.000000e+00 : f32
    %89 = vector.broadcast %cst_46 : f32 to vector<8x128xf32>
    %90 = arith.addf %89, %88 : vector<8x128xf32>
    %91 = arith.divf %89, %90 : vector<8x128xf32>
    %92 = arith.mulf %83, %29 : vector<8x128xf32>
    %93 = arith.mulf %77, %85 : vector<8x128xf32>
    %94 = arith.addf %92, %93 : vector<8x128xf32>
    %95 = math.tanh %94 : vector<8x128xf32>
    %96 = arith.mulf %91, %95 : vector<8x128xf32>
    %c1_i32 = arith.constant 1 : i32
    %97 = arith.index_cast %c1_i32 : i32 to index
    %c0_47 = arith.constant 0 : index
    %c0_48 = arith.constant 0 : index
    %98 = vector.load %arg13[%97, %c0_47, %c0_48] : memref<8x8x512xbf16, #tpu.memory_space<vmem>>, vector<1x8x512xbf16>
    %99 = vector.shape_cast %98 : vector<1x8x512xbf16> to vector<8x512xbf16>
    %100 = arith.extf %99 : vector<8x512xbf16> to vector<8x512xf32>
    %101 = arith.truncf %62 : vector<8x128xf32> to vector<8x128xbf16>
    %c0_49 = arith.constant 0 : index
    %c0_50 = arith.constant 0 : index
    %102 = vector.load %arg6[%c0_49, %c0_50] : memref<128x512xbf16, #tpu.memory_space<vmem>>, vector<128x512xbf16>
    %cst_51 = arith.constant dense<0.000000e+00> : vector<8x512xf32>
    %103 = tpu.matmul %101, %102, %cst_51 {dimension_numbers = #tpu.dot_dimension_numbers<[1], [0], [0], [1], [0, 0, 1, 1], [], []>} : vector<8x128xbf16>, vector<128x512xbf16>, vector<8x512xf32> -> vector<8x512xf32>
    %104 = arith.addf %100, %103 : vector<8x512xf32>
    %105 = vector.extract_strided_slice %104 {offsets = [0, 0], sizes = [8, 128], strides = [1, 1]} : vector<8x512xf32> to vector<8x128xf32>
    %106 = arith.negf %105 : vector<8x128xf32>
    %107 = math.exp %106 : vector<8x128xf32>
    %cst_52 = arith.constant 1.000000e+00 : f32
    %108 = vector.broadcast %cst_52 : f32 to vector<8x128xf32>
    %109 = arith.addf %108, %107 : vector<8x128xf32>
    %110 = arith.divf %108, %109 : vector<8x128xf32>
    %111 = vector.extract_strided_slice %104 {offsets = [0, 128], sizes = [8, 128], strides = [1, 1]} : vector<8x512xf32> to vector<8x128xf32>
    %112 = arith.negf %111 : vector<8x128xf32>
    %113 = math.exp %112 : vector<8x128xf32>
    %cst_53 = arith.constant 1.000000e+00 : f32
    %114 = vector.broadcast %cst_53 : f32 to vector<8x128xf32>
    %115 = arith.addf %114, %113 : vector<8x128xf32>
    %116 = arith.divf %114, %115 : vector<8x128xf32>
    %117 = vector.extract_strided_slice %104 {offsets = [0, 256], sizes = [8, 128], strides = [1, 1]} : vector<8x512xf32> to vector<8x128xf32>
    %118 = math.tanh %117 : vector<8x128xf32>
    %119 = vector.extract_strided_slice %104 {offsets = [0, 384], sizes = [8, 128], strides = [1, 1]} : vector<8x512xf32> to vector<8x128xf32>
    %120 = arith.negf %119 : vector<8x128xf32>
    %121 = math.exp %120 : vector<8x128xf32>
    %cst_54 = arith.constant 1.000000e+00 : f32
    %122 = vector.broadcast %cst_54 : f32 to vector<8x128xf32>
    %123 = arith.addf %122, %121 : vector<8x128xf32>
    %124 = arith.divf %122, %123 : vector<8x128xf32>
    %125 = arith.mulf %116, %60 : vector<8x128xf32>
    %126 = arith.mulf %110, %118 : vector<8x128xf32>
    %127 = arith.addf %125, %126 : vector<8x128xf32>
    %128 = math.tanh %127 : vector<8x128xf32>
    %129 = arith.mulf %124, %128 : vector<8x128xf32>
    %130 = arith.truncf %129 : vector<8x128xf32> to vector<8x128xbf16>
    %c0_55 = arith.constant 0 : index
    %c0_56 = arith.constant 0 : index
    %131 = vector.load %arg8[%c0_55, %c0_56] : memref<128x512xbf16, #tpu.memory_space<vmem>>, vector<128x512xbf16>
    %cst_57 = arith.constant dense<0.000000e+00> : vector<8x512xf32>
    %132 = tpu.matmul %130, %131, %cst_57 {dimension_numbers = #tpu.dot_dimension_numbers<[1], [0], [0], [1], [0, 0, 1, 1], [], []>} : vector<8x128xbf16>, vector<128x512xbf16>, vector<8x512xf32> -> vector<8x512xf32>
    %133 = arith.truncf %96 : vector<8x128xf32> to vector<8x128xbf16>
    %c0_58 = arith.constant 0 : index
    %c0_59 = arith.constant 0 : index
    %134 = vector.load %arg9[%c0_58, %c0_59] : memref<128x512xbf16, #tpu.memory_space<vmem>>, vector<128x512xbf16>
    %cst_60 = arith.constant dense<0.000000e+00> : vector<8x512xf32>
    %135 = tpu.matmul %133, %134, %cst_60 {dimension_numbers = #tpu.dot_dimension_numbers<[1], [0], [0], [1], [0, 0, 1, 1], [], []>} : vector<8x128xbf16>, vector<128x512xbf16>, vector<8x512xf32> -> vector<8x512xf32>
    %136 = arith.addf %132, %135 : vector<8x512xf32>
    %137 = vector.broadcast %21 : vector<1x512xf32> to vector<8x512xf32>
    %138 = arith.addf %136, %137 : vector<8x512xf32>
    %139 = vector.extract_strided_slice %138 {offsets = [0, 0], sizes = [8, 128], strides = [1, 1]} : vector<8x512xf32> to vector<8x128xf32>
    %140 = arith.negf %139 : vector<8x128xf32>
    %141 = math.exp %140 : vector<8x128xf32>
    %cst_61 = arith.constant 1.000000e+00 : f32
    %142 = vector.broadcast %cst_61 : f32 to vector<8x128xf32>
    %143 = arith.addf %142, %141 : vector<8x128xf32>
    %144 = arith.divf %142, %143 : vector<8x128xf32>
    %145 = vector.extract_strided_slice %138 {offsets = [0, 128], sizes = [8, 128], strides = [1, 1]} : vector<8x512xf32> to vector<8x128xf32>
    %146 = arith.negf %145 : vector<8x128xf32>
    %147 = math.exp %146 : vector<8x128xf32>
    %cst_62 = arith.constant 1.000000e+00 : f32
    %148 = vector.broadcast %cst_62 : f32 to vector<8x128xf32>
    %149 = arith.addf %148, %147 : vector<8x128xf32>
    %150 = arith.divf %148, %149 : vector<8x128xf32>
    %151 = vector.extract_strided_slice %138 {offsets = [0, 256], sizes = [8, 128], strides = [1, 1]} : vector<8x512xf32> to vector<8x128xf32>
    %152 = math.tanh %151 : vector<8x128xf32>
    %153 = vector.extract_strided_slice %138 {offsets = [0, 384], sizes = [8, 128], strides = [1, 1]} : vector<8x512xf32> to vector<8x128xf32>
    %154 = arith.negf %153 : vector<8x128xf32>
    %155 = math.exp %154 : vector<8x128xf32>
    %cst_63 = arith.constant 1.000000e+00 : f32
    %156 = vector.broadcast %cst_63 : f32 to vector<8x128xf32>
    %157 = arith.addf %156, %155 : vector<8x128xf32>
    %158 = arith.divf %156, %157 : vector<8x128xf32>
    %159 = arith.mulf %150, %94 : vector<8x128xf32>
    %160 = arith.mulf %144, %152 : vector<8x128xf32>
    %161 = arith.addf %159, %160 : vector<8x128xf32>
    %162 = math.tanh %161 : vector<8x128xf32>
    %163 = arith.mulf %158, %162 : vector<8x128xf32>
    %c2_i32 = arith.constant 2 : i32
    %164 = arith.index_cast %c2_i32 : i32 to index
    %c0_64 = arith.constant 0 : index
    %c0_65 = arith.constant 0 : index
    %165 = vector.load %arg13[%164, %c0_64, %c0_65] : memref<8x8x512xbf16, #tpu.memory_space<vmem>>, vector<1x8x512xbf16>
    %166 = vector.shape_cast %165 : vector<1x8x512xbf16> to vector<8x512xbf16>
    %167 = arith.extf %166 : vector<8x512xbf16> to vector<8x512xf32>
    %168 = arith.truncf %129 : vector<8x128xf32> to vector<8x128xbf16>
    %c0_66 = arith.constant 0 : index
    %c0_67 = arith.constant 0 : index
    %169 = vector.load %arg6[%c0_66, %c0_67] : memref<128x512xbf16, #tpu.memory_space<vmem>>, vector<128x512xbf16>
    %cst_68 = arith.constant dense<0.000000e+00> : vector<8x512xf32>
    %170 = tpu.matmul %168, %169, %cst_68 {dimension_numbers = #tpu.dot_dimension_numbers<[1], [0], [0], [1], [0, 0, 1, 1], [], []>} : vector<8x128xbf16>, vector<128x512xbf16>, vector<8x512xf32> -> vector<8x512xf32>
    %171 = arith.addf %167, %170 : vector<8x512xf32>
    %172 = vector.extract_strided_slice %171 {offsets = [0, 0], sizes = [8, 128], strides = [1, 1]} : vector<8x512xf32> to vector<8x128xf32>
    %173 = arith.negf %172 : vector<8x128xf32>
    %174 = math.exp %173 : vector<8x128xf32>
    %cst_69 = arith.constant 1.000000e+00 : f32
    %175 = vector.broadcast %cst_69 : f32 to vector<8x128xf32>
    %176 = arith.addf %175, %174 : vector<8x128xf32>
    %177 = arith.divf %175, %176 : vector<8x128xf32>
    %178 = vector.extract_strided_slice %171 {offsets = [0, 128], sizes = [8, 128], strides = [1, 1]} : vector<8x512xf32> to vector<8x128xf32>
    %179 = arith.negf %178 : vector<8x128xf32>
    %180 = math.exp %179 : vector<8x128xf32>
    %cst_70 = arith.constant 1.000000e+00 : f32
    %181 = vector.broadcast %cst_70 : f32 to vector<8x128xf32>
    %182 = arith.addf %181, %180 : vector<8x128xf32>
    %183 = arith.divf %181, %182 : vector<8x128xf32>
    %184 = vector.extract_strided_slice %171 {offsets = [0, 256], sizes = [8, 128], strides = [1, 1]} : vector<8x512xf32> to vector<8x128xf32>
    %185 = math.tanh %184 : vector<8x128xf32>
    %186 = vector.extract_strided_slice %171 {offsets = [0, 384], sizes = [8, 128], strides = [1, 1]} : vector<8x512xf32> to vector<8x128xf32>
    %187 = arith.negf %186 : vector<8x128xf32>
    %188 = math.exp %187 : vector<8x128xf32>
    %cst_71 = arith.constant 1.000000e+00 : f32
    %189 = vector.broadcast %cst_71 : f32 to vector<8x128xf32>
    %190 = arith.addf %189, %188 : vector<8x128xf32>
    %191 = arith.divf %189, %190 : vector<8x128xf32>
    %192 = arith.mulf %183, %127 : vector<8x128xf32>
    %193 = arith.mulf %177, %185 : vector<8x128xf32>
    %194 = arith.addf %192, %193 : vector<8x128xf32>
    %195 = math.tanh %194 : vector<8x128xf32>
    %196 = arith.mulf %191, %195 : vector<8x128xf32>
    %197 = arith.truncf %196 : vector<8x128xf32> to vector<8x128xbf16>
    %c0_72 = arith.constant 0 : index
    %c0_73 = arith.constant 0 : index
    %198 = vector.load %arg8[%c0_72, %c0_73] : memref<128x512xbf16, #tpu.memory_space<vmem>>, vector<128x512xbf16>
    %cst_74 = arith.constant dense<0.000000e+00> : vector<8x512xf32>
    %199 = tpu.matmul %197, %198, %cst_74 {dimension_numbers = #tpu.dot_dimension_numbers<[1], [0], [0], [1], [0, 0, 1, 1], [], []>} : vector<8x128xbf16>, vector<128x512xbf16>, vector<8x512xf32> -> vector<8x512xf32>
    %200 = arith.truncf %163 : vector<8x128xf32> to vector<8x128xbf16>
    %c0_75 = arith.constant 0 : index
    %c0_76 = arith.constant 0 : index
    %201 = vector.load %arg9[%c0_75, %c0_76] : memref<128x512xbf16, #tpu.memory_space<vmem>>, vector<128x512xbf16>
    %cst_77 = arith.constant dense<0.000000e+00> : vector<8x512xf32>
    %202 = tpu.matmul %200, %201, %cst_77 {dimension_numbers = #tpu.dot_dimension_numbers<[1], [0], [0], [1], [0, 0, 1, 1], [], []>} : vector<8x128xbf16>, vector<128x512xbf16>, vector<8x512xf32> -> vector<8x512xf32>
    %203 = arith.addf %199, %202 : vector<8x512xf32>
    %204 = vector.broadcast %21 : vector<1x512xf32> to vector<8x512xf32>
    %205 = arith.addf %203, %204 : vector<8x512xf32>
    %206 = vector.extract_strided_slice %205 {offsets = [0, 0], sizes = [8, 128], strides = [1, 1]} : vector<8x512xf32> to vector<8x128xf32>
    %207 = arith.negf %206 : vector<8x128xf32>
    %208 = math.exp %207 : vector<8x128xf32>
    %cst_78 = arith.constant 1.000000e+00 : f32
    %209 = vector.broadcast %cst_78 : f32 to vector<8x128xf32>
    %210 = arith.addf %209, %208 : vector<8x128xf32>
    %211 = arith.divf %209, %210 : vector<8x128xf32>
    %212 = vector.extract_strided_slice %205 {offsets = [0, 128], sizes = [8, 128], strides = [1, 1]} : vector<8x512xf32> to vector<8x128xf32>
    %213 = arith.negf %212 : vector<8x128xf32>
    %214 = math.exp %213 : vector<8x128xf32>
    %cst_79 = arith.constant 1.000000e+00 : f32
    %215 = vector.broadcast %cst_79 : f32 to vector<8x128xf32>
    %216 = arith.addf %215, %214 : vector<8x128xf32>
    %217 = arith.divf %215, %216 : vector<8x128xf32>
    %218 = vector.extract_strided_slice %205 {offsets = [0, 256], sizes = [8, 128], strides = [1, 1]} : vector<8x512xf32> to vector<8x128xf32>
    %219 = math.tanh %218 : vector<8x128xf32>
    %220 = vector.extract_strided_slice %205 {offsets = [0, 384], sizes = [8, 128], strides = [1, 1]} : vector<8x512xf32> to vector<8x128xf32>
    %221 = arith.negf %220 : vector<8x128xf32>
    %222 = math.exp %221 : vector<8x128xf32>
    %cst_80 = arith.constant 1.000000e+00 : f32
    %223 = vector.broadcast %cst_80 : f32 to vector<8x128xf32>
    %224 = arith.addf %223, %222 : vector<8x128xf32>
    %225 = arith.divf %223, %224 : vector<8x128xf32>
    %226 = arith.mulf %217, %161 : vector<8x128xf32>
    %227 = arith.mulf %211, %219 : vector<8x128xf32>
    %228 = arith.addf %226, %227 : vector<8x128xf32>
    %229 = math.tanh %228 : vector<8x128xf32>
    %230 = arith.mulf %225, %229 : vector<8x128xf32>
    %c3_i32 = arith.constant 3 : i32
    %231 = arith.index_cast %c3_i32 : i32 to index
    %c0_81 = arith.constant 0 : index
    %c0_82 = arith.constant 0 : index
    %232 = vector.load %arg13[%231, %c0_81, %c0_82] : memref<8x8x512xbf16, #tpu.memory_space<vmem>>, vector<1x8x512xbf16>
    %233 = vector.shape_cast %232 : vector<1x8x512xbf16> to vector<8x512xbf16>
    %234 = arith.extf %233 : vector<8x512xbf16> to vector<8x512xf32>
    %235 = arith.truncf %196 : vector<8x128xf32> to vector<8x128xbf16>
    %c0_83 = arith.constant 0 : index
    %c0_84 = arith.constant 0 : index
    %236 = vector.load %arg6[%c0_83, %c0_84] : memref<128x512xbf16, #tpu.memory_space<vmem>>, vector<128x512xbf16>
    %cst_85 = arith.constant dense<0.000000e+00> : vector<8x512xf32>
    %237 = tpu.matmul %235, %236, %cst_85 {dimension_numbers = #tpu.dot_dimension_numbers<[1], [0], [0], [1], [0, 0, 1, 1], [], []>} : vector<8x128xbf16>, vector<128x512xbf16>, vector<8x512xf32> -> vector<8x512xf32>
    %238 = arith.addf %234, %237 : vector<8x512xf32>
    %239 = vector.extract_strided_slice %238 {offsets = [0, 0], sizes = [8, 128], strides = [1, 1]} : vector<8x512xf32> to vector<8x128xf32>
    %240 = arith.negf %239 : vector<8x128xf32>
    %241 = math.exp %240 : vector<8x128xf32>
    %cst_86 = arith.constant 1.000000e+00 : f32
    %242 = vector.broadcast %cst_86 : f32 to vector<8x128xf32>
    %243 = arith.addf %242, %241 : vector<8x128xf32>
    %244 = arith.divf %242, %243 : vector<8x128xf32>
    %245 = vector.extract_strided_slice %238 {offsets = [0, 128], sizes = [8, 128], strides = [1, 1]} : vector<8x512xf32> to vector<8x128xf32>
    %246 = arith.negf %245 : vector<8x128xf32>
    %247 = math.exp %246 : vector<8x128xf32>
    %cst_87 = arith.constant 1.000000e+00 : f32
    %248 = vector.broadcast %cst_87 : f32 to vector<8x128xf32>
    %249 = arith.addf %248, %247 : vector<8x128xf32>
    %250 = arith.divf %248, %249 : vector<8x128xf32>
    %251 = vector.extract_strided_slice %238 {offsets = [0, 256], sizes = [8, 128], strides = [1, 1]} : vector<8x512xf32> to vector<8x128xf32>
    %252 = math.tanh %251 : vector<8x128xf32>
    %253 = vector.extract_strided_slice %238 {offsets = [0, 384], sizes = [8, 128], strides = [1, 1]} : vector<8x512xf32> to vector<8x128xf32>
    %254 = arith.negf %253 : vector<8x128xf32>
    %255 = math.exp %254 : vector<8x128xf32>
    %cst_88 = arith.constant 1.000000e+00 : f32
    %256 = vector.broadcast %cst_88 : f32 to vector<8x128xf32>
    %257 = arith.addf %256, %255 : vector<8x128xf32>
    %258 = arith.divf %256, %257 : vector<8x128xf32>
    %259 = arith.mulf %250, %194 : vector<8x128xf32>
    %260 = arith.mulf %244, %252 : vector<8x128xf32>
    %261 = arith.addf %259, %260 : vector<8x128xf32>
    %262 = math.tanh %261 : vector<8x128xf32>
    %263 = arith.mulf %258, %262 : vector<8x128xf32>
    %264 = arith.truncf %263 : vector<8x128xf32> to vector<8x128xbf16>
    %c0_89 = arith.constant 0 : index
    %c0_90 = arith.constant 0 : index
    %265 = vector.load %arg8[%c0_89, %c0_90] : memref<128x512xbf16, #tpu.memory_space<vmem>>, vector<128x512xbf16>
    %cst_91 = arith.constant dense<0.000000e+00> : vector<8x512xf32>
    %266 = tpu.matmul %264, %265, %cst_91 {dimension_numbers = #tpu.dot_dimension_numbers<[1], [0], [0], [1], [0, 0, 1, 1], [], []>} : vector<8x128xbf16>, vector<128x512xbf16>, vector<8x512xf32> -> vector<8x512xf32>
    %267 = arith.truncf %230 : vector<8x128xf32> to vector<8x128xbf16>
    %c0_92 = arith.constant 0 : index
    %c0_93 = arith.constant 0 : index
    %268 = vector.load %arg9[%c0_92, %c0_93] : memref<128x512xbf16, #tpu.memory_space<vmem>>, vector<128x512xbf16>
    %cst_94 = arith.constant dense<0.000000e+00> : vector<8x512xf32>
    %269 = tpu.matmul %267, %268, %cst_94 {dimension_numbers = #tpu.dot_dimension_numbers<[1], [0], [0], [1], [0, 0, 1, 1], [], []>} : vector<8x128xbf16>, vector<128x512xbf16>, vector<8x512xf32> -> vector<8x512xf32>
    %270 = arith.addf %266, %269 : vector<8x512xf32>
    %271 = vector.broadcast %21 : vector<1x512xf32> to vector<8x512xf32>
    %272 = arith.addf %270, %271 : vector<8x512xf32>
    %273 = vector.extract_strided_slice %272 {offsets = [0, 0], sizes = [8, 128], strides = [1, 1]} : vector<8x512xf32> to vector<8x128xf32>
    %274 = arith.negf %273 : vector<8x128xf32>
    %275 = math.exp %274 : vector<8x128xf32>
    %cst_95 = arith.constant 1.000000e+00 : f32
    %276 = vector.broadcast %cst_95 : f32 to vector<8x128xf32>
    %277 = arith.addf %276, %275 : vector<8x128xf32>
    %278 = arith.divf %276, %277 : vector<8x128xf32>
    %279 = vector.extract_strided_slice %272 {offsets = [0, 128], sizes = [8, 128], strides = [1, 1]} : vector<8x512xf32> to vector<8x128xf32>
    %280 = arith.negf %279 : vector<8x128xf32>
    %281 = math.exp %280 : vector<8x128xf32>
    %cst_96 = arith.constant 1.000000e+00 : f32
    %282 = vector.broadcast %cst_96 : f32 to vector<8x128xf32>
    %283 = arith.addf %282, %281 : vector<8x128xf32>
    %284 = arith.divf %282, %283 : vector<8x128xf32>
    %285 = vector.extract_strided_slice %272 {offsets = [0, 256], sizes = [8, 128], strides = [1, 1]} : vector<8x512xf32> to vector<8x128xf32>
    %286 = math.tanh %285 : vector<8x128xf32>
    %287 = vector.extract_strided_slice %272 {offsets = [0, 384], sizes = [8, 128], strides = [1, 1]} : vector<8x512xf32> to vector<8x128xf32>
    %288 = arith.negf %287 : vector<8x128xf32>
    %289 = math.exp %288 : vector<8x128xf32>
    %cst_97 = arith.constant 1.000000e+00 : f32
    %290 = vector.broadcast %cst_97 : f32 to vector<8x128xf32>
    %291 = arith.addf %290, %289 : vector<8x128xf32>
    %292 = arith.divf %290, %291 : vector<8x128xf32>
    %293 = arith.mulf %284, %228 : vector<8x128xf32>
    %294 = arith.mulf %278, %286 : vector<8x128xf32>
    %295 = arith.addf %293, %294 : vector<8x128xf32>
    %296 = math.tanh %295 : vector<8x128xf32>
    %297 = arith.mulf %292, %296 : vector<8x128xf32>
    %c4_i32 = arith.constant 4 : i32
    %298 = arith.index_cast %c4_i32 : i32 to index
    %c0_98 = arith.constant 0 : index
    %c0_99 = arith.constant 0 : index
    %299 = vector.load %arg13[%298, %c0_98, %c0_99] : memref<8x8x512xbf16, #tpu.memory_space<vmem>>, vector<1x8x512xbf16>
    %300 = vector.shape_cast %299 : vector<1x8x512xbf16> to vector<8x512xbf16>
    %301 = arith.extf %300 : vector<8x512xbf16> to vector<8x512xf32>
    %302 = arith.truncf %263 : vector<8x128xf32> to vector<8x128xbf16>
    %c0_100 = arith.constant 0 : index
    %c0_101 = arith.constant 0 : index
    %303 = vector.load %arg6[%c0_100, %c0_101] : memref<128x512xbf16, #tpu.memory_space<vmem>>, vector<128x512xbf16>
    %cst_102 = arith.constant dense<0.000000e+00> : vector<8x512xf32>
    %304 = tpu.matmul %302, %303, %cst_102 {dimension_numbers = #tpu.dot_dimension_numbers<[1], [0], [0], [1], [0, 0, 1, 1], [], []>} : vector<8x128xbf16>, vector<128x512xbf16>, vector<8x512xf32> -> vector<8x512xf32>
    %305 = arith.addf %301, %304 : vector<8x512xf32>
    %306 = vector.extract_strided_slice %305 {offsets = [0, 0], sizes = [8, 128], strides = [1, 1]} : vector<8x512xf32> to vector<8x128xf32>
    %307 = arith.negf %306 : vector<8x128xf32>
    %308 = math.exp %307 : vector<8x128xf32>
    %cst_103 = arith.constant 1.000000e+00 : f32
    %309 = vector.broadcast %cst_103 : f32 to vector<8x128xf32>
    %310 = arith.addf %309, %308 : vector<8x128xf32>
    %311 = arith.divf %309, %310 : vector<8x128xf32>
    %312 = vector.extract_strided_slice %305 {offsets = [0, 128], sizes = [8, 128], strides = [1, 1]} : vector<8x512xf32> to vector<8x128xf32>
    %313 = arith.negf %312 : vector<8x128xf32>
    %314 = math.exp %313 : vector<8x128xf32>
    %cst_104 = arith.constant 1.000000e+00 : f32
    %315 = vector.broadcast %cst_104 : f32 to vector<8x128xf32>
    %316 = arith.addf %315, %314 : vector<8x128xf32>
    %317 = arith.divf %315, %316 : vector<8x128xf32>
    %318 = vector.extract_strided_slice %305 {offsets = [0, 256], sizes = [8, 128], strides = [1, 1]} : vector<8x512xf32> to vector<8x128xf32>
    %319 = math.tanh %318 : vector<8x128xf32>
    %320 = vector.extract_strided_slice %305 {offsets = [0, 384], sizes = [8, 128], strides = [1, 1]} : vector<8x512xf32> to vector<8x128xf32>
    %321 = arith.negf %320 : vector<8x128xf32>
    %322 = math.exp %321 : vector<8x128xf32>
    %cst_105 = arith.constant 1.000000e+00 : f32
    %323 = vector.broadcast %cst_105 : f32 to vector<8x128xf32>
    %324 = arith.addf %323, %322 : vector<8x128xf32>
    %325 = arith.divf %323, %324 : vector<8x128xf32>
    %326 = arith.mulf %317, %261 : vector<8x128xf32>
    %327 = arith.mulf %311, %319 : vector<8x128xf32>
    %328 = arith.addf %326, %327 : vector<8x128xf32>
    %329 = math.tanh %328 : vector<8x128xf32>
    %330 = arith.mulf %325, %329 : vector<8x128xf32>
    %331 = arith.truncf %330 : vector<8x128xf32> to vector<8x128xbf16>
    %c0_106 = arith.constant 0 : index
    %c0_107 = arith.constant 0 : index
    %332 = vector.load %arg8[%c0_106, %c0_107] : memref<128x512xbf16, #tpu.memory_space<vmem>>, vector<128x512xbf16>
    %cst_108 = arith.constant dense<0.000000e+00> : vector<8x512xf32>
    %333 = tpu.matmul %331, %332, %cst_108 {dimension_numbers = #tpu.dot_dimension_numbers<[1], [0], [0], [1], [0, 0, 1, 1], [], []>} : vector<8x128xbf16>, vector<128x512xbf16>, vector<8x512xf32> -> vector<8x512xf32>
    %334 = arith.truncf %297 : vector<8x128xf32> to vector<8x128xbf16>
    %c0_109 = arith.constant 0 : index
    %c0_110 = arith.constant 0 : index
    %335 = vector.load %arg9[%c0_109, %c0_110] : memref<128x512xbf16, #tpu.memory_space<vmem>>, vector<128x512xbf16>
    %cst_111 = arith.constant dense<0.000000e+00> : vector<8x512xf32>
    %336 = tpu.matmul %334, %335, %cst_111 {dimension_numbers = #tpu.dot_dimension_numbers<[1], [0], [0], [1], [0, 0, 1, 1], [], []>} : vector<8x128xbf16>, vector<128x512xbf16>, vector<8x512xf32> -> vector<8x512xf32>
    %337 = arith.addf %333, %336 : vector<8x512xf32>
    %338 = vector.broadcast %21 : vector<1x512xf32> to vector<8x512xf32>
    %339 = arith.addf %337, %338 : vector<8x512xf32>
    %340 = vector.extract_strided_slice %339 {offsets = [0, 0], sizes = [8, 128], strides = [1, 1]} : vector<8x512xf32> to vector<8x128xf32>
    %341 = arith.negf %340 : vector<8x128xf32>
    %342 = math.exp %341 : vector<8x128xf32>
    %cst_112 = arith.constant 1.000000e+00 : f32
    %343 = vector.broadcast %cst_112 : f32 to vector<8x128xf32>
    %344 = arith.addf %343, %342 : vector<8x128xf32>
    %345 = arith.divf %343, %344 : vector<8x128xf32>
    %346 = vector.extract_strided_slice %339 {offsets = [0, 128], sizes = [8, 128], strides = [1, 1]} : vector<8x512xf32> to vector<8x128xf32>
    %347 = arith.negf %346 : vector<8x128xf32>
    %348 = math.exp %347 : vector<8x128xf32>
    %cst_113 = arith.constant 1.000000e+00 : f32
    %349 = vector.broadcast %cst_113 : f32 to vector<8x128xf32>
    %350 = arith.addf %349, %348 : vector<8x128xf32>
    %351 = arith.divf %349, %350 : vector<8x128xf32>
    %352 = vector.extract_strided_slice %339 {offsets = [0, 256], sizes = [8, 128], strides = [1, 1]} : vector<8x512xf32> to vector<8x128xf32>
    %353 = math.tanh %352 : vector<8x128xf32>
    %354 = vector.extract_strided_slice %339 {offsets = [0, 384], sizes = [8, 128], strides = [1, 1]} : vector<8x512xf32> to vector<8x128xf32>
    %355 = arith.negf %354 : vector<8x128xf32>
    %356 = math.exp %355 : vector<8x128xf32>
    %cst_114 = arith.constant 1.000000e+00 : f32
    %357 = vector.broadcast %cst_114 : f32 to vector<8x128xf32>
    %358 = arith.addf %357, %356 : vector<8x128xf32>
    %359 = arith.divf %357, %358 : vector<8x128xf32>
    %360 = arith.mulf %351, %295 : vector<8x128xf32>
    %361 = arith.mulf %345, %353 : vector<8x128xf32>
    %362 = arith.addf %360, %361 : vector<8x128xf32>
    %363 = math.tanh %362 : vector<8x128xf32>
    %364 = arith.mulf %359, %363 : vector<8x128xf32>
    %c5_i32 = arith.constant 5 : i32
    %365 = arith.index_cast %c5_i32 : i32 to index
    %c0_115 = arith.constant 0 : index
    %c0_116 = arith.constant 0 : index
    %366 = vector.load %arg13[%365, %c0_115, %c0_116] : memref<8x8x512xbf16, #tpu.memory_space<vmem>>, vector<1x8x512xbf16>
    %367 = vector.shape_cast %366 : vector<1x8x512xbf16> to vector<8x512xbf16>
    %368 = arith.extf %367 : vector<8x512xbf16> to vector<8x512xf32>
    %369 = arith.truncf %330 : vector<8x128xf32> to vector<8x128xbf16>
    %c0_117 = arith.constant 0 : index
    %c0_118 = arith.constant 0 : index
    %370 = vector.load %arg6[%c0_117, %c0_118] : memref<128x512xbf16, #tpu.memory_space<vmem>>, vector<128x512xbf16>
    %cst_119 = arith.constant dense<0.000000e+00> : vector<8x512xf32>
    %371 = tpu.matmul %369, %370, %cst_119 {dimension_numbers = #tpu.dot_dimension_numbers<[1], [0], [0], [1], [0, 0, 1, 1], [], []>} : vector<8x128xbf16>, vector<128x512xbf16>, vector<8x512xf32> -> vector<8x512xf32>
    %372 = arith.addf %368, %371 : vector<8x512xf32>
    %373 = vector.extract_strided_slice %372 {offsets = [0, 0], sizes = [8, 128], strides = [1, 1]} : vector<8x512xf32> to vector<8x128xf32>
    %374 = arith.negf %373 : vector<8x128xf32>
    %375 = math.exp %374 : vector<8x128xf32>
    %cst_120 = arith.constant 1.000000e+00 : f32
    %376 = vector.broadcast %cst_120 : f32 to vector<8x128xf32>
    %377 = arith.addf %376, %375 : vector<8x128xf32>
    %378 = arith.divf %376, %377 : vector<8x128xf32>
    %379 = vector.extract_strided_slice %372 {offsets = [0, 128], sizes = [8, 128], strides = [1, 1]} : vector<8x512xf32> to vector<8x128xf32>
    %380 = arith.negf %379 : vector<8x128xf32>
    %381 = math.exp %380 : vector<8x128xf32>
    %cst_121 = arith.constant 1.000000e+00 : f32
    %382 = vector.broadcast %cst_121 : f32 to vector<8x128xf32>
    %383 = arith.addf %382, %381 : vector<8x128xf32>
    %384 = arith.divf %382, %383 : vector<8x128xf32>
    %385 = vector.extract_strided_slice %372 {offsets = [0, 256], sizes = [8, 128], strides = [1, 1]} : vector<8x512xf32> to vector<8x128xf32>
    %386 = math.tanh %385 : vector<8x128xf32>
    %387 = vector.extract_strided_slice %372 {offsets = [0, 384], sizes = [8, 128], strides = [1, 1]} : vector<8x512xf32> to vector<8x128xf32>
    %388 = arith.negf %387 : vector<8x128xf32>
    %389 = math.exp %388 : vector<8x128xf32>
    %cst_122 = arith.constant 1.000000e+00 : f32
    %390 = vector.broadcast %cst_122 : f32 to vector<8x128xf32>
    %391 = arith.addf %390, %389 : vector<8x128xf32>
    %392 = arith.divf %390, %391 : vector<8x128xf32>
    %393 = arith.mulf %384, %328 : vector<8x128xf32>
    %394 = arith.mulf %378, %386 : vector<8x128xf32>
    %395 = arith.addf %393, %394 : vector<8x128xf32>
    %396 = math.tanh %395 : vector<8x128xf32>
    %397 = arith.mulf %392, %396 : vector<8x128xf32>
    %398 = arith.truncf %397 : vector<8x128xf32> to vector<8x128xbf16>
    %c0_123 = arith.constant 0 : index
    %c0_124 = arith.constant 0 : index
    %399 = vector.load %arg8[%c0_123, %c0_124] : memref<128x512xbf16, #tpu.memory_space<vmem>>, vector<128x512xbf16>
    %cst_125 = arith.constant dense<0.000000e+00> : vector<8x512xf32>
    %400 = tpu.matmul %398, %399, %cst_125 {dimension_numbers = #tpu.dot_dimension_numbers<[1], [0], [0], [1], [0, 0, 1, 1], [], []>} : vector<8x128xbf16>, vector<128x512xbf16>, vector<8x512xf32> -> vector<8x512xf32>
    %401 = arith.truncf %364 : vector<8x128xf32> to vector<8x128xbf16>
    %c0_126 = arith.constant 0 : index
    %c0_127 = arith.constant 0 : index
    %402 = vector.load %arg9[%c0_126, %c0_127] : memref<128x512xbf16, #tpu.memory_space<vmem>>, vector<128x512xbf16>
    %cst_128 = arith.constant dense<0.000000e+00> : vector<8x512xf32>
    %403 = tpu.matmul %401, %402, %cst_128 {dimension_numbers = #tpu.dot_dimension_numbers<[1], [0], [0], [1], [0, 0, 1, 1], [], []>} : vector<8x128xbf16>, vector<128x512xbf16>, vector<8x512xf32> -> vector<8x512xf32>
    %404 = arith.addf %400, %403 : vector<8x512xf32>
    %405 = vector.broadcast %21 : vector<1x512xf32> to vector<8x512xf32>
    %406 = arith.addf %404, %405 : vector<8x512xf32>
    %407 = vector.extract_strided_slice %406 {offsets = [0, 0], sizes = [8, 128], strides = [1, 1]} : vector<8x512xf32> to vector<8x128xf32>
    %408 = arith.negf %407 : vector<8x128xf32>
    %409 = math.exp %408 : vector<8x128xf32>
    %cst_129 = arith.constant 1.000000e+00 : f32
    %410 = vector.broadcast %cst_129 : f32 to vector<8x128xf32>
    %411 = arith.addf %410, %409 : vector<8x128xf32>
    %412 = arith.divf %410, %411 : vector<8x128xf32>
    %413 = vector.extract_strided_slice %406 {offsets = [0, 128], sizes = [8, 128], strides = [1, 1]} : vector<8x512xf32> to vector<8x128xf32>
    %414 = arith.negf %413 : vector<8x128xf32>
    %415 = math.exp %414 : vector<8x128xf32>
    %cst_130 = arith.constant 1.000000e+00 : f32
    %416 = vector.broadcast %cst_130 : f32 to vector<8x128xf32>
    %417 = arith.addf %416, %415 : vector<8x128xf32>
    %418 = arith.divf %416, %417 : vector<8x128xf32>
    %419 = vector.extract_strided_slice %406 {offsets = [0, 256], sizes = [8, 128], strides = [1, 1]} : vector<8x512xf32> to vector<8x128xf32>
    %420 = math.tanh %419 : vector<8x128xf32>
    %421 = vector.extract_strided_slice %406 {offsets = [0, 384], sizes = [8, 128], strides = [1, 1]} : vector<8x512xf32> to vector<8x128xf32>
    %422 = arith.negf %421 : vector<8x128xf32>
    %423 = math.exp %422 : vector<8x128xf32>
    %cst_131 = arith.constant 1.000000e+00 : f32
    %424 = vector.broadcast %cst_131 : f32 to vector<8x128xf32>
    %425 = arith.addf %424, %423 : vector<8x128xf32>
    %426 = arith.divf %424, %425 : vector<8x128xf32>
    %427 = arith.mulf %418, %362 : vector<8x128xf32>
    %428 = arith.mulf %412, %420 : vector<8x128xf32>
    %429 = arith.addf %427, %428 : vector<8x128xf32>
    %430 = math.tanh %429 : vector<8x128xf32>
    %431 = arith.mulf %426, %430 : vector<8x128xf32>
    %c6_i32 = arith.constant 6 : i32
    %432 = arith.index_cast %c6_i32 : i32 to index
    %c0_132 = arith.constant 0 : index
    %c0_133 = arith.constant 0 : index
    %433 = vector.load %arg13[%432, %c0_132, %c0_133] : memref<8x8x512xbf16, #tpu.memory_space<vmem>>, vector<1x8x512xbf16>
    %434 = vector.shape_cast %433 : vector<1x8x512xbf16> to vector<8x512xbf16>
    %435 = arith.extf %434 : vector<8x512xbf16> to vector<8x512xf32>
    %436 = arith.truncf %397 : vector<8x128xf32> to vector<8x128xbf16>
    %c0_134 = arith.constant 0 : index
    %c0_135 = arith.constant 0 : index
    %437 = vector.load %arg6[%c0_134, %c0_135] : memref<128x512xbf16, #tpu.memory_space<vmem>>, vector<128x512xbf16>
    %cst_136 = arith.constant dense<0.000000e+00> : vector<8x512xf32>
    %438 = tpu.matmul %436, %437, %cst_136 {dimension_numbers = #tpu.dot_dimension_numbers<[1], [0], [0], [1], [0, 0, 1, 1], [], []>} : vector<8x128xbf16>, vector<128x512xbf16>, vector<8x512xf32> -> vector<8x512xf32>
    %439 = arith.addf %435, %438 : vector<8x512xf32>
    %440 = vector.extract_strided_slice %439 {offsets = [0, 0], sizes = [8, 128], strides = [1, 1]} : vector<8x512xf32> to vector<8x128xf32>
    %441 = arith.negf %440 : vector<8x128xf32>
    %442 = math.exp %441 : vector<8x128xf32>
    %cst_137 = arith.constant 1.000000e+00 : f32
    %443 = vector.broadcast %cst_137 : f32 to vector<8x128xf32>
    %444 = arith.addf %443, %442 : vector<8x128xf32>
    %445 = arith.divf %443, %444 : vector<8x128xf32>
    %446 = vector.extract_strided_slice %439 {offsets = [0, 128], sizes = [8, 128], strides = [1, 1]} : vector<8x512xf32> to vector<8x128xf32>
    %447 = arith.negf %446 : vector<8x128xf32>
    %448 = math.exp %447 : vector<8x128xf32>
    %cst_138 = arith.constant 1.000000e+00 : f32
    %449 = vector.broadcast %cst_138 : f32 to vector<8x128xf32>
    %450 = arith.addf %449, %448 : vector<8x128xf32>
    %451 = arith.divf %449, %450 : vector<8x128xf32>
    %452 = vector.extract_strided_slice %439 {offsets = [0, 256], sizes = [8, 128], strides = [1, 1]} : vector<8x512xf32> to vector<8x128xf32>
    %453 = math.tanh %452 : vector<8x128xf32>
    %454 = vector.extract_strided_slice %439 {offsets = [0, 384], sizes = [8, 128], strides = [1, 1]} : vector<8x512xf32> to vector<8x128xf32>
    %455 = arith.negf %454 : vector<8x128xf32>
    %456 = math.exp %455 : vector<8x128xf32>
    %cst_139 = arith.constant 1.000000e+00 : f32
    %457 = vector.broadcast %cst_139 : f32 to vector<8x128xf32>
    %458 = arith.addf %457, %456 : vector<8x128xf32>
    %459 = arith.divf %457, %458 : vector<8x128xf32>
    %460 = arith.mulf %451, %395 : vector<8x128xf32>
    %461 = arith.mulf %445, %453 : vector<8x128xf32>
    %462 = arith.addf %460, %461 : vector<8x128xf32>
    %463 = math.tanh %462 : vector<8x128xf32>
    %464 = arith.mulf %459, %463 : vector<8x128xf32>
    %465 = arith.truncf %464 : vector<8x128xf32> to vector<8x128xbf16>
    %c0_140 = arith.constant 0 : index
    %c0_141 = arith.constant 0 : index
    %466 = vector.load %arg8[%c0_140, %c0_141] : memref<128x512xbf16, #tpu.memory_space<vmem>>, vector<128x512xbf16>
    %cst_142 = arith.constant dense<0.000000e+00> : vector<8x512xf32>
    %467 = tpu.matmul %465, %466, %cst_142 {dimension_numbers = #tpu.dot_dimension_numbers<[1], [0], [0], [1], [0, 0, 1, 1], [], []>} : vector<8x128xbf16>, vector<128x512xbf16>, vector<8x512xf32> -> vector<8x512xf32>
    %468 = arith.truncf %431 : vector<8x128xf32> to vector<8x128xbf16>
    %c0_143 = arith.constant 0 : index
    %c0_144 = arith.constant 0 : index
    %469 = vector.load %arg9[%c0_143, %c0_144] : memref<128x512xbf16, #tpu.memory_space<vmem>>, vector<128x512xbf16>
    %cst_145 = arith.constant dense<0.000000e+00> : vector<8x512xf32>
    %470 = tpu.matmul %468, %469, %cst_145 {dimension_numbers = #tpu.dot_dimension_numbers<[1], [0], [0], [1], [0, 0, 1, 1], [], []>} : vector<8x128xbf16>, vector<128x512xbf16>, vector<8x512xf32> -> vector<8x512xf32>
    %471 = arith.addf %467, %470 : vector<8x512xf32>
    %472 = vector.broadcast %21 : vector<1x512xf32> to vector<8x512xf32>
    %473 = arith.addf %471, %472 : vector<8x512xf32>
    %474 = vector.extract_strided_slice %473 {offsets = [0, 0], sizes = [8, 128], strides = [1, 1]} : vector<8x512xf32> to vector<8x128xf32>
    %475 = arith.negf %474 : vector<8x128xf32>
    %476 = math.exp %475 : vector<8x128xf32>
    %cst_146 = arith.constant 1.000000e+00 : f32
    %477 = vector.broadcast %cst_146 : f32 to vector<8x128xf32>
    %478 = arith.addf %477, %476 : vector<8x128xf32>
    %479 = arith.divf %477, %478 : vector<8x128xf32>
    %480 = vector.extract_strided_slice %473 {offsets = [0, 128], sizes = [8, 128], strides = [1, 1]} : vector<8x512xf32> to vector<8x128xf32>
    %481 = arith.negf %480 : vector<8x128xf32>
    %482 = math.exp %481 : vector<8x128xf32>
    %cst_147 = arith.constant 1.000000e+00 : f32
    %483 = vector.broadcast %cst_147 : f32 to vector<8x128xf32>
    %484 = arith.addf %483, %482 : vector<8x128xf32>
    %485 = arith.divf %483, %484 : vector<8x128xf32>
    %486 = vector.extract_strided_slice %473 {offsets = [0, 256], sizes = [8, 128], strides = [1, 1]} : vector<8x512xf32> to vector<8x128xf32>
    %487 = math.tanh %486 : vector<8x128xf32>
    %488 = vector.extract_strided_slice %473 {offsets = [0, 384], sizes = [8, 128], strides = [1, 1]} : vector<8x512xf32> to vector<8x128xf32>
    %489 = arith.negf %488 : vector<8x128xf32>
    %490 = math.exp %489 : vector<8x128xf32>
    %cst_148 = arith.constant 1.000000e+00 : f32
    %491 = vector.broadcast %cst_148 : f32 to vector<8x128xf32>
    %492 = arith.addf %491, %490 : vector<8x128xf32>
    %493 = arith.divf %491, %492 : vector<8x128xf32>
    %494 = arith.mulf %485, %429 : vector<8x128xf32>
    %495 = arith.mulf %479, %487 : vector<8x128xf32>
    %496 = arith.addf %494, %495 : vector<8x128xf32>
    %497 = math.tanh %496 : vector<8x128xf32>
    %498 = arith.mulf %493, %497 : vector<8x128xf32>
    %c7_i32 = arith.constant 7 : i32
    %499 = arith.index_cast %c7_i32 : i32 to index
    %c0_149 = arith.constant 0 : index
    %c0_150 = arith.constant 0 : index
    %500 = vector.load %arg13[%499, %c0_149, %c0_150] : memref<8x8x512xbf16, #tpu.memory_space<vmem>>, vector<1x8x512xbf16>
    %501 = vector.shape_cast %500 : vector<1x8x512xbf16> to vector<8x512xbf16>
    %502 = arith.extf %501 : vector<8x512xbf16> to vector<8x512xf32>
    %503 = arith.truncf %464 : vector<8x128xf32> to vector<8x128xbf16>
    %c0_151 = arith.constant 0 : index
    %c0_152 = arith.constant 0 : index
    %504 = vector.load %arg6[%c0_151, %c0_152] : memref<128x512xbf16, #tpu.memory_space<vmem>>, vector<128x512xbf16>
    %cst_153 = arith.constant dense<0.000000e+00> : vector<8x512xf32>
    %505 = tpu.matmul %503, %504, %cst_153 {dimension_numbers = #tpu.dot_dimension_numbers<[1], [0], [0], [1], [0, 0, 1, 1], [], []>} : vector<8x128xbf16>, vector<128x512xbf16>, vector<8x512xf32> -> vector<8x512xf32>
    %506 = arith.addf %502, %505 : vector<8x512xf32>
    %507 = vector.extract_strided_slice %506 {offsets = [0, 0], sizes = [8, 128], strides = [1, 1]} : vector<8x512xf32> to vector<8x128xf32>
    %508 = arith.negf %507 : vector<8x128xf32>
    %509 = math.exp %508 : vector<8x128xf32>
    %cst_154 = arith.constant 1.000000e+00 : f32
    %510 = vector.broadcast %cst_154 : f32 to vector<8x128xf32>
    %511 = arith.addf %510, %509 : vector<8x128xf32>
    %512 = arith.divf %510, %511 : vector<8x128xf32>
    %513 = vector.extract_strided_slice %506 {offsets = [0, 128], sizes = [8, 128], strides = [1, 1]} : vector<8x512xf32> to vector<8x128xf32>
    %514 = arith.negf %513 : vector<8x128xf32>
    %515 = math.exp %514 : vector<8x128xf32>
    %cst_155 = arith.constant 1.000000e+00 : f32
    %516 = vector.broadcast %cst_155 : f32 to vector<8x128xf32>
    %517 = arith.addf %516, %515 : vector<8x128xf32>
    %518 = arith.divf %516, %517 : vector<8x128xf32>
    %519 = vector.extract_strided_slice %506 {offsets = [0, 256], sizes = [8, 128], strides = [1, 1]} : vector<8x512xf32> to vector<8x128xf32>
    %520 = math.tanh %519 : vector<8x128xf32>
    %521 = vector.extract_strided_slice %506 {offsets = [0, 384], sizes = [8, 128], strides = [1, 1]} : vector<8x512xf32> to vector<8x128xf32>
    %522 = arith.negf %521 : vector<8x128xf32>
    %523 = math.exp %522 : vector<8x128xf32>
    %cst_156 = arith.constant 1.000000e+00 : f32
    %524 = vector.broadcast %cst_156 : f32 to vector<8x128xf32>
    %525 = arith.addf %524, %523 : vector<8x128xf32>
    %526 = arith.divf %524, %525 : vector<8x128xf32>
    %527 = arith.mulf %518, %462 : vector<8x128xf32>
    %528 = arith.mulf %512, %520 : vector<8x128xf32>
    %529 = arith.addf %527, %528 : vector<8x128xf32>
    %530 = math.tanh %529 : vector<8x128xf32>
    %531 = arith.mulf %526, %530 : vector<8x128xf32>
    %532 = arith.truncf %531 : vector<8x128xf32> to vector<8x128xbf16>
    %c0_157 = arith.constant 0 : index
    %c0_158 = arith.constant 0 : index
    %533 = vector.load %arg8[%c0_157, %c0_158] : memref<128x512xbf16, #tpu.memory_space<vmem>>, vector<128x512xbf16>
    %cst_159 = arith.constant dense<0.000000e+00> : vector<8x512xf32>
    %534 = tpu.matmul %532, %533, %cst_159 {dimension_numbers = #tpu.dot_dimension_numbers<[1], [0], [0], [1], [0, 0, 1, 1], [], []>} : vector<8x128xbf16>, vector<128x512xbf16>, vector<8x512xf32> -> vector<8x512xf32>
    %535 = arith.truncf %498 : vector<8x128xf32> to vector<8x128xbf16>
    %c0_160 = arith.constant 0 : index
    %c0_161 = arith.constant 0 : index
    %536 = vector.load %arg9[%c0_160, %c0_161] : memref<128x512xbf16, #tpu.memory_space<vmem>>, vector<128x512xbf16>
    %cst_162 = arith.constant dense<0.000000e+00> : vector<8x512xf32>
    %537 = tpu.matmul %535, %536, %cst_162 {dimension_numbers = #tpu.dot_dimension_numbers<[1], [0], [0], [1], [0, 0, 1, 1], [], []>} : vector<8x128xbf16>, vector<128x512xbf16>, vector<8x512xf32> -> vector<8x512xf32>
    %538 = arith.addf %534, %537 : vector<8x512xf32>
    %539 = vector.broadcast %21 : vector<1x512xf32> to vector<8x512xf32>
    %540 = arith.addf %538, %539 : vector<8x512xf32>
    %541 = vector.extract_strided_slice %540 {offsets = [0, 0], sizes = [8, 128], strides = [1, 1]} : vector<8x512xf32> to vector<8x128xf32>
    %542 = arith.negf %541 : vector<8x128xf32>
    %543 = math.exp %542 : vector<8x128xf32>
    %cst_163 = arith.constant 1.000000e+00 : f32
    %544 = vector.broadcast %cst_163 : f32 to vector<8x128xf32>
    %545 = arith.addf %544, %543 : vector<8x128xf32>
    %546 = arith.divf %544, %545 : vector<8x128xf32>
    %547 = vector.extract_strided_slice %540 {offsets = [0, 128], sizes = [8, 128], strides = [1, 1]} : vector<8x512xf32> to vector<8x128xf32>
    %548 = arith.negf %547 : vector<8x128xf32>
    %549 = math.exp %548 : vector<8x128xf32>
    %cst_164 = arith.constant 1.000000e+00 : f32
    %550 = vector.broadcast %cst_164 : f32 to vector<8x128xf32>
    %551 = arith.addf %550, %549 : vector<8x128xf32>
    %552 = arith.divf %550, %551 : vector<8x128xf32>
    %553 = vector.extract_strided_slice %540 {offsets = [0, 256], sizes = [8, 128], strides = [1, 1]} : vector<8x512xf32> to vector<8x128xf32>
    %554 = math.tanh %553 : vector<8x128xf32>
    %555 = vector.extract_strided_slice %540 {offsets = [0, 384], sizes = [8, 128], strides = [1, 1]} : vector<8x512xf32> to vector<8x128xf32>
    %556 = arith.negf %555 : vector<8x128xf32>
    %557 = math.exp %556 : vector<8x128xf32>
    %cst_165 = arith.constant 1.000000e+00 : f32
    %558 = vector.broadcast %cst_165 : f32 to vector<8x128xf32>
    %559 = arith.addf %558, %557 : vector<8x128xf32>
    %560 = arith.divf %558, %559 : vector<8x128xf32>
    %561 = arith.mulf %552, %496 : vector<8x128xf32>
    %562 = arith.mulf %546, %554 : vector<8x128xf32>
    %563 = arith.addf %561, %562 : vector<8x128xf32>
    %564 = math.tanh %563 : vector<8x128xf32>
    %565 = arith.mulf %560, %564 : vector<8x128xf32>
    %c8_i32 = arith.constant 8 : i32
    %c0_166 = arith.constant 0 : index
    %c0_167 = arith.constant 0 : index
    %c0_168 = arith.constant 0 : index
    %566 = vector.load %arg11[%c0_166, %c0_167, %c0_168] : memref<2x8x128xf32, #tpu.memory_space<vmem>>, vector<1x8x128xf32>
    %567 = vector.shape_cast %566 : vector<1x8x128xf32> to vector<8x128xf32>
    %568 = vector.shape_cast %531 : vector<8x128xf32> to vector<1x8x128xf32>
    tpu.vector_store %arg11[%c0_166, %c0_167, %c0_168], %568 {strides = array<i32>} : memref<2x8x128xf32, #tpu.memory_space<vmem>>, vector<1x8x128xf32>,
    %c1_169 = arith.constant 1 : index
    %c0_170 = arith.constant 0 : index
    %c0_171 = arith.constant 0 : index
    %569 = vector.load %arg11[%c1_169, %c0_170, %c0_171] : memref<2x8x128xf32, #tpu.memory_space<vmem>>, vector<1x8x128xf32>
    %570 = vector.shape_cast %569 : vector<1x8x128xf32> to vector<8x128xf32>
    %571 = vector.shape_cast %565 : vector<8x128xf32> to vector<1x8x128xf32>
    tpu.vector_store %arg11[%c1_169, %c0_170, %c0_171], %571 {strides = array<i32>} : memref<2x8x128xf32, #tpu.memory_space<vmem>>, vector<1x8x128xf32>,
    %c0_172 = arith.constant 0 : index
    %c0_173 = arith.constant 0 : index
    %c0_174 = arith.constant 0 : index
    %572 = vector.load %arg12[%c0_172, %c0_173, %c0_174] : memref<2x8x128xf32, #tpu.memory_space<vmem>>, vector<1x8x128xf32>
    %573 = vector.shape_cast %572 : vector<1x8x128xf32> to vector<8x128xf32>
    %574 = vector.shape_cast %529 : vector<8x128xf32> to vector<1x8x128xf32>
    tpu.vector_store %arg12[%c0_172, %c0_173, %c0_174], %574 {strides = array<i32>} : memref<2x8x128xf32, #tpu.memory_space<vmem>>, vector<1x8x128xf32>,
    %c1_175 = arith.constant 1 : index
    %c0_176 = arith.constant 0 : index
    %c0_177 = arith.constant 0 : index
    %575 = vector.load %arg12[%c1_175, %c0_176, %c0_177] : memref<2x8x128xf32, #tpu.memory_space<vmem>>, vector<1x8x128xf32>
    %576 = vector.shape_cast %575 : vector<1x8x128xf32> to vector<8x128xf32>
    %577 = vector.shape_cast %563 : vector<8x128xf32> to vector<1x8x128xf32>
    tpu.vector_store %arg12[%c1_175, %c0_176, %c0_177], %577 {strides = array<i32>} : memref<2x8x128xf32, #tpu.memory_space<vmem>>, vector<1x8x128xf32>,
    return
  }
  func.func @transform_0(%arg0: i32, %arg1: i32) -> (i32, i32, i32) {
    %c0_i32 = arith.constant 0 : i32
    %c0_i32_0 = arith.constant 0 : i32
    return %arg1, %arg0, %c0_i32 : i32, i32, i32
  }
  func.func @transform_1(%arg0: i32, %arg1: i32) -> (i32, i32) {
    %c0_i32 = arith.constant 0 : i32
    %c0_i32_0 = arith.constant 0 : i32
    %c0_i32_1 = arith.constant 0 : i32
    return %c0_i32, %c0_i32_0 : i32, i32
  }
  func.func @transform_2(%arg0: i32, %arg1: i32) -> (i32, i32) {
    %c0_i32 = arith.constant 0 : i32
    %c0_i32_0 = arith.constant 0 : i32
    %c0_i32_1 = arith.constant 0 : i32
    return %c0_i32, %c0_i32_0 : i32, i32
  }
  func.func @transform_3(%arg0: i32, %arg1: i32) -> (i32, i32) {
    %c0_i32 = arith.constant 0 : i32
    %c0_i32_0 = arith.constant 0 : i32
    %c0_i32_1 = arith.constant 0 : i32
    return %c0_i32, %c0_i32_0 : i32, i32
  }
  func.func @transform_4(%arg0: i32, %arg1: i32) -> (i32, i32) {
    %c0_i32 = arith.constant 0 : i32
    %c0_i32_0 = arith.constant 0 : i32
    %c0_i32_1 = arith.constant 0 : i32
    return %c0_i32, %c0_i32_0 : i32, i32
  }
  func.func @transform_5(%arg0: i32, %arg1: i32) -> (i32, i32) {
    %c0_i32 = arith.constant 0 : i32
    %c0_i32_0 = arith.constant 0 : i32
    %c0_i32_1 = arith.constant 0 : i32
    return %c0_i32, %c0_i32_0 : i32, i32
  }
  func.func @transform_6(%arg0: i32, %arg1: i32) -> (i32, i32) {
    %c0_i32 = arith.constant 0 : i32
    %c0_i32_0 = arith.constant 0 : i32
    %c0_i32_1 = arith.constant 0 : i32
    return %c0_i32, %c0_i32_0 : i32, i32
  }
  func.func @transform_7(%arg0: i32, %arg1: i32) -> (i32, i32) {
    %c0_i32 = arith.constant 0 : i32
    %c0_i32_0 = arith.constant 0 : i32
    %c0_i32_1 = arith.constant 0 : i32
    return %c0_i32, %c0_i32_0 : i32, i32
  }
  func.func @transform_8(%arg0: i32, %arg1: i32) -> (i32, i32) {
    %c0_i32 = arith.constant 0 : i32
    %c0_i32_0 = arith.constant 0 : i32
    %c0_i32_1 = arith.constant 0 : i32
    return %c0_i32, %c0_i32_0 : i32, i32
  }
  func.func @transform_9(%arg0: i32, %arg1: i32) -> (i32, i32, i32) {
    %c0_i32 = arith.constant 0 : i32
    %c0_i32_0 = arith.constant 0 : i32
    %c0_i32_1 = arith.constant 0 : i32
    return %c0_i32, %arg0, %c0_i32_0 : i32, i32, i32
  }
  func.func @transform_10(%arg0: i32, %arg1: i32) -> (i32, i32, i32) {
    %c0_i32 = arith.constant 0 : i32
    %c0_i32_0 = arith.constant 0 : i32
    %c0_i32_1 = arith.constant 0 : i32
    return %c0_i32, %arg0, %c0_i32_0 : i32, i32, i32
  }
}

</mosaic_0001>

<bundles_post_ra>
// kernel: encoder_forward.1
= control target key start
LH: loop header
LB: loop body
LE: loop exit
PB: predicated region body
PF: predicated region fallthrough
CT: control target
= control target key end

     0   :  { %16 = vsyncpa [#allocation4], 0  ;;  %s6228_s0 = inlined_call_operand.vmem [shape: bf16[8,8,16], index: 0, kind: input, shape index: {}]   ;;  %s6229_s1 = inlined_call_operand.vmem [shape: bf16[16,128], index: 1, kind: input, shape index: {}]   ;;  %s6230_s2 = inlined_call_operand.vmem [shape: f32[1,128], index: 2, kind: input, shape index: {}]   ;;  %s6231_s3 = inlined_call_operand.hbm [shape: bf16[128,512], index: 3, kind: input, shape index: {}]   ;;  %s6232_s4 = inlined_call_operand.hbm [shape: bf16[128,512], index: 4, kind: input, shape index: {}]   ;;  %s6233_s5 = inlined_call_operand.vmem [shape: f32[1,512], index: 5, kind: input, shape index: {}]   ;;  %s6234_s6 = inlined_call_operand.hbm [shape: bf16[128,512], index: 6, kind: input, shape index: {}]   ;;  %s6235_s7 = inlined_call_operand.hbm [shape: bf16[128,512], index: 7, kind: input, shape index: {}]   ;;  %s6236_s8 = inlined_call_operand.vmem [shape: f32[1,512], index: 8, kind: input, shape index: {}]   ;;  %s6237_s9 = inlined_call_operand.vmem [shape: f32[2,8,128], index: 9, kind: output, shape index: {0}]   ;;  %s6238_s10 = inlined_call_operand.vmem [shape: f32[2,8,128], index: 10, kind: output, shape index: {1}]  }
   0x1   :  { %17 = vsyncpa [#allocation6], 0 }
   0x2   :  { %18 = vsyncpa [#allocation9], 0  ;;  %s42_s15 = sshll.u32 %s6232_s4, 4  ;;  %s4636_s16 = smov [#allocation5]   ;;  %s43_s15 = int_to_ptr.hbm [resolvable:$true] %s42_s15 }
   0x3   :  { %s44_s17 = sshll.u32 %s4636_s16, 4  ;;  %s29_s20 = sshll.u32 %s6231_s3, 4  ;;  %s45_s17 = int_to_ptr.vmem [resolvable:$true] %s44_s17  ;;  %s30_s20 = int_to_ptr.hbm [resolvable:$true] %s29_s20 }
   0x4   :  { %s4637_s21 = smov 256   ;;  %s4638_s22 = smov 16  }
   0x5   :  { %50 = dma.hbm_to_vmem [thread:$0]  %s43_s15, 4096, %s45_s17, [#allocation6], %s4637_s21, %s4637_s21, %s4638_s22  }
   0x6   :  { %s4639_s23 = smov [#allocation3]   ;;  %s57_s27 = sshll.u32 %s6234_s6, 4  ;;  %s58_s27 = int_to_ptr.hbm [resolvable:$true] %s57_s27 }
   0x7   :  { %s31_s24 = sshll.u32 %s4639_s23, 4  ;;  %s70_s29 = sshll.u32 %s6235_s7, 4  ;;  %s32_s24 = int_to_ptr.vmem [resolvable:$true] %s31_s24  ;;  %s71_s29 = int_to_ptr.hbm [resolvable:$true] %s70_s29 }
   0x8   :  { %37 = dma.hbm_to_vmem [thread:$0]  %s30_s20, 4096, %s32_s24, [#allocation4], %s4637_s21, %s4637_s21, %s4638_s22  }
   0x9   :  { %s4640_s30 = smov [#allocation7]   ;;  %s4641_s3 = smov [#allocation8]  }
   0xa   :  { %s59_s11 = sshll.u32 %s4640_s30, 4  ;;  %s72_s12 = sshll.u32 %s4641_s3, 4  ;;  %s60_s11 = int_to_ptr.vmem [resolvable:$true] %s59_s11  ;;  %s73_s12 = int_to_ptr.vmem [resolvable:$true] %s72_s12 }
   0xb   :  { %65 = dma.hbm_to_vmem [thread:$0]  %s58_s27, 4096, %s60_s11, [#allocation6], %s4637_s21, %s4637_s21, %s4638_s22  }
   0xc   :  { %78 = dma.hbm_to_vmem [thread:$0]  %s71_s29, 4096, %s73_s12, [#allocation9], %s4637_s21, %s4637_s21, %s4638_s22  }
   0xd   :  { %4630 = dma.done.wait [#allocation4], 4096  }
   0xe   :  { %4631 = vsyncadd [#allocation4], 4294963200 }
   0xf   :  { %4632 = dma.done.wait [#allocation6], 8192  }
  0x10   :  { %4633 = vsyncadd [#allocation6], 4294959104 }
  0x11   :  { %4634 = dma.done.wait [#allocation9], 4096  }
  0x12   :  { %4635 = vsyncadd [#allocation9], 4294963200  ;;  %v4141_v0 = vld [vmem:[%s6229_s1] sm:$0xff]  ;;  %vm146_vm0 = vcmask 130048   ;;  %v4138_v2 = vld [vmem:[%s6228_s0 + $0x8] sm:$0xff] }
  0x13   :  { %v4137_v1 = vld [vmem:[%s6228_s0] sm:$0xff]  ;;  %166 = vmatpush.bf16.msra.mxu0 %v4141_v0  ;;  %v4172_v4 = vld [vmem:[#allocation3 + $0xec] sm:$0xf0]  ;;  %v3689_v7 = vld [vmem:[#allocation3 + $0xf0] sm:$0xf0] }
  0x14   :  { %v3687_v3 = vld [vmem:[#allocation3 + $0xe0] sm:$0xf]  ;;  %v4170_v5 = vld [vmem:[#allocation3 + $0xe4] sm:$0xf]  ;;  %v3695_v8 = vld [vmem:[#allocation3 + $0xe8] sm:$0xf] }
  0x15   :  { %v3688_v6 = vor.u32 %v4172_v4, %v3687_v3  ;;  %v4173_v9 = vld [vmem:[#allocation3 + $0xf4] sm:$0xf0]  ;;  %v3692_v10 = vor.u32 %v4170_v5, %v3689_v7  ;;  %v4171_v12 = vld [vmem:[#allocation3 + $0xec] sm:$0xf]  ;;  %v3697_v13 = vld [vmem:[#allocation3 + $0xf8] sm:$0xf0] }
  0x16   :  { %3569 = vmatmul.msk.bf16.vlgmr.msra.gmra.mxu0 %vm146_vm0, %v4137_v1  ;;  %v3696_v11 = vor.u32 %v4173_v9, %v3695_v8  ;;  %v3671_v14 = vld [vmem:[#allocation3 + $0xc0] sm:$0xf]  ;;  %v3700_v15 = vor.u32 %v4171_v12, %v3697_v13  ;;  %v4168_v16 = vld [vmem:[#allocation3 + $0xcc] sm:$0xf0]  ;;  %v4166_v17 = vld [vmem:[#allocation3 + $0xc4] sm:$0xf] }
  0x17   :  { %402 = vmatpush.bf16.msra.mxu1 %v3688_v6  ;;  %v3673_v18 = vld [vmem:[#allocation3 + $0xd0] sm:$0xf0]  ;;  %431 = vmatpush.bf16.msra.mxu2 %v3692_v10  ;;  %v3672_v19 = vor.u32 %v4168_v16, %v3671_v14  ;;  %v3679_v21 = vld [vmem:[#allocation3 + $0xc8] sm:$0xf]  ;;  %v4169_v22 = vld [vmem:[#allocation3 + $0xd4] sm:$0xf0] }
  0x18   :  { %460 = vmatpush.bf16.msra.mxu3 %v3696_v11  ;;  %v3676_v20 = vor.u32 %v4166_v17, %v3673_v18  ;;  %v4167_v23 = vld [vmem:[#allocation3 + $0xcc] sm:$0xf]  ;;  %489 = vmatpush.bf16.msrb.mxu0 %v3700_v15  ;;  %v3680_v24 = vor.u32 %v4169_v22, %v3679_v21  ;;  %v3681_v25 = vld [vmem:[#allocation3 + $0xd8] sm:$0xf0]  ;;  %v3655_v26 = vld [vmem:[#allocation3 + $0xa0] sm:$0xf] }
  0x19   :  { %v4164_v27 = vld [vmem:[#allocation3 + $0xac] sm:$0xf0]  ;;  %v3684_v28 = vor.u32 %v4167_v23, %v3681_v25  ;;  %v4162_v29 = vld [vmem:[#allocation3 + $0xa4] sm:$0xf]  ;;  %v3657_v30 = vld [vmem:[#allocation3 + $0xb0] sm:$0xf0] }
  0x1a   :  { %v3663_v31 = vld [vmem:[#allocation3 + $0xa8] sm:$0xf]  ;;  %v3656_v32 = vor.u32 %v4164_v27, %v3655_v26  ;;  %v4165_v33 = vld [vmem:[#allocation3 + $0xb4] sm:$0xf0]  ;;  %v4163_v34 = vld [vmem:[#allocation3 + $0xac] sm:$0xf]  ;;  %v3660_v36 = vor.u32 %v4162_v29, %v3657_v30 }
  0x1b   :  { %403 = vmatpush.bf16.msra.mxu1 %v3672_v19  ;;  %v3665_v35 = vld [vmem:[#allocation3 + $0xb8] sm:$0xf0]  ;;  %432 = vmatpush.bf16.msra.mxu2 %v3676_v20  ;;  %v3664_v37 = vor.u32 %v4165_v33, %v3663_v31  ;;  %v3639_v38 = vld [vmem:[#allocation3 + $0x80] sm:$0xf]  ;;  %v4160_v39 = vld [vmem:[#allocation3 + $0x8c] sm:$0xf0] }
  0x1c   :  { %461 = vmatpush.bf16.msra.mxu3 %v3680_v24  ;;  %490 = vmatpush.bf16.msrb.mxu0 %v3684_v28  ;;  %v3668_v40 = vor.u32 %v4163_v34, %v3665_v35  ;;  %v4158_v41 = vld [vmem:[#allocation3 + $0x84] sm:$0xf]  ;;  %v3641_v42 = vld [vmem:[#allocation3 + $0x90] sm:$0xf0]  ;;  %v3647_v43 = vld [vmem:[#allocation3 + $0x88] sm:$0xf]  ;;  %v3640_v47 = vor.u32 %v4160_v39, %v3639_v38 }
  0x1d   :  { %v4161_v44 = vld [vmem:[#allocation3 + $0x94] sm:$0xf0]  ;;  %v4159_v45 = vld [vmem:[#allocation3 + $0x8c] sm:$0xf]  ;;  %v3649_v46 = vld [vmem:[#allocation3 + $0x98] sm:$0xf0]  ;;  %v3644_v49 = vor.u32 %v4158_v41, %v3641_v42 }
  0x1e   :  { %v4139_v48 = vld [vmem:[%s6228_s0 + $0x10] sm:$0xff]  ;;  %v3648_v50 = vor.u32 %v4161_v44, %v3647_v43  ;;  %v3652_v51 = vor.u32 %v4159_v45, %v3649_v46  ;;  %v4140_v52 = vld [vmem:[%s6228_s0 + $0x18] sm:$0xff]  ;;  %v3623_v53 = vld [vmem:[#allocation3 + $0x60] sm:$0xf] }
  0x1f   :  { %404 = vmatpush.bf16.msra.mxu1 %v3656_v32  ;;  %433 = vmatpush.bf16.msra.mxu2 %v3660_v36  ;;  %v4156_v54 = vld [vmem:[#allocation3 + $0x6c] sm:$0xf0]  ;;  %v4154_v55 = vld [vmem:[#allocation3 + $0x64] sm:$0xf]  ;;  %v3625_v57 = vld [vmem:[#allocation3 + $0x70] sm:$0xf0] }
  0x20   :  { %462 = vmatpush.bf16.msra.mxu3 %v3664_v37  ;;  %491 = vmatpush.bf16.msrb.mxu0 %v3668_v40  ;;  %v3624_v56 = vor.u32 %v4156_v54, %v3623_v53  ;;  %v3631_v58 = vld [vmem:[#allocation3 + $0x68] sm:$0xf]  ;;  %v4157_v59 = vld [vmem:[#allocation3 + $0x74] sm:$0xf0]  ;;  %v3628_v60 = vor.u32 %v4154_v55, %v3625_v57  ;;  %v4155_v62 = vld [vmem:[#allocation3 + $0x6c] sm:$0xf] }
  0x21   :  { %v3632_v61 = vor.u32 %v4157_v59, %v3631_v58  ;;  %v3633_v63 = vld [vmem:[#allocation3 + $0x78] sm:$0xf0]  ;;  %v3607_v1 = vld [vmem:[#allocation3 + $0x40] sm:$0xf]  ;;  %v4150_v3 = vld [vmem:[#allocation3 + $0x44] sm:$0xf] }
  0x22   :  { %v3636_v0 = vor.u32 %v4155_v62, %v3633_v63  ;;  %v3609_v5 = vld [vmem:[#allocation3 + $0x50] sm:$0xf0]  ;;  %v3615_v6 = vld [vmem:[#allocation3 + $0x48] sm:$0xf]  ;;  %v4153_v7 = vld [vmem:[#allocation3 + $0x54] sm:$0xf0] }
  0x23   :  { %405 = vmatpush.bf16.msra.mxu1 %v3640_v47  ;;  %434 = vmatpush.bf16.msra.mxu2 %v3644_v49  ;;  %v3612_v8 = vor.u32 %v4150_v3, %v3609_v5  ;;  %v3616_v9 = vor.u32 %v4153_v7, %v3615_v6  ;;  %v4151_v10 = vld [vmem:[#allocation3 + $0x4c] sm:$0xf]  ;;  %v3617_v11 = vld [vmem:[#allocation3 + $0x58] sm:$0xf0]  ;;  %v3591_v13 = vld [vmem:[#allocation3 + $0x20] sm:$0xf] }
  0x24   :  { %463 = vmatpush.bf16.msra.mxu3 %v3648_v50  ;;  %492 = vmatpush.bf16.msrb.mxu0 %v3652_v51  ;;  %v3620_v12 = vor.u32 %v4151_v10, %v3617_v11  ;;  %v4148_v14 = vld [vmem:[#allocation3 + $0x2c] sm:$0xf0]  ;;  %v4146_v15 = vld [vmem:[#allocation3 + $0x24] sm:$0xf]  ;;  %v3593_v17 = vld [vmem:[#allocation3 + $0x30] sm:$0xf0] }
  0x25   :  { %v3592_v16 = vor.u32 %v4148_v14, %v3591_v13  ;;  %v3599_v18 = vld [vmem:[#allocation3 + $0x28] sm:$0xf]  ;;  %v4149_v19 = vld [vmem:[#allocation3 + $0x34] sm:$0xf0]  ;;  %v3596_v20 = vor.u32 %v4146_v15, %v3593_v17  ;;  %v4147_v22 = vld [vmem:[#allocation3 + $0x2c] sm:$0xf] }
  0x26   :  { %3570 = vmatmul.msk.bf16.gmra.mxu0 %vm146_vm0, %v4138_v2  ;;  %v4152_v2 = vld [vmem:[#allocation3 + $0x4c] sm:$0xf0]  ;;  %v3600_v21 = vor.u32 %v4149_v19, %v3599_v18  ;;  %v3601_v23 = vld [vmem:[#allocation3 + $0x38] sm:$0xf0]  ;;  %v3575_v25 = vld [vmem:[#allocation3] sm:$0xf] }
  0x27   :  { %406 = vmatpush.bf16.msra.mxu1 %v3624_v56  ;;  %435 = vmatpush.bf16.msra.mxu2 %v3628_v60  ;;  %v3608_v4 = vor.u32 %v4152_v2, %v3607_v1  ;;  %v3604_v24 = vor.u32 %v4147_v22, %v3601_v23  ;;  %v4144_v26 = vld [vmem:[#allocation3 + $0xc] sm:$0xf0]  ;;  %v4142_v27 = vld [vmem:[#allocation3 + $0x4] sm:$0xf]  ;;  %v3577_v29 = vld [vmem:[#allocation3 + $0x10] sm:$0xf0] }
  0x28   :  { %464 = vmatpush.bf16.msra.mxu3 %v3632_v61  ;;  %493 = vmatpush.bf16.msrb.mxu0 %v3636_v0  ;;  %v3576_v28 = vor.u32 %v4144_v26, %v3575_v25  ;;  %v3583_v30 = vld [vmem:[#allocation3 + $0x8] sm:$0xf]  ;;  %v4145_v31 = vld [vmem:[#allocation3 + $0x14] sm:$0xf0]  ;;  %v3580_v32 = vor.u32 %v4142_v27, %v3577_v29  ;;  %v4143_v34 = vld [vmem:[#allocation3 + $0xc] sm:$0xf] }
  0x29   :  { %v3584_v33 = vor.u32 %v4145_v31, %v3583_v30  ;;  %v3585_v35 = vld [vmem:[#allocation3 + $0x18] sm:$0xf0]  ;;  %v4202_v37 = vld [vmem:[#allocation5 + $0xe4] sm:$0xf]  ;;  %v3819_v38 = vld [vmem:[#allocation5 + $0xf0] sm:$0xf0] }
  0x2a   :  { %v3588_v36 = vor.u32 %v4143_v34, %v3585_v35  ;;  %v4729_v39 = vor.u32 %v4202_v37, %v3819_v38  ;;  %v3817_v40 = vld [vmem:[#allocation5 + $0xe0] sm:$0xf]  ;;  %v4204_v41 = vld [vmem:[#allocation5 + $0xec] sm:$0xf0]  ;;  %v4198_v42 = vld [vmem:[#allocation5 + $0xc4] sm:$0xf] }
  0x2b   :  { %407 = vmatpush.bf16.msra.mxu1 %v3608_v4  ;;  %436 = vmatpush.bf16.msra.mxu2 %v3612_v8  ;;  %v4732_v43 = vor.u32 %v4204_v41, %v3817_v40  ;;  %v3803_v44 = vld [vmem:[#allocation5 + $0xd0] sm:$0xf0]  ;;  %v3801_v46 = vld [vmem:[#allocation5 + $0xc0] sm:$0xf]  ;;  %v4200_v47 = vld [vmem:[#allocation5 + $0xcc] sm:$0xf0] }
  0x2c   :  { %465 = vmatpush.bf16.msra.mxu3 %v3616_v9  ;;  %494 = vmatpush.bf16.msrb.mxu0 %v3620_v12  ;;  %v4734_v45 = vor.u32 %v4198_v42, %v3803_v44  ;;  %v4194_v50 = vld [vmem:[#allocation5 + $0xa4] sm:$0xf]  ;;  %v3787_v51 = vld [vmem:[#allocation5 + $0xb0] sm:$0xf0]  ;;  %v4746_v53 = vld [vmem:[%s6230_s2] ss:$0 sm:$0xff] }
  0x2d   :  { %v3785_v54 = vld [vmem:[#allocation5 + $0xa0] sm:$0xf]  ;;  %v4196_v55 = vld [vmem:[#allocation5 + $0xac] sm:$0xf0]  ;;  %v3825_v57 = vld [vmem:[#allocation5 + $0xe8] sm:$0xf] }
  0x2e   :  { %v4749_v56 = vor.u32 %v4196_v55, %v3785_v54  ;;  %v4205_v58 = vld [vmem:[#allocation5 + $0xf4] sm:$0xf0]  ;;  %v4190_v59 = vld [vmem:[#allocation5 + $0x84] sm:$0xf]  ;;  %v3771_v61 = vld [vmem:[#allocation5 + $0x90] sm:$0xf0] }
  0x2f   :  { %408 = vmatpush.bf16.msra.mxu1 %v3592_v16  ;;  %437 = vmatpush.bf16.msra.mxu2 %v3596_v20  ;;  %v4751_v60 = vor.u32 %v4205_v58, %v3825_v57  ;;  %v4754_v62 = vor.u32 %v4190_v59, %v3771_v61  ;;  %v3769_v5 = vld [vmem:[#allocation5 + $0x80] sm:$0xf]  ;;  %v4192_v6 = vld [vmem:[#allocation5 + $0x8c] sm:$0xf0]  ;;  %v3809_v7 = vld [vmem:[#allocation5 + $0xc8] sm:$0xf] }
  0x30   :  { %466 = vmatpush.bf16.msra.mxu3 %v3600_v21  ;;  %495 = vmatpush.bf16.msrb.mxu0 %v3604_v24  ;;  %v4760_v8 = vor.u32 %v4192_v6, %v3769_v5  ;;  %v4201_v9 = vld [vmem:[#allocation5 + $0xd4] sm:$0xf0]  ;;  %v4186_v12 = vld [vmem:[#allocation5 + $0x64] sm:$0xf]  ;;  %v3755_v13 = vld [vmem:[#allocation5 + $0x70] sm:$0xf0] }
  0x31   :  { %v4762_v10 = vor.u32 %v4201_v9, %v3809_v7  ;;  %v4766_v14 = vor.u32 %v4186_v12, %v3755_v13  ;;  %v3753_v15 = vld [vmem:[#allocation5 + $0x60] sm:$0xf]  ;;  %v4188_v16 = vld [vmem:[#allocation5 + $0x6c] sm:$0xf0]  ;;  %v3793_v18 = vld [vmem:[#allocation5 + $0xa8] sm:$0xf] }
  0x32   :  { %v4768_v17 = vor.u32 %v4188_v16, %v3753_v15  ;;  %v4197_v19 = vld [vmem:[#allocation5 + $0xb4] sm:$0xf0]  ;;  %v3737_v21 = vld [vmem:[#allocation5 + $0x40] sm:$0xf]  ;;  %v4184_v22 = vld [vmem:[#allocation5 + $0x4c] sm:$0xf0] }
  0x33   :  { %409 = vmatpush.bf16.msra.mxu1 %v3576_v28  ;;  %438 = vmatpush.bf16.msra.mxu2 %v3580_v32  ;;  %v4771_v20 = vor.u32 %v4197_v19, %v3793_v18  ;;  %v4182_v23 = vld [vmem:[#allocation5 + $0x44] sm:$0xf]  ;;  %v4774_v24 = vor.u32 %v4184_v22, %v3737_v21  ;;  %v3739_v25 = vld [vmem:[#allocation5 + $0x50] sm:$0xf0]  ;;  %v3721_v30 = vld [vmem:[#allocation5 + $0x20] sm:$0xf] }
  0x34   :  { %467 = vmatpush.bf16.msra.mxu3 %v3584_v33  ;;  %496 = vmatpush.bf16.msrb.mxu0 %v3588_v36  ;;  %v4777_v26 = vor.u32 %v4182_v23, %v3739_v25  ;;  %v4180_v31 = vld [vmem:[#allocation5 + $0x2c] sm:$0xf0]  ;;  %v3777_v33 = vld [vmem:[#allocation5 + $0x88] sm:$0xf]  ;;  %v4193_v34 = vld [vmem:[#allocation5 + $0x94] sm:$0xf0] }
  0x35   :  { %v4783_v32 = vor.u32 %v4180_v31, %v3721_v30  ;;  %v4785_v37 = vor.u32 %v4193_v34, %v3777_v33  ;;  %v3705_v40 = vld [vmem:[#allocation5] sm:$0xf]  ;;  %v4176_v41 = vld [vmem:[#allocation5 + $0xc] sm:$0xf0]  ;;  %v3761_v44 = vld [vmem:[#allocation5 + $0x68] sm:$0xf] }
  0x36   :  { %3571 = vmatmul.msk.bf16.gmra.mxu0 %vm146_vm0, %v4139_v48  ;;  %v4738_v48 = vor.u32 %v4200_v47, %v3801_v46  ;;  %v4789_v42 = vor.u32 %v4176_v41, %v3705_v40  ;;  %v4189_v46 = vld [vmem:[#allocation5 + $0x74] sm:$0xf0]  ;;  %v4203_v47 = vld [vmem:[#allocation5 + $0xec] sm:$0xf]  ;;  %v4178_v54 = vld [vmem:[#allocation5 + $0x24] sm:$0xf] }
  0x37   :  { %769 = vmatpush.bf16.msrb.mxu2 %v4729_v39  ;;  %756 = vmatpush.bf16.msrb.mxu1 %v4732_v43  ;;  %v3723_v55 = vld [vmem:[#allocation5 + $0x30] sm:$0xf0]  ;;  %v3745_v58 = vld [vmem:[#allocation5 + $0x48] sm:$0xf]  ;;  %v4185_v61 = vld [vmem:[#allocation5 + $0x54] sm:$0xf0] }
  0x38   :  { %782 = vmatpush.bf16.msrb.mxu3 %v4751_v60  ;;  %v4796_v59 = vor.u32 %v4178_v54, %v3723_v55  ;;  %v3729_v5 = vld [vmem:[#allocation5 + $0x28] sm:$0xf]  ;;  %v4181_v7 = vld [vmem:[#allocation5 + $0x34] sm:$0xf0]  ;;  %v4195_v9 = vld [vmem:[#allocation5 + $0xac] sm:$0xf] }
  0x39   :  { %v4808_v12 = vor.u32 %v4181_v7, %v3729_v5  ;;  %v3713_v15 = vld [vmem:[#allocation5 + $0x8] sm:$0xf]  ;;  %v4177_v16 = vld [vmem:[#allocation5 + $0x14] sm:$0xf0]  ;;  %v4191_v19 = vld [vmem:[#allocation5 + $0x8c] sm:$0xf] }
  0x3a   :  { %v3779_v21 = vld [vmem:[#allocation5 + $0x98] sm:$0xf0]  ;;  %v4817_v25 = vor.u32 %v4177_v16, %v3713_v15  ;;  %v4187_v31 = vld [vmem:[#allocation5 + $0x6c] sm:$0xf]  ;;  %v3948_v16 = vld [vmem:[#allocation8 + $0xe0] sm:$0xf] }
  0x3b   :  { %770 = vmatpush.bf16.msrb.mxu2 %v4734_v45  ;;  %757 = vmatpush.bf16.msrb.mxu1 %v4738_v48  ;;  %v3763_v33 = vld [vmem:[#allocation5 + $0x78] sm:$0xf0]  ;;  %v4179_v41 = vld [vmem:[#allocation5 + $0x2c] sm:$0xf] }
  0x3c   :  { %783 = vmatpush.bf16.msrb.mxu3 %v4762_v10  ;;  %v4824_v34 = vor.u32 %v4187_v31, %v3763_v33  ;;  %v4267_v33 = vld [vmem:[#allocation8 + $0xec] sm:$0xf] }
  0x3f   :  { %758 = vmatpush.bf16.msrb.mxu1 %v4749_v56 }
  0x40   :  { %784 = vmatpush.bf16.msrb.mxu3 %v4771_v20 }
  0x43   :  { %759 = vmatpush.bf16.msrb.mxu1 %v4760_v8 }
  0x44   :  { %785 = vmatpush.bf16.msrb.mxu3 %v4785_v37 }
  0x46   :  { %3572 = vmatmul.msk.bf16.gmra.mxu0 %vm146_vm0, %v4140_v52  ;;  %v4741_v52 = vor.u32 %v4194_v50, %v3787_v51  ;;  %v3827_v50 = vld [vmem:[#allocation5 + $0xf8] sm:$0xf0] }
  0x47   :  { %760 = vmatpush.bf16.msrb.mxu1 %v4768_v17  ;;  %v4793_v57 = vor.u32 %v4203_v47, %v3827_v50  ;;  %v4175_v50 = vld [vmem:[#allocation5 + $0xc] sm:$0xf] }
  0x48   :  { %771 = vmatpush.bf16.msrb.mxu2 %v4741_v52 }
  0x4b   :  { %761 = vmatpush.bf16.msrb.mxu1 %v4774_v24 }
  0x4c   :  { %772 = vmatpush.bf16.msrb.mxu2 %v4754_v62 }
  0x4f   :  { %762 = vmatpush.bf16.msrb.mxu1 %v4783_v32 }
  0x50   :  { %773 = vmatpush.bf16.msrb.mxu2 %v4766_v14 }
  0x53   :  { %763 = vmatpush.bf16.msrb.mxu1 %v4789_v42 }
  0x54   :  { %774 = vmatpush.bf16.msrb.mxu2 %v4777_v26 }
  0x58   :  { %775 = vmatpush.bf16.msrb.mxu2 %v4796_v59 }
  0x93   :  { %v168_v49 = vpop.f32.mrf.mxu0 }
  0x94   :  { %v169_v63 = vadd.f32 %v4746_v53, %v168_v49  ;;  %v4791_v49 = vor.u32 %v4189_v46, %v3761_v44  ;;  %v3731_v44 = vld [vmem:[#allocation5 + $0x38] sm:$0xf0] }
  0x95   :  { %v4830_v46 = vor.u32 %v4179_v41, %v3731_v44 }
  0x96   :  { %v188_v2 = vmax.f32 %v169_v63, 0.0  ;;  %786 = vmatpush.bf16.msrb.mxu3 %v4791_v49  ;;  %v4199_v63 = vld [vmem:[#allocation5 + $0xcc] sm:$0xf] }
  0x9b   :  { %v170_v0 = vpop.f32.mrf.mxu0 }
  0x9c   :  { %v171_v1 = vadd.f32 %v4746_v53, %v170_v0  ;;  %v3811_v0 = vld [vmem:[#allocation5 + $0xd8] sm:$0xf0] }
  0x9e   :  { %v189_v3 = vmax.f32 %v171_v1, 0.0  ;;  %v4800_v1 = vor.u32 %v4185_v61, %v3745_v58 }
  0xa0   :  { %v196_v4 = vpack.c.bf16 %v189_v3, %v188_v2  ;;  %v4802_v2 = vor.u32 %v4199_v63, %v3811_v0  ;;  %v4174_v3 = vld [vmem:[#allocation5 + $0x4] sm:$0xf]  ;;  %787 = vmatpush.bf16.msrb.mxu3 %v4800_v1 }
  0xa2   :  { %410 = vmatmul.bf16.vlgmr.msra.gmra.mxu1 %v196_v4  ;;  %439 = vmatmul.bf16.vlgmr.msra.gmra.mxu2 %v196_v4 }
  0xa3   :  { %468 = vmatmul.bf16.vlgmr.msra.gmra.mxu3 %v196_v4  ;;  %497 = vmatmul.bf16.vlgmr.msrb.gmra.mxu0 %v196_v4  ;;  %v173_v11 = vpop.f32.mrf.mxu0  ;;  %v3707_v4 = vld [vmem:[#allocation5 + $0x10] sm:$0xf0] }
  0xa4   :  { %v174_v27 = vadd.f32 %v4746_v53, %v173_v11  ;;  %795 = vmatpush.bf16.msra.mxu1 %v4793_v57  ;;  %v4805_v6 = vor.u32 %v4174_v3, %v3707_v4  ;;  %v3795_v11 = vld [vmem:[#allocation5 + $0xb8] sm:$0xf0]  ;;  %788 = vmatpush.bf16.msrb.mxu3 %v4808_v12  ;;  %v6239_v3 = vmov 0.0|0.0  }
  0xa5   :  { %v4811_v13 = vor.u32 %v4195_v9, %v3795_v11  ;;  %v232_v9 = vld [vmem:[%s6233_s5] sm:$0xf] }
  0xa6   :  { %v190_v35 = vmax.f32 %v174_v27, 0.0  ;;  %776 = vmatpush.bf16.msrb.mxu2 %v4805_v6  ;;  %v4820_v27 = vor.u32 %v4191_v19, %v3779_v21  ;;  %v4266_v19 = vld [vmem:[#allocation8 + $0xe4] sm:$0xf]  ;;  %v4865_v41 = vperm.slane %v232_v9, 2 }
  0xa8   :  { %796 = vmatpush.bf16.msra.mxu1 %v4802_v2  ;;  %789 = vmatpush.bf16.msrb.mxu3 %v4817_v25 }
  0xab   :  { %v175_v28 = vpop.f32.mrf.mxu0 }
  0xac   :  { %v176_v29 = vadd.f32 %v4746_v53, %v175_v28  ;;  %797 = vmatpush.bf16.msra.mxu1 %v4811_v13 }
  0xae   :  { %v191_v36 = vmax.f32 %v176_v29, 0.0 }
  0xb0   :  { %v197_v38 = vpack.c.bf16 %v191_v36, %v190_v35  ;;  %798 = vmatpush.bf16.msra.mxu1 %v4820_v27  ;;  %v4183_v36 = vld [vmem:[#allocation5 + $0x4c] sm:$0xf] }
  0xb2   :  { %415 = vmatmul.bf16.gmra.mxu1 %v197_v38  ;;  %444 = vmatmul.bf16.gmra.mxu2 %v197_v38 }
  0xb3   :  { %473 = vmatmul.bf16.gmra.mxu3 %v197_v38  ;;  %502 = vmatmul.bf16.gmra.mxu0 %v197_v38  ;;  %v178_v51 = vpop.f32.mrf.mxu0  ;;  %v3747_v38 = vld [vmem:[#allocation5 + $0x58] sm:$0xf0] }
  0xb4   :  { %v179_v18 = vadd.f32 %v4746_v53, %v178_v51  ;;  %799 = vmatpush.bf16.msra.mxu1 %v4824_v34  ;;  %v4827_v40 = vor.u32 %v4183_v36, %v3747_v38  ;;  %v3715_v51 = vld [vmem:[#allocation5 + $0x18] sm:$0xf0]  ;;  %v4861_v36 = vperm.slane %v232_v9, 3  ;;  %v4863_v38 = vperm.slane %v232_v9, 1 }
  0xb5   :  { %v4835_v58 = vor.u32 %v4175_v50, %v3715_v51  ;;  %v4264_v50 = vld [vmem:[#allocation8 + $0xcc] sm:$0xf0]  ;;  %v4262_v51 = vld [vmem:[#allocation8 + $0xc4] sm:$0xf] }
  0xb6   :  { %v192_v28 = vmax.f32 %v179_v18, 0.0  ;;  %v4268_v18 = vld [vmem:[#allocation8 + $0xec] sm:$0xf0] }
  0xb7   :  { %v4853_v21 = vor.u32 %v4268_v18, %v3948_v16 }
  0xb8   :  { %800 = vmatpush.bf16.msra.mxu1 %v4827_v40 }
  0xb9   :  { %6392 = vst [vmem:[#allocation13_spill] sm:$0xff] %v4853_v21  ;;  %1101 = vmatpush.bf16.msra.mxu2 %v4853_v21 }
  0xbb   :  { %v180_v22 = vpop.f32.mrf.mxu0 }
  0xbc   :  { %v181_v23 = vadd.f32 %v4746_v53, %v180_v22  ;;  %801 = vmatpush.bf16.msra.mxu1 %v4830_v46  ;;  %v3950_v22 = vld [vmem:[#allocation8 + $0xf0] sm:$0xf0] }
  0xbe   :  { %v193_v29 = vmax.f32 %v181_v23, 0.0  ;;  %v3956_v23 = vld [vmem:[#allocation8 + $0xe8] sm:$0xf] }
  0xc0   :  { %v198_v30 = vpack.c.bf16 %v193_v29, %v192_v28  ;;  %802 = vmatpush.bf16.msra.mxu1 %v4835_v58  ;;  %v4269_v28 = vld [vmem:[#allocation8 + $0xf4] sm:$0xf0]  ;;  %v4855_v29 = vperm.slane %v232_v9, 0 }
  0xc1   :  { %v4859_v31 = vor.u32 %v4269_v28, %v3956_v23  ;;  %v4263_v23 = vld [vmem:[#allocation8 + $0xcc] sm:$0xf]  ;;  %v3942_v28 = vld [vmem:[#allocation8 + $0xd8] sm:$0xf0] }
  0xc2   :  { %420 = vmatmul.bf16.gmra.mxu1 %v198_v30  ;;  %449 = vmatmul.bf16.gmra.mxu2 %v198_v30 }
  0xc3   :  { %478 = vmatmul.bf16.gmra.mxu3 %v198_v30  ;;  %507 = vmatmul.bf16.gmra.mxu0 %v198_v30  ;;  %v183_v35 = vpop.f32.mrf.mxu0  ;;  %v4857_v30 = vor.u32 %v4266_v19, %v3950_v22  ;;  %6394 = vst [vmem:[#allocation15_spill] sm:$0xff] %v4859_v31 }
  0xc4   :  { %v184_v47 = vadd.f32 %v4746_v53, %v183_v35  ;;  %v3958_v35 = vld [vmem:[#allocation8 + $0xf8] sm:$0xf0]  ;;  %1127 = vmatpush.bf16.msra.mxu0 %v4859_v31 }
  0xc5   :  { %6393 = vst [vmem:[#allocation14_spill] sm:$0xff] %v4857_v30  ;;  %v4868_v44 = vor.u32 %v4267_v33, %v3958_v35  ;;  %1114 = vmatpush.bf16.msra.mxu3 %v4857_v30  ;;  %v4214_v30 = vld [vmem:[#allocation7 + $0x44] sm:$0xf] }
  0xc6   :  { %v194_v61 = vmax.f32 %v184_v47, 0.0  ;;  %v3932_v47 = vld [vmem:[#allocation8 + $0xc0] sm:$0xf] }
  0xc7   :  { %6395 = vst [vmem:[#allocation16_spill] sm:$0xff] %v4868_v44 }
  0xcb   :  { %v185_v54 = vpop.f32.mrf.mxu0 }
  0xcc   :  { %v186_v55 = vadd.f32 %v4746_v53, %v185_v54 }
  0xce   :  { %v195_v63 = vmax.f32 %v186_v55, 0.0  ;;  %v4873_v55 = vor.u32 %v4264_v50, %v3932_v47  ;;  %v4884_v50 = vor.u32 %v4263_v23, %v3942_v28  ;;  %v4261_v23 = vld [vmem:[#allocation8 + $0xb4] sm:$0xf0] }
  0xd0   :  { %v199_v0 = vpack.c.bf16 %v195_v63, %v194_v61  ;;  %6396 = vst [vmem:[#allocation17_spill] sm:$0xff] %v4873_v55  ;;  %v3934_v61 = vld [vmem:[#allocation8 + $0xd0] sm:$0xf0]  ;;  %v3940_v63 = vld [vmem:[#allocation8 + $0xc8] sm:$0xf]  ;;  %1102 = vmatpush.bf16.msra.mxu2 %v4873_v55 }
  0xd1   :  { %v4877_v19 = vor.u32 %v4262_v51, %v3934_v61  ;;  %6399 = vst [vmem:[#allocation20_spill] sm:$0xff] %v4884_v50  ;;  %v3916_v51 = vld [vmem:[#allocation8 + $0xa0] sm:$0xf]  ;;  %v4260_v61 = vld [vmem:[#allocation8 + $0xac] sm:$0xf0] }
  0xd2   :  { %425 = vmatmul.bf16.gmra.mxu1 %v199_v0  ;;  %454 = vmatmul.bf16.gmra.mxu2 %v199_v0 }
  0xd3   :  { %483 = vmatmul.bf16.gmra.mxu3 %v199_v0  ;;  %512 = vmatmul.bf16.gmra.mxu0 %v199_v0  ;;  %v4265_v0 = vld [vmem:[#allocation8 + $0xd4] sm:$0xf0]  ;;  %6397 = vst [vmem:[#allocation18_spill] sm:$0xff] %v4877_v19 }
  0xd4   :  { %v4879_v22 = vor.u32 %v4265_v0, %v3940_v63  ;;  %1115 = vmatpush.bf16.msra.mxu3 %v4877_v19  ;;  %v4258_v63 = vld [vmem:[#allocation8 + $0xa4] sm:$0xf] }
  0xd6   :  { %6398 = vst [vmem:[#allocation19_spill] sm:$0xff] %v4879_v22  ;;  %1128 = vmatpush.bf16.msra.mxu0 %v4879_v22  ;;  %v3926_v22 = vld [vmem:[#allocation8 + $0xb8] sm:$0xf0] }
  0xe2   :  { %764 = vmatmul.bf16.vlgmr.msrb.gmra.mxu1 %v6239_v3  ;;  %777 = vmatmul.bf16.vlgmr.msrb.gmra.mxu2 %v6239_v3 }
  0xe3   :  { %790 = vmatmul.bf16.vlgmr.msrb.gmra.mxu3 %v6239_v3  ;;  %1140 = vmatpush.bf16.msrb.mxu1 %v4868_v44  ;;  %v4078_v44 = vld [vmem:[#allocation7 + $0xf0] sm:$0xf0] }
  0xe7   :  { %1141 = vmatpush.bf16.msrb.mxu1 %v4884_v50 }
  0xf2   :  { %803 = vmatmul.bf16.vlgmr.msra.gmra.mxu1 %v6239_v3 }
 0x11f   :  { %v4842_v53 = vpop.f32.mrf.mxu1 }
 0x120   :  { %v4844_v4 = vpop.f32.mrf.mxu0 }
 0x125   :  { %v4846_v5 = vpop.f32.mrf.mxu2 }
 0x126   :  { %v4848_v7 = vpop.f32.mrf.mxu3 }
 0x127   :  { %v413_v11 = vpop.f32.mrf.mxu1 }
 0x128   :  { %v500_v15 = vpop.f32.mrf.mxu0  ;;  %v414_v9 = vadd.f32 %v413_v11, %v4855_v29 }
 0x129   :  { %v501_v33 = vadd.f32 %v500_v15, %v4861_v36 }
 0x12d   :  { %v442_v54 = vpop.f32.mrf.mxu2 }
 0x12e   :  { %v443_v16 = vadd.f32 %v442_v54, %v4863_v38  ;;  %v471_v18 = vpop.f32.mrf.mxu3 }
 0x12f   :  { %v472_v35 = vadd.f32 %v471_v18, %v4865_v41  ;;  %v416_v47 = vpop.f32.mrf.mxu1  ;;  %v4895_v18 = vor.u32 %v4260_v61, %v3916_v51 }
 0x130   :  { %v4886_v3 = vpack.c.bf16 %v443_v16, %v414_v9  ;;  %v417_v11 = vadd.f32 %v416_v47, %v4855_v29  ;;  %v503_v54 = vpop.f32.mrf.mxu0  ;;  %v3918_v9 = vld [vmem:[#allocation8 + $0xb0] sm:$0xf0]  ;;  %v3924_v16 = vld [vmem:[#allocation8 + $0xa8] sm:$0xf] }
 0x131   :  { %v4891_v15 = vpack.c.bf16 %v501_v33, %v472_v35  ;;  %v504_v0 = vadd.f32 %v503_v54, %v4861_v36  ;;  %6402 = vst [vmem:[#allocation23_spill] sm:$0xff] %v4895_v18  ;;  %v4897_v28 = vor.u32 %v4258_v63, %v3918_v9  ;;  %v4899_v47 = vor.u32 %v4261_v23, %v3924_v16  ;;  %v3900_v33 = vld [vmem:[#allocation8 + $0x80] sm:$0xf]  ;;  %v4256_v35 = vld [vmem:[#allocation8 + $0x8c] sm:$0xf0] }
 0x132   :  { %6400 = vst [vmem:[#allocation21_spill] sm:$0xff] %v4886_v3  ;;  %v4259_v3 = vld [vmem:[#allocation8 + $0xac] sm:$0xf]  ;;  %1103 = vmatpush.bf16.msra.mxu2 %v4895_v18  ;;  %v4254_v54 = vld [vmem:[#allocation8 + $0x84] sm:$0xf]  ;;  %v4907_v61 = vor.u32 %v4256_v35, %v3900_v33 }
 0x133   :  { %6401 = vst [vmem:[#allocation22_spill] sm:$0xff] %v4891_v15  ;;  %v4902_v19 = vor.u32 %v4259_v3, %v3926_v22  ;;  %1116 = vmatpush.bf16.msra.mxu3 %v4897_v28  ;;  %1129 = vmatpush.bf16.msra.mxu0 %v4899_v47  ;;  %v3902_v63 = vld [vmem:[#allocation8 + $0x90] sm:$0xf0]  ;;  %v3908_v9 = vld [vmem:[#allocation8 + $0x88] sm:$0xf] }
 0x134   :  { %6403 = vst [vmem:[#allocation24_spill] sm:$0xff] %v4897_v28  ;;  %v4257_v16 = vld [vmem:[#allocation8 + $0x94] sm:$0xf0]  ;;  %v4910_v3 = vor.u32 %v4254_v54, %v3902_v63  ;;  %v4255_v28 = vld [vmem:[#allocation8 + $0x8c] sm:$0xf] }
 0x135   :  { %6404 = vst [vmem:[#allocation25_spill] sm:$0xff] %v4899_v47  ;;  %v445_v51 = vpop.f32.mrf.mxu2  ;;  %1142 = vmatpush.bf16.msrb.mxu1 %v4902_v19  ;;  %v4912_v22 = vor.u32 %v4257_v16, %v3908_v9  ;;  %v3910_v47 = vld [vmem:[#allocation8 + $0x98] sm:$0xf0]  ;;  %v3884_v54 = vld [vmem:[#allocation8 + $0x60] sm:$0xf] }
 0x136   :  { %6405 = vst [vmem:[#allocation26_spill] sm:$0xff] %v4902_v19  ;;  %v446_v23 = vadd.f32 %v445_v51, %v4863_v38  ;;  %v474_v15 = vpop.f32.mrf.mxu3  ;;  %1104 = vmatpush.bf16.msra.mxu2 %v4907_v61  ;;  %v4916_v19 = vor.u32 %v4255_v28, %v3910_v47  ;;  %v4252_v51 = vld [vmem:[#allocation8 + $0x6c] sm:$0xf0]  ;;  %v4250_v63 = vld [vmem:[#allocation8 + $0x64] sm:$0xf] }
 0x137   :  { %6406 = vst [vmem:[#allocation27_spill] sm:$0xff] %v4907_v61  ;;  %v475_v18 = vadd.f32 %v474_v15, %v4865_v41  ;;  %v418_v50 = vpop.f32.mrf.mxu1  ;;  %1117 = vmatpush.bf16.msra.mxu3 %v4910_v3  ;;  %1130 = vmatpush.bf16.msra.mxu0 %v4912_v22  ;;  %v4925_v15 = vor.u32 %v4252_v51, %v3884_v54  ;;  %v3886_v16 = vld [vmem:[#allocation8 + $0x70] sm:$0xf0]  ;;  %v3892_v61 = vld [vmem:[#allocation8 + $0x68] sm:$0xf] }
 0x138   :  { %6407 = vst [vmem:[#allocation28_spill] sm:$0xff] %v4910_v3  ;;  %v4918_v33 = vpack.c.bf16 %v446_v23, %v417_v11  ;;  %v505_v35 = vpop.f32.mrf.mxu0  ;;  %v4253_v28 = vld [vmem:[#allocation8 + $0x74] sm:$0xf0]  ;;  %v4927_v47 = vor.u32 %v4250_v63, %v3886_v16  ;;  %v4251_v23 = vld [vmem:[#allocation8 + $0x6c] sm:$0xf] }
 0x139   :  { %6408 = vst [vmem:[#allocation29_spill] sm:$0xff] %v4912_v22  ;;  %v4922_v9 = vpack.c.bf16 %v504_v0, %v475_v18  ;;  %1143 = vmatpush.bf16.msrb.mxu1 %v4916_v19  ;;  %v4929_v11 = vor.u32 %v4253_v28, %v3892_v61  ;;  %v3868_v0 = vld [vmem:[#allocation8 + $0x40] sm:$0xf]  ;;  %v4248_v18 = vld [vmem:[#allocation8 + $0x4c] sm:$0xf0]  ;;  %v506_v3 = vadd.f32 %v505_v35, %v4861_v36 }
 0x13a   :  { %6409 = vst [vmem:[#allocation30_spill] sm:$0xff] %v4916_v19  ;;  %1105 = vmatpush.bf16.msra.mxu2 %v4925_v15  ;;  %v4246_v54 = vld [vmem:[#allocation8 + $0x44] sm:$0xf]  ;;  %v4937_v63 = vor.u32 %v4248_v18, %v3868_v0  ;;  %v3870_v61 = vld [vmem:[#allocation8 + $0x50] sm:$0xf0] }
 0x13b   :  { %6410 = vst [vmem:[#allocation31_spill] sm:$0xff] %v4918_v33  ;;  %v3894_v33 = vld [vmem:[#allocation8 + $0x78] sm:$0xf0]  ;;  %1118 = vmatpush.bf16.msra.mxu3 %v4927_v47  ;;  %1131 = vmatpush.bf16.msra.mxu0 %v4929_v11  ;;  %v3876_v16 = vld [vmem:[#allocation8 + $0x48] sm:$0xf] }
 0x13c   :  { %6411 = vst [vmem:[#allocation32_spill] sm:$0xff] %v4922_v9  ;;  %v4932_v22 = vor.u32 %v4251_v23, %v3894_v33  ;;  %v4249_v28 = vld [vmem:[#allocation8 + $0x54] sm:$0xf0]  ;;  %v419_v9 = vadd.f32 %v418_v50, %v4855_v29  ;;  %v3878_v19 = vld [vmem:[#allocation8 + $0x58] sm:$0xf0] }
 0x13d   :  { %6412 = vst [vmem:[#allocation33_spill] sm:$0xff] %v4925_v15  ;;  %v447_v51 = vpop.f32.mrf.mxu2  ;;  %v4941_v15 = vor.u32 %v4246_v54, %v3870_v61  ;;  %v3852_v54 = vld [vmem:[#allocation8 + $0x20] sm:$0xf]  ;;  %v4244_v61 = vld [vmem:[#allocation8 + $0x2c] sm:$0xf0] }
 0x13e   :  { %6413 = vst [vmem:[#allocation34_spill] sm:$0xff] %v4927_v47  ;;  %1144 = vmatpush.bf16.msrb.mxu1 %v4932_v22  ;;  %v448_v33 = vadd.f32 %v447_v51, %v4863_v38  ;;  %v476_v23 = vpop.f32.mrf.mxu3  ;;  %v4943_v47 = vor.u32 %v4249_v28, %v3876_v16  ;;  %1106 = vmatpush.bf16.msra.mxu2 %v4937_v63  ;;  %v4242_v16 = vld [vmem:[#allocation8 + $0x24] sm:$0xf] }
 0x13f   :  { %6414 = vst [vmem:[#allocation35_spill] sm:$0xff] %v4929_v11  ;;  %v4247_v11 = vld [vmem:[#allocation8 + $0x4c] sm:$0xf]  ;;  %v421_v0 = vpop.f32.mrf.mxu1  ;;  %1119 = vmatpush.bf16.msra.mxu3 %v4941_v15 }
 0x140   :  { %6415 = vst [vmem:[#allocation36_spill] sm:$0xff] %v4932_v22  ;;  %v477_v22 = vadd.f32 %v476_v23, %v4865_v41  ;;  %v4948_v18 = vor.u32 %v4247_v11, %v3878_v19  ;;  %v4950_v55 = vpack.c.bf16 %v448_v33, %v419_v9  ;;  %v422_v50 = vadd.f32 %v421_v0, %v4855_v29  ;;  %v508_v51 = vpop.f32.mrf.mxu0  ;;  %v3854_v9 = vld [vmem:[#allocation8 + $0x30] sm:$0xf0]  ;;  %v3860_v11 = vld [vmem:[#allocation8 + $0x28] sm:$0xf] }
 0x141   :  { %6416 = vst [vmem:[#allocation37_spill] sm:$0xff] %v4937_v63  ;;  %1132 = vmatpush.bf16.msra.mxu0 %v4943_v47  ;;  %v509_v28 = vadd.f32 %v508_v51, %v4861_v36  ;;  %v4959_v19 = vor.u32 %v4244_v61, %v3852_v54  ;;  %v4245_v33 = vld [vmem:[#allocation8 + $0x34] sm:$0xf0]  ;;  %v4961_v23 = vor.u32 %v4242_v16, %v3854_v9  ;;  %v4238_v51 = vld [vmem:[#allocation8 + $0x4] sm:$0xf] }
 0x142   :  { %6417 = vst [vmem:[#allocation38_spill] sm:$0xff] %v4941_v15  ;;  %v4955_v35 = vpack.c.bf16 %v506_v3, %v477_v22  ;;  %1145 = vmatpush.bf16.msrb.mxu1 %v4948_v18  ;;  %v4963_v0 = vor.u32 %v4245_v33, %v3860_v11  ;;  %v3836_v3 = vld [vmem:[#allocation8] sm:$0xf]  ;;  %v4240_v22 = vld [vmem:[#allocation8 + $0xc] sm:$0xf0] }
 0x143   :  { %6418 = vst [vmem:[#allocation39_spill] sm:$0xff] %v4943_v47  ;;  %v3862_v47 = vld [vmem:[#allocation8 + $0x38] sm:$0xf0]  ;;  %1107 = vmatpush.bf16.msra.mxu2 %v4959_v19  ;;  %1120 = vmatpush.bf16.msra.mxu3 %v4961_v23  ;;  %v4971_v61 = vor.u32 %v4240_v22, %v3836_v3  ;;  %v3838_v16 = vld [vmem:[#allocation8 + $0x10] sm:$0xf0] }
 0x144   :  { %6419 = vst [vmem:[#allocation40_spill] sm:$0xff] %v4948_v18  ;;  %v3844_v9 = vld [vmem:[#allocation8 + $0x8] sm:$0xf]  ;;  %v4241_v11 = vld [vmem:[#allocation8 + $0x14] sm:$0xf0] }
 0x145   :  { %6420 = vst [vmem:[#allocation41_spill] sm:$0xff] %v4950_v55  ;;  %v4243_v55 = vld [vmem:[#allocation8 + $0x2c] sm:$0xf]  ;;  %1133 = vmatpush.bf16.msra.mxu0 %v4963_v0  ;;  %v450_v54 = vpop.f32.mrf.mxu2  ;;  %v4236_v22 = vld [vmem:[#allocation7 + $0xec] sm:$0xf0] }
 0x146   :  { %6421 = vst [vmem:[#allocation42_spill] sm:$0xff] %v4955_v35  ;;  %v4966_v15 = vor.u32 %v4243_v55, %v3862_v47  ;;  %v451_v33 = vadd.f32 %v450_v54, %v4863_v38  ;;  %v479_v35 = vpop.f32.mrf.mxu3  ;;  %v4974_v55 = vor.u32 %v4238_v51, %v3838_v16  ;;  %v4976_v47 = vor.u32 %v4241_v11, %v3844_v9  ;;  %v4084_v16 = vld [vmem:[#allocation7 + $0xe8] sm:$0xf]  ;;  %v4237_v9 = vld [vmem:[#allocation7 + $0xf4] sm:$0xf0] }
 0x147   :  { %6422 = vst [vmem:[#allocation43_spill] sm:$0xff] %v4959_v19  ;;  %v4076_v19 = vld [vmem:[#allocation7 + $0xe0] sm:$0xf]  ;;  %v480_v18 = vadd.f32 %v479_v35, %v4865_v41  ;;  %v423_v63 = vpop.f32.mrf.mxu1  ;;  %1108 = vmatpush.bf16.msra.mxu2 %v4971_v61  ;;  %v4235_v35 = vld [vmem:[#allocation7 + $0xec] sm:$0xf] }
 0x148   :  { %6423 = vst [vmem:[#allocation44_spill] sm:$0xff] %v4961_v23  ;;  %1146 = vmatpush.bf16.msrb.mxu1 %v4966_v15  ;;  %v4239_v23 = vld [vmem:[#allocation8 + $0xc] sm:$0xf]  ;;  %v4982_v31 = vpack.c.bf16 %v451_v33, %v422_v50  ;;  %v510_v54 = vpop.f32.mrf.mxu0  ;;  %1121 = vmatpush.bf16.msra.mxu3 %v4974_v55  ;;  %v4986_v51 = vor.u32 %v4236_v22, %v4076_v19  ;;  %v4086_v50 = vld [vmem:[#allocation7 + $0xf8] sm:$0xf0] }
 0x149   :  { %6424 = vst [vmem:[#allocation45_spill] sm:$0xff] %v4963_v0  ;;  %v3846_v0 = vld [vmem:[#allocation8 + $0x18] sm:$0xf0]  ;;  %1134 = vmatpush.bf16.msra.mxu0 %v4976_v47  ;;  %v4988_v11 = vpack.c.bf16 %v509_v28, %v480_v18  ;;  %v4060_v33 = vld [vmem:[#allocation7 + $0xc0] sm:$0xf] }
 0x14a   :  { %6425 = vst [vmem:[#allocation46_spill] sm:$0xff] %v4966_v15  ;;  %v4980_v3 = vor.u32 %v4239_v23, %v3846_v0  ;;  %v4234_v15 = vld [vmem:[#allocation7 + $0xe4] sm:$0xf]  ;;  %v4993_v0 = vor.u32 %v4237_v9, %v4084_v16  ;;  %v4231_v18 = vld [vmem:[#allocation7 + $0xcc] sm:$0xf] }
 0x14b   :  { %6426 = vst [vmem:[#allocation47_spill] sm:$0xff] %v4971_v61  ;;  %v4991_v23 = vor.u32 %v4234_v15, %v4078_v44  ;;  %1313 = vmatpush.bf16.msrb.mxu2 %v4986_v51  ;;  %v4230_v22 = vld [vmem:[#allocation7 + $0xc4] sm:$0xf]  ;;  %v4068_v61 = vld [vmem:[#allocation7 + $0xc8] sm:$0xf] }
 0x14c   :  { %6427 = vst [vmem:[#allocation48_spill] sm:$0xff] %v4974_v55  ;;  %1147 = vmatpush.bf16.msrb.mxu1 %v4980_v3  ;;  %v4996_v55 = vor.u32 %v4235_v35, %v4086_v50  ;;  %v4233_v15 = vld [vmem:[#allocation7 + $0xd4] sm:$0xf0]  ;;  %v4070_v28 = vld [vmem:[#allocation7 + $0xd8] sm:$0xf0]  ;;  %v424_v35 = vadd.f32 %v423_v63, %v4855_v29 }
 0x14d   :  { %6428 = vst [vmem:[#allocation49_spill] sm:$0xff] %v4976_v47  ;;  %v4062_v47 = vld [vmem:[#allocation7 + $0xd0] sm:$0xf0]  ;;  %1326 = vmatpush.bf16.msrb.mxu3 %v4991_v23  ;;  %1339 = vmatpush.bf16.msrb.mxu0 %v4993_v0  ;;  %v5005_v16 = vor.u32 %v4233_v15, %v4068_v61  ;;  %v5007_v9 = vor.u32 %v4231_v18, %v4070_v28  ;;  %v452_v50 = vpop.f32.mrf.mxu2  ;;  %v4052_v28 = vld [vmem:[#allocation7 + $0xa8] sm:$0xf] }
 0x14e   :  { %6429 = vst [vmem:[#allocation50_spill] sm:$0xff] %v4980_v3  ;;  %v5002_v44 = vor.u32 %v4230_v22, %v4062_v47  ;;  %v511_v47 = vadd.f32 %v510_v54, %v4861_v36  ;;  %v453_v22 = vadd.f32 %v452_v50, %v4863_v38  ;;  %v481_v61 = vpop.f32.mrf.mxu3  ;;  %v4046_v18 = vld [vmem:[#allocation7 + $0xb0] sm:$0xf0]  ;;  %v4229_v63 = vld [vmem:[#allocation7 + $0xb4] sm:$0xf0] }
 0x14f   :  { %6430 = vst [vmem:[#allocation51_spill] sm:$0xff] %v4982_v31  ;;  %v4232_v31 = vld [vmem:[#allocation7 + $0xcc] sm:$0xf0]  ;;  %v5024_v50 = vor.u32 %v4229_v63, %v4052_v28  ;;  %v4225_v63 = vld [vmem:[#allocation7 + $0x94] sm:$0xf0] }
 0x150   :  { %6431 = vst [vmem:[#allocation52_spill] sm:$0xff] %v4986_v51  ;;  %v4998_v19 = vor.u32 %v4232_v31, %v4060_v33  ;;  %1352 = vmatpush.bf16.msra.mxu1 %v4996_v55  ;;  %v6440_v31 = vmov 0.0|0.0   ;;  %v4044_v33 = vld [vmem:[#allocation7 + $0xa0] sm:$0xf]  ;;  %v4227_v51 = vld [vmem:[#allocation7 + $0xac] sm:$0xf]  ;;  %v513_v3 = vpop.f32.mrf.mxu0 }
 0x151   :  { %6432 = vst [vmem:[#allocation53_spill] sm:$0xff] %v4988_v11  ;;  %1109 = vmatmul.bf16.vlgmr.msra.gmra.mxu2 %v6440_v31  ;;  %v4228_v11 = vld [vmem:[#allocation7 + $0xac] sm:$0xf0]  ;;  %1122 = vmatmul.bf16.vlgmr.msra.gmra.mxu3 %v6440_v31 }
 0x152   :  { %6433 = vst [vmem:[#allocation54_spill] sm:$0xff] %v4991_v23  ;;  %v4226_v23 = vld [vmem:[#allocation7 + $0xa4] sm:$0xf]  ;;  %1135 = vmatmul.bf16.vlgmr.msra.gmra.mxu0 %v6440_v31  ;;  %1314 = vmatpush.bf16.msrb.mxu2 %v4998_v19  ;;  %v5016_v15 = vor.u32 %v4228_v11, %v4044_v33  ;;  %v5026_v11 = vpack.c.bf16 %v453_v22, %v424_v35  ;;  %v4030_v35 = vld [vmem:[#allocation7 + $0x90] sm:$0xf0] }
 0x153   :  { %6434 = vst [vmem:[#allocation55_spill] sm:$0xff] %v4993_v0  ;;  %1148 = vmatmul.bf16.vlgmr.msrb.gmra.mxu1 %v6440_v31  ;;  %v426_v0 = vpop.f32.mrf.mxu1  ;;  %1327 = vmatpush.bf16.msrb.mxu3 %v5002_v44  ;;  %v5022_v54 = vor.u32 %v4226_v23, %v4046_v18  ;;  %v4224_v23 = vld [vmem:[#allocation7 + $0x8c] sm:$0xf0]  ;;  %v4222_v18 = vld [vmem:[#allocation7 + $0x84] sm:$0xf] }
 0x154   :  { %6435 = vst [vmem:[#allocation56_spill] sm:$0xff] %v4996_v55  ;;  %v482_v55 = vadd.f32 %v481_v61, %v4865_v41  ;;  %1340 = vmatpush.bf16.msrb.mxu0 %v5005_v16  ;;  %v427_v33 = vadd.f32 %v426_v0, %v4855_v29  ;;  %1353 = vmatpush.bf16.msra.mxu1 %v5007_v9  ;;  %v4036_v22 = vld [vmem:[#allocation7 + $0x88] sm:$0xf]  ;;  %v4223_v0 = vld [vmem:[#allocation7 + $0x8c] sm:$0xf] }
 0x155   :  { %6436 = vst [vmem:[#allocation57_spill] sm:$0xff] %v4998_v19  ;;  %v4054_v19 = vld [vmem:[#allocation7 + $0xb8] sm:$0xf0] }
 0x156   :  { %6437 = vst [vmem:[#allocation58_spill] sm:$0xff] %v5002_v44  ;;  %v5030_v31 = vor.u32 %v4227_v51, %v4054_v19  ;;  %v5032_v61 = vpack.c.bf16 %v511_v47, %v482_v55  ;;  %v514_v44 = vadd.f32 %v513_v3, %v4861_v36  ;;  %1315 = vmatpush.bf16.msrb.mxu2 %v5016_v15  ;;  %v4038_v3 = vld [vmem:[#allocation7 + $0x98] sm:$0xf0]  ;;  %v455_v47 = vpop.f32.mrf.mxu2 }
 0x157   :  { %6438 = vst [vmem:[#allocation59_spill] sm:$0xff] %v5005_v16  ;;  %v4028_v16 = vld [vmem:[#allocation7 + $0x80] sm:$0xf]  ;;  %1328 = vmatpush.bf16.msrb.mxu3 %v5022_v54  ;;  %v5040_v51 = vor.u32 %v4222_v18, %v4030_v35  ;;  %v5042_v55 = vor.u32 %v4225_v63, %v4036_v22  ;;  %v5045_v19 = vor.u32 %v4223_v0, %v4038_v3  ;;  %v484_v35 = vpop.f32.mrf.mxu3  ;;  %v4014_v63 = vld [vmem:[#allocation7 + $0x70] sm:$0xf0] }
 0x158   :  { %6439 = vst [vmem:[#allocation60_spill] sm:$0xff] %v5007_v9  ;;  %v5036_v28 = vor.u32 %v4224_v23, %v4028_v16  ;;  %1341 = vmatpush.bf16.msrb.mxu0 %v5024_v50  ;;  %1354 = vmatpush.bf16.msra.mxu1 %v5030_v31  ;;  %v441_v16 = vadd.f32 %v4846_v5, %v4863_v38  ;;  %v4012_v23 = vld [vmem:[#allocation7 + $0x60] sm:$0xf]  ;;  %v4020_v0 = vld [vmem:[#allocation7 + $0x68] sm:$0xf] }
 0x159   :  { %6441 = vst [vmem:[#allocation61_spill] sm:$0xff] %v5016_v15  ;;  %v456_v18 = vadd.f32 %v455_v47, %v4863_v38  ;;  %v4221_v3 = vld [vmem:[#allocation7 + $0x74] sm:$0xf0]  ;;  %v4219_v47 = vld [vmem:[#allocation7 + $0x6c] sm:$0xf] }
 0x15a   :  { %6442 = vst [vmem:[#allocation62_spill] sm:$0xff] %v5022_v54  ;;  %1316 = vmatpush.bf16.msrb.mxu2 %v5036_v28  ;;  %v4022_v15 = vld [vmem:[#allocation7 + $0x78] sm:$0xf0] }
 0x15b   :  { %6443 = vst [vmem:[#allocation63_spill] sm:$0xff] %v5024_v50  ;;  %v412_v50 = vadd.f32 %v4842_v53, %v4855_v29  ;;  %v428_v5 = vpop.f32.mrf.mxu1  ;;  %1329 = vmatpush.bf16.msrb.mxu3 %v5040_v51  ;;  %v5060_v53 = vor.u32 %v4221_v3, %v4020_v0  ;;  %v5062_v9 = vpack.c.bf16 %v456_v18, %v427_v33  ;;  %v4004_v0 = vld [vmem:[#allocation7 + $0x48] sm:$0xf]  ;;  %v4217_v3 = vld [vmem:[#allocation7 + $0x54] sm:$0xf0]  ;;  %v515_v33 = vpop.f32.mrf.mxu0 }
 0x15c   :  { %6444 = vst [vmem:[#allocation64_spill] sm:$0xff] %v5026_v11  ;;  %v4220_v11 = vld [vmem:[#allocation7 + $0x6c] sm:$0xf0]  ;;  %1342 = vmatpush.bf16.msrb.mxu0 %v5042_v55  ;;  %1355 = vmatpush.bf16.msra.mxu1 %v5045_v19  ;;  %v3980_v18 = vld [vmem:[#allocation7 + $0x20] sm:$0xf] }
 0x15d   :  { %6445 = vst [vmem:[#allocation65_spill] sm:$0xff] %v5030_v31  ;;  %v5053_v22 = vor.u32 %v4220_v11, %v4012_v23  ;;  %v485_v31 = vadd.f32 %v484_v35, %v4865_v41  ;;  %v5065_v11 = vor.u32 %v4219_v47, %v4022_v15  ;;  %v5067_v23 = vpack.c.bf16 %v441_v16, %v412_v50  ;;  %v4212_v47 = vld [vmem:[#allocation7 + $0x2c] sm:$0xf0] }
 0x15e   :  { %6446 = vst [vmem:[#allocation66_spill] sm:$0xff] %v5032_v61  ;;  %v4218_v61 = vld [vmem:[#allocation7 + $0x64] sm:$0xf]  ;;  %v5078_v50 = vor.u32 %v4217_v3, %v4004_v0  ;;  %v5088_v0 = vor.u32 %v4212_v47, %v3980_v18  ;;  %v3982_v3 = vld [vmem:[#allocation7 + $0x30] sm:$0xf0] }
 0x15f   :  { %6447 = vst [vmem:[#allocation67_spill] sm:$0xff] %v5036_v28  ;;  %v5058_v54 = vor.u32 %v4218_v61, %v4014_v63  ;;  %v5069_v35 = vpack.c.bf16 %v514_v44, %v485_v31  ;;  %v3996_v28 = vld [vmem:[#allocation7 + $0x40] sm:$0xf]  ;;  %1317 = vmatpush.bf16.msrb.mxu2 %v5053_v22  ;;  %v3998_v63 = vld [vmem:[#allocation7 + $0x50] sm:$0xf0] }
 0x160   :  { %6448 = vst [vmem:[#allocation68_spill] sm:$0xff] %v5040_v51  ;;  %v4216_v51 = vld [vmem:[#allocation7 + $0x4c] sm:$0xf0]  ;;  %1343 = vmatpush.bf16.msrb.mxu0 %v5060_v53  ;;  %v5076_v15 = vor.u32 %v4214_v30, %v3998_v63  ;;  %v4215_v44 = vld [vmem:[#allocation7 + $0x4c] sm:$0xf]  ;;  %1356 = vmatpush.bf16.msra.mxu1 %v5065_v11  ;;  %v486_v63 = vpop.f32.mrf.mxu3 }
 0x161   :  { %6449 = vst [vmem:[#allocation69_spill] sm:$0xff] %v5042_v55  ;;  %v5072_v61 = vor.u32 %v4216_v51, %v3996_v28  ;;  %1330 = vmatpush.bf16.msrb.mxu3 %v5058_v54  ;;  %v4006_v31 = vld [vmem:[#allocation7 + $0x58] sm:$0xf0]  ;;  %v457_v28 = vpop.f32.mrf.mxu2  ;;  %v559_v51 = vunpack.c.l.bf16 %v5067_v23 }
 0x162   :  { %6450 = vst [vmem:[#allocation70_spill] sm:$0xff] %v5045_v19  ;;  %v5081_v16 = vor.u32 %v4215_v44, %v4006_v31  ;;  %v458_v30 = vadd.f32 %v457_v28, %v4863_v38  ;;  %v3988_v44 = vld [vmem:[#allocation7 + $0x28] sm:$0xf]  ;;  %v4213_v31 = vld [vmem:[#allocation7 + $0x34] sm:$0xf0] }
 0x163   :  { %6451 = vst [vmem:[#allocation71_spill] sm:$0xff] %v5053_v22  ;;  %1318 = vmatpush.bf16.msrb.mxu2 %v5072_v61  ;;  %v4211_v38 = vld [vmem:[#allocation7 + $0x2c] sm:$0xf]  ;;  %v4208_v22 = vld [vmem:[#allocation7 + $0xc] sm:$0xf0] }
 0x164   :  { %6452 = vst [vmem:[#allocation72_spill] sm:$0xff] %v5058_v54  ;;  %v765_v54 = vpop.f32.mrf.mxu1  ;;  %1344 = vmatpush.bf16.msrb.mxu0 %v5078_v50  ;;  %1357 = vmatpush.bf16.msra.mxu1 %v5081_v16 }
 0x165   :  { %6453 = vst [vmem:[#allocation73_spill] sm:$0xff] %v5060_v53  ;;  %v516_v53 = vadd.f32 %v515_v33, %v4861_v36  ;;  %1331 = vmatpush.bf16.msrb.mxu3 %v5076_v15  ;;  %v3990_v33 = vld [vmem:[#allocation7 + $0x38] sm:$0xf0]  ;;  %v808_v18 = vadd.f32 %v765_v54, %v559_v51  ;;  %v4207_v51 = vld [vmem:[#allocation7 + $0xc] sm:$0xf] }
 0x166   :  { %6454 = vst [vmem:[#allocation74_spill] sm:$0xff] %v5062_v9  ;;  %v4210_v9 = vld [vmem:[#allocation7 + $0x24] sm:$0xf]  ;;  %v5100_v47 = vor.u32 %v4211_v38, %v3990_v33  ;;  %v470_v38 = vadd.f32 %v4848_v7, %v4865_v41 }
 0x167   :  { %6455 = vst [vmem:[#allocation75_spill] sm:$0xff] %v5065_v11  ;;  %v487_v11 = vadd.f32 %v486_v63, %v4865_v41  ;;  %v3964_v63 = vld [vmem:[#allocation7] sm:$0xf]  ;;  %v3831_v19 = vmul.f32 -1.442695, %v808_v18  ;;  %1319 = vmatpush.bf16.msrb.mxu2 %v5088_v0 }
 0x168   :  { %6456 = vst [vmem:[#allocation76_spill] sm:$0xff] %v5069_v35  ;;  %v429_v35 = vadd.f32 %v428_v5, %v4855_v29  ;;  %v5093_v29 = vor.u32 %v4210_v9, %v3982_v3  ;;  %v5095_v5 = vor.u32 %v4213_v31, %v3988_v44  ;;  %v5105_v9 = vor.u32 %v4208_v22, %v3964_v63  ;;  %v3966_v3 = vld [vmem:[#allocation7 + $0x10] sm:$0xf0]  ;;  %v3972_v44 = vld [vmem:[#allocation7 + $0x8] sm:$0xf]  ;;  %v791_v18 = vpop.f32.mrf.mxu3 }
 0x169   :  { %6457 = vst [vmem:[#allocation77_spill] sm:$0xff] %v5072_v61  ;;  %v5102_v61 = vpack.c.bf16 %v516_v53, %v487_v11  ;;  %v3974_v53 = vld [vmem:[#allocation7 + $0x18] sm:$0xf0]  ;;  %4278 = vpow2.f32 %v3831_v19  ;;  %v560_v11 = vunpack.c.h.bf16 %v5067_v23  ;;  %1358 = vmatpush.bf16.msra.mxu1 %v5100_v47  ;;  %v778_v31 = vpop.f32.mrf.mxu2  ;;  %v499_v19 = vadd.f32 %v4844_v4, %v4861_v36 }
 0x16a   :  { %6458 = vst [vmem:[#allocation78_spill] sm:$0xff] %v5076_v15  ;;  %v5097_v28 = vpack.c.bf16 %v458_v30, %v429_v35  ;;  %v4206_v15 = vld [vmem:[#allocation7 + $0x4] sm:$0xf]  ;;  %1332 = vmatpush.bf16.msrb.mxu3 %v5093_v29  ;;  %1345 = vmatpush.bf16.msrb.mxu0 %v5095_v5  ;;  %v4209_v35 = vld [vmem:[#allocation7 + $0x14] sm:$0xf0]  ;;  %v5115_v22 = vor.u32 %v4207_v51, %v3974_v53 }
 0x16b   :  { %6459 = vst [vmem:[#allocation79_spill] sm:$0xff] %v5078_v50  ;;  %v5109_v54 = vor.u32 %v4206_v15, %v3966_v3  ;;  %v5113_v30 = vor.u32 %v4209_v35, %v3972_v44  ;;  %v809_v33 = vadd.f32 %v778_v31, %v560_v11  ;;  %1320 = vmatpush.bf16.msrb.mxu2 %v5105_v9 }
 0x16c   :  { %6460 = vst [vmem:[#allocation80_spill] sm:$0xff] %v5081_v16  ;;  %v767_v15 = vpop.f32.mrf.mxu1  ;;  %v519_v41 = vpack.c.bf16 %v499_v19, %v470_v38 }
 0x16d   :  { %6461 = vst [vmem:[#allocation81_spill] sm:$0xff] %v5088_v0  ;;  %v3832_v23 = vmul.f32 -1.442695, %v809_v33  ;;  %1359 = vmatpush.bf16.msra.mxu1 %v5115_v22 }
 0x16e   :  { %6462 = vst [vmem:[#allocation82_spill] sm:$0xff] %v5093_v29  ;;  %1333 = vmatpush.bf16.msrb.mxu3 %v5109_v54  ;;  %1346 = vmatpush.bf16.msrb.mxu0 %v5113_v30  ;;  %v562_v4 = vunpack.c.h.bf16 %v519_v41  ;;  %v561_v11 = vunpack.c.l.bf16 %v519_v41 }
 0x16f   :  { %6463 = vst [vmem:[#allocation83_spill] sm:$0xff] %v5095_v5  ;;  %1448 = vmatpush.bf16.msra.mxu2 %v4732_v43  ;;  %v4279_v7 = vpop.eup %4278  ;;  %4280 = vpow2.f32 %v3832_v23 }
 0x170   :  { %6464 = vst [vmem:[#allocation84_spill] sm:$0xff] %v5097_v28  ;;  %v815_v63 = vadd.f32 1.0, %v4279_v7  ;;  %v793_v36 = vpop.f32.mrf.mxu3  ;;  %v810_v33 = vadd.f32 %v791_v18, %v561_v11  ;;  %v6487_v28 = vld [vmem:[#allocation34_spill] sm:$0xff] }
 0x171   :  { %6465 = vst [vmem:[#allocation85_spill] sm:$0xff] %v5100_v47  ;;  %1487 = vmatpush.bf16.msrb.mxu1 %v4793_v57  ;;  %v780_v3 = vpop.f32.mrf.mxu2 }
 0x172   :  { %6466 = vst [vmem:[#allocation86_spill] sm:$0xff] %v5102_v61  ;;  %1461 = vmatpush.bf16.msra.mxu3 %v4729_v39  ;;  %1474 = vmatpush.bf16.msra.mxu0 %v4751_v60  ;;  %4282 = vrcp.f32 %v815_v63  ;;  %v827_v23 = vand.u32 2147483648, %v815_v63  ;;  %v825_v3 = vand.u32 2147483647, %v815_v63  ;;  %vm821_vm2 = vweird.f32 %v815_v63  ;;  %v6488_v61 = vld [vmem:[#allocation35_spill] sm:$0xff] }
 0x173   :  { %6467 = vst [vmem:[#allocation87_spill] sm:$0xff] %v5105_v9  ;;  %1449 = vmatpush.bf16.msra.mxu2 %v4738_v48 }
 0x174   :  { %6468 = vst [vmem:[#allocation88_spill] sm:$0xff] %v5109_v54  ;;  %v804_v44 = vpop.f32.mrf.mxu1  ;;  %vm826_vm4 = vcmp.eq.f32.partialorder %v825_v3, 8.507059e+37 }
 0x175   :  { %6469 = vst [vmem:[#allocation89_spill] sm:$0xff] %v5113_v30  ;;  %1488 = vmatpush.bf16.msrb.mxu1 %v4802_v2  ;;  %v4281_v35 = vpop.eup %4280  ;;  %v811_v51 = vadd.f32 %v804_v44, %v562_v4 }
 0x176   :  { %6470 = vst [vmem:[#allocation90_spill] sm:$0xff] %v5115_v22  ;;  %1462 = vmatpush.bf16.msra.mxu3 %v4734_v45  ;;  %1475 = vmatpush.bf16.msra.mxu0 %v4762_v10  ;;  %v834_v53 = vadd.f32 1.0, %v4281_v35  ;;  %v828_v35 = vor.u32 1.1754944e-38, %v827_v23 }
 0x177   :  { %1450 = vmatpush.bf16.msra.mxu2 %v4749_v56  ;;  %v3833_v31 = vmul.f32 -1.442695, %v811_v51 }
 0x178   :  { %v4283_v38 = vpop.eup %4282  ;;  %4284 = vrcp.f32 %v834_v53  ;;  %vm840_vm6 = vweird.f32 %v834_v53 }
 0x179   :  { %1489 = vmatpush.bf16.msrb.mxu1 %v4811_v13  ;;  %v817_v15 = vmul.f32 %v4283_v38, %v815_v63  ;;  %4286 = vpow2.f32 %v3833_v31  ;;  %vm822_vm1 = vweird.f32 %v4283_v38  ;;  %v844_v63 = vand.u32 2147483647, %v834_v53 }
 0x17a   :  { %1463 = vmatpush.bf16.msra.mxu3 %v4741_v52  ;;  %1476 = vmatpush.bf16.msra.mxu0 %v4771_v20  ;;  %4288 = vtanh.f32 %v810_v33  ;;  %vm823_vm3 = vmor %vm821_vm2, %vm822_vm1 }
 0x17b   :  { %1451 = vmatpush.bf16.msra.mxu2 %v4760_v8  ;;  %v818_v19 = vsub.f32 1.0, %v817_v15  ;;  %v846_v15 = vand.u32 2147483648, %v834_v53  ;;  %vm845_vm8 = vcmp.eq.f32.partialorder %v844_v63, 8.507059e+37 }
 0x17c   :  { %v806_v7 = vpop.f32.mrf.mxu1 }
 0x17d   :  { %1490 = vmatpush.bf16.msrb.mxu1 %v4820_v27  ;;  %v819_v41 = vmul.f32 %v4283_v38, %v818_v19 }
 0x17e   :  { %1464 = vmatpush.bf16.msra.mxu3 %v4754_v62  ;;  %1477 = vmatpush.bf16.msra.mxu0 %v4785_v37  ;;  %v4285_v18 = vpop.eup %4284 }
 0x17f   :  { %1452 = vmatpush.bf16.msra.mxu2 %v4768_v17  ;;  %v4287_v4 = vpop.eup %4286  ;;  %v836_v36 = vmul.f32 %v4285_v18, %v834_v53  ;;  %v820_v44 = vadd.f32 %v4283_v38, %v819_v41  ;;  %vm841_vm5 = vweird.f32 %v4285_v18 }
 0x180   :  { %v854_v51 = vadd.f32 1.0, %v4287_v4  ;;  %v4289_v33 = vpop.eup %4288  ;;  %vm842_vm7 = vmor %vm840_vm6, %vm841_vm5 }
 0x181   :  { %1491 = vmatpush.bf16.msrb.mxu1 %v4824_v34  ;;  %v837_v11 = vsub.f32 1.0, %v836_v36  ;;  %v824_v31 = vsel %vm823_vm3, %v4283_v38, %v820_v44  ;;  %v847_v38 = vor.u32 1.1754944e-38, %v846_v15 }
 0x182   :  { %1465 = vmatpush.bf16.msra.mxu3 %v4766_v14  ;;  %1478 = vmatpush.bf16.msra.mxu0 %v4791_v49  ;;  %v829_v19 = vsel %vm826_vm4, %v828_v35, %v824_v31  ;;  %4290 = vrcp.f32 %v854_v51  ;;  %v866_v31 = vand.u32 2147483648, %v854_v51  ;;  %vm860_vm10 = vweird.f32 %v854_v51 }
 0x183   :  { %1453 = vmatpush.bf16.msra.mxu2 %v4774_v24  ;;  %v838_v7 = vmul.f32 %v4285_v18, %v837_v11  ;;  %v871_v41 = vmul.f32 %v4289_v33, %v829_v19  ;;  %v864_v33 = vand.u32 2147483647, %v854_v51 }
 0x184   :  { %v867_v19 = vor.u32 1.1754944e-38, %v866_v31  ;;  %v6478_v31 = vld [vmem:[#allocation23_spill] sm:$0xff] }
 0x185   :  { %1492 = vmatpush.bf16.msrb.mxu1 %v4827_v40  ;;  %v839_v23 = vadd.f32 %v4285_v18, %v838_v7  ;;  %vm865_vm12 = vcmp.eq.f32.partialorder %v864_v33, 8.507059e+37  ;;  %v6480_v33 = vld [vmem:[#allocation25_spill] sm:$0xff] }
 0x186   :  { %1466 = vmatpush.bf16.msra.mxu3 %v4777_v26  ;;  %1479 = vmatpush.bf16.msra.mxu0 %v4800_v1 }
 0x187   :  { %1454 = vmatpush.bf16.msra.mxu2 %v4783_v32  ;;  %v843_v3 = vsel %vm842_vm7, %v4285_v18, %v839_v23 }
 0x188   :  { %v4291_v4 = vpop.eup %4290  ;;  %v848_v36 = vsel %vm845_vm8, %v847_v38, %v843_v3  ;;  %v6471_v3 = vld [vmem:[#allocation14_spill] sm:$0xff] }
 0x189   :  { %1493 = vmatpush.bf16.msrb.mxu1 %v4830_v46  ;;  %v870_v44 = vmul.f32 0.0, %v848_v36  ;;  %v856_v35 = vmul.f32 %v4291_v4, %v854_v51  ;;  %vm861_vm9 = vweird.f32 %v4291_v4  ;;  %v6472_v36 = vld [vmem:[#allocation15_spill] sm:$0xff]  ;;  %v6474_v51 = vld [vmem:[#allocation17_spill] sm:$0xff] }
 0x18a   :  { %1467 = vmatpush.bf16.msra.mxu3 %v4796_v59  ;;  %1480 = vmatpush.bf16.msra.mxu0 %v4808_v12  ;;  %vm862_vm11 = vmor %vm860_vm10, %vm861_vm9 }
 0x18b   :  { %1455 = vmatpush.bf16.msra.mxu2 %v4789_v42  ;;  %v5156_v53 = vadd.f32 %v871_v41, %v870_v44  ;;  %v857_v11 = vsub.f32 1.0, %v856_v35  ;;  %v6473_v44 = vld [vmem:[#allocation16_spill] sm:$0xff]  ;;  %v6476_v35 = vld [vmem:[#allocation19_spill] sm:$0xff] }
 0x18d   :  { %1494 = vmatpush.bf16.msrb.mxu1 %v4835_v58  ;;  %4292 = vtanh.f32 %v5156_v53  ;;  %v858_v18 = vmul.f32 %v4291_v4, %v857_v11  ;;  %v6477_v11 = vld [vmem:[#allocation20_spill] sm:$0xff] }
 0x18e   :  { %1468 = vmatpush.bf16.msra.mxu3 %v4805_v6  ;;  %1481 = vmatpush.bf16.msra.mxu0 %v4817_v25 }
 0x18f   :  { %v859_v15 = vadd.f32 %v4291_v4, %v858_v18  ;;  %v6479_v18 = vld [vmem:[#allocation24_spill] sm:$0xff] }
 0x191   :  { %v863_v7 = vsel %vm862_vm11, %v4291_v4, %v859_v15  ;;  %v6475_v4 = vld [vmem:[#allocation18_spill] sm:$0xff] }
 0x192   :  { %v868_v63 = vsel %vm865_vm12, %v867_v19, %v863_v7  ;;  %v6481_v15 = vld [vmem:[#allocation26_spill] sm:$0xff]  ;;  %v6482_v19 = vld [vmem:[#allocation27_spill] sm:$0xff]  ;;  %v6483_v7 = vld [vmem:[#allocation28_spill] sm:$0xff] }
 0x193   :  { %v4293_v23 = vpop.eup %4292 }
 0x194   :  { %v874_v38 = vmul.f32 %v4293_v23, %v868_v63  ;;  %v6484_v63 = vld [vmem:[#allocation29_spill] sm:$0xff]  ;;  %v6485_v23 = vld [vmem:[#allocation30_spill] sm:$0xff] }
 0x196   :  { %v875_v41 = vpack.c.bf16 %v874_v38, %v874_v38  ;;  %v6486_v38 = vld [vmem:[#allocation33_spill] sm:$0xff] }
 0x198   :  { %1321 = vmatmul.bf16.vlgmr.msrb.gmra.mxu2 %v875_v41  ;;  %1334 = vmatmul.bf16.vlgmr.msrb.gmra.mxu3 %v875_v41 }
 0x199   :  { %1347 = vmatmul.bf16.vlgmr.msrb.gmra.mxu0 %v875_v41  ;;  %1360 = vmatmul.bf16.vlgmr.msra.gmra.mxu1 %v875_v41 }
 0x19a   :  { %1569 = vmatpush.bf16.msrb.mxu2 %v4853_v21  ;;  %1582 = vmatpush.bf16.msrb.mxu3 %v6471_v3 }
 0x19b   :  { %1595 = vmatpush.bf16.msrb.mxu0 %v6472_v36  ;;  %1608 = vmatpush.bf16.msra.mxu1 %v6473_v44 }
 0x19e   :  { %1570 = vmatpush.bf16.msrb.mxu2 %v6474_v51  ;;  %1583 = vmatpush.bf16.msrb.mxu3 %v6475_v4 }
 0x19f   :  { %1596 = vmatpush.bf16.msrb.mxu0 %v6476_v35  ;;  %1609 = vmatpush.bf16.msra.mxu1 %v6477_v11 }
 0x1a2   :  { %1571 = vmatpush.bf16.msrb.mxu2 %v6478_v31  ;;  %1584 = vmatpush.bf16.msrb.mxu3 %v6479_v18  ;;  %v6495_v18 = vld [vmem:[#allocation44_spill] sm:$0xff]  ;;  %v6526_v31 = vld [vmem:[#allocation22_spill] sm:$0xff] }
 0x1a3   :  { %1597 = vmatpush.bf16.msrb.mxu0 %v6480_v33  ;;  %1610 = vmatpush.bf16.msra.mxu1 %v6481_v15  ;;  %v6489_v33 = vld [vmem:[#allocation36_spill] sm:$0xff]  ;;  %v6490_v15 = vld [vmem:[#allocation37_spill] sm:$0xff] }
 0x1a6   :  { %1572 = vmatpush.bf16.msrb.mxu2 %v6482_v19  ;;  %1585 = vmatpush.bf16.msrb.mxu3 %v6483_v7  ;;  %v6491_v19 = vld [vmem:[#allocation38_spill] sm:$0xff]  ;;  %v6492_v7 = vld [vmem:[#allocation39_spill] sm:$0xff] }
 0x1a7   :  { %1598 = vmatpush.bf16.msrb.mxu0 %v6484_v63  ;;  %1611 = vmatpush.bf16.msra.mxu1 %v6485_v23  ;;  %v6493_v63 = vld [vmem:[#allocation40_spill] sm:$0xff]  ;;  %v6494_v23 = vld [vmem:[#allocation43_spill] sm:$0xff] }
 0x1a8   :  { %1456 = vmatmul.bf16.vlgmr.msra.gmra.mxu2 %v875_v41  ;;  %1469 = vmatmul.bf16.vlgmr.msra.gmra.mxu3 %v875_v41 }
 0x1a9   :  { %1482 = vmatmul.bf16.vlgmr.msra.gmra.mxu0 %v875_v41  ;;  %1495 = vmatmul.bf16.vlgmr.msrb.gmra.mxu1 %v875_v41  ;;  %v6496_v41 = vld [vmem:[#allocation45_spill] sm:$0xff] }
 0x1aa   :  { %1573 = vmatpush.bf16.msrb.mxu2 %v6486_v38  ;;  %1586 = vmatpush.bf16.msrb.mxu3 %v6487_v28  ;;  %v6497_v38 = vld [vmem:[#allocation46_spill] sm:$0xff]  ;;  %v6498_v28 = vld [vmem:[#allocation47_spill] sm:$0xff] }
 0x1ab   :  { %1599 = vmatpush.bf16.msrb.mxu0 %v6488_v61  ;;  %1612 = vmatpush.bf16.msra.mxu1 %v6489_v33  ;;  %v6499_v61 = vld [vmem:[#allocation48_spill] sm:$0xff]  ;;  %v6500_v33 = vld [vmem:[#allocation49_spill] sm:$0xff] }
 0x1ae   :  { %1574 = vmatpush.bf16.msrb.mxu2 %v6490_v15  ;;  %1587 = vmatpush.bf16.msrb.mxu3 %v6491_v19  ;;  %v6501_v15 = vld [vmem:[#allocation50_spill] sm:$0xff]  ;;  %v6502_v19 = vld [vmem:[#allocation52_spill] sm:$0xff] }
 0x1af   :  { %1600 = vmatpush.bf16.msrb.mxu0 %v6492_v7  ;;  %1613 = vmatpush.bf16.msra.mxu1 %v6493_v63  ;;  %v6503_v7 = vld [vmem:[#allocation54_spill] sm:$0xff]  ;;  %v6504_v63 = vld [vmem:[#allocation55_spill] sm:$0xff] }
 0x1b2   :  { %1575 = vmatpush.bf16.msrb.mxu2 %v6494_v23  ;;  %1588 = vmatpush.bf16.msrb.mxu3 %v6495_v18  ;;  %v6505_v23 = vld [vmem:[#allocation56_spill] sm:$0xff]  ;;  %v6506_v18 = vld [vmem:[#allocation57_spill] sm:$0xff] }
 0x1b3   :  { %1601 = vmatpush.bf16.msrb.mxu0 %v6496_v41  ;;  %1614 = vmatpush.bf16.msra.mxu1 %v6497_v38  ;;  %v6507_v41 = vld [vmem:[#allocation58_spill] sm:$0xff]  ;;  %v6508_v38 = vld [vmem:[#allocation59_spill] sm:$0xff] }
 0x1b6   :  { %1576 = vmatpush.bf16.msrb.mxu2 %v6498_v28  ;;  %1589 = vmatpush.bf16.msrb.mxu3 %v6499_v61  ;;  %v6509_v28 = vld [vmem:[#allocation60_spill] sm:$0xff]  ;;  %v6510_v61 = vld [vmem:[#allocation61_spill] sm:$0xff] }
 0x1b7   :  { %1602 = vmatpush.bf16.msrb.mxu0 %v6500_v33  ;;  %1615 = vmatpush.bf16.msra.mxu1 %v6501_v15  ;;  %v6511_v33 = vld [vmem:[#allocation62_spill] sm:$0xff]  ;;  %v6512_v15 = vld [vmem:[#allocation63_spill] sm:$0xff] }
 0x1ba   :  { %1621 = vmatpush.bf16.msra.mxu2 %v6502_v19  ;;  %1634 = vmatpush.bf16.msra.mxu3 %v6503_v7  ;;  %v6513_v19 = vld [vmem:[#allocation65_spill] sm:$0xff]  ;;  %v6514_v7 = vld [vmem:[#allocation67_spill] sm:$0xff] }
 0x1bb   :  { %1647 = vmatpush.bf16.msra.mxu0 %v6504_v63  ;;  %1660 = vmatpush.bf16.msrb.mxu1 %v6505_v23  ;;  %v6515_v63 = vld [vmem:[#allocation68_spill] sm:$0xff] }
 0x1be   :  { %1622 = vmatpush.bf16.msra.mxu2 %v6506_v18  ;;  %1635 = vmatpush.bf16.msra.mxu3 %v6507_v41  ;;  %v6516_v18 = vld [vmem:[#allocation70_spill] sm:$0xff]  ;;  %v6517_v41 = vld [vmem:[#allocation71_spill] sm:$0xff] }
 0x1bf   :  { %1648 = vmatpush.bf16.msra.mxu0 %v6508_v38  ;;  %1661 = vmatpush.bf16.msrb.mxu1 %v6509_v28  ;;  %v6518_v38 = vld [vmem:[#allocation72_spill] sm:$0xff]  ;;  %v6519_v28 = vld [vmem:[#allocation73_spill] sm:$0xff] }
 0x1c2   :  { %1623 = vmatpush.bf16.msra.mxu2 %v6510_v61  ;;  %1636 = vmatpush.bf16.msra.mxu3 %v6511_v33  ;;  %v6520_v61 = vld [vmem:[#allocation75_spill] sm:$0xff]  ;;  %v6521_v33 = vld [vmem:[#allocation77_spill] sm:$0xff] }
 0x1c3   :  { %1649 = vmatpush.bf16.msra.mxu0 %v6512_v15  ;;  %1662 = vmatpush.bf16.msrb.mxu1 %v6513_v19  ;;  %v6522_v15 = vld [vmem:[#allocation78_spill] sm:$0xff] }
 0x1c6   :  { %1624 = vmatpush.bf16.msra.mxu2 %v6514_v7  ;;  %1637 = vmatpush.bf16.msra.mxu3 %v6515_v63 }
 0x1c7   :  { %1650 = vmatpush.bf16.msra.mxu0 %v5042_v55  ;;  %1663 = vmatpush.bf16.msrb.mxu1 %v6516_v18 }
 0x1ca   :  { %1625 = vmatpush.bf16.msra.mxu2 %v6517_v41  ;;  %1638 = vmatpush.bf16.msra.mxu3 %v6518_v38 }
 0x1cb   :  { %1651 = vmatpush.bf16.msra.mxu0 %v6519_v28  ;;  %1664 = vmatpush.bf16.msrb.mxu1 %v6520_v61 }
 0x1ce   :  { %1626 = vmatpush.bf16.msra.mxu2 %v6521_v33  ;;  %1639 = vmatpush.bf16.msra.mxu3 %v6522_v15 }
 0x1cf   :  { %1652 = vmatpush.bf16.msra.mxu0 %v5078_v50  ;;  %1665 = vmatpush.bf16.msrb.mxu1 %v5081_v16  ;;  %v1136_v63 = vpop.f32.mrf.mxu0 }
 0x1d0   :  { %v1149_v55 = vpop.f32.mrf.mxu1 }
 0x1d2   :  { %1627 = vmatpush.bf16.msra.mxu2 %v5088_v0  ;;  %1640 = vmatpush.bf16.msra.mxu3 %v5093_v29 }
 0x1d3   :  { %1653 = vmatpush.bf16.msra.mxu0 %v5095_v5  ;;  %1666 = vmatpush.bf16.msrb.mxu1 %v5100_v47  ;;  %v550_v5 = vld [vmem:[%s6236_s8] sm:$0xf] }
 0x1d4   :  { %v1110_v28 = vpop.f32.mrf.mxu2  ;;  %v1123_v15 = vpop.f32.mrf.mxu3  ;;  %v5227_v29 = vperm.slane %v550_v5, 3  ;;  %v5230_v38 = vperm.slane %v550_v5, 0 }
 0x1d6   :  { %1628 = vmatpush.bf16.msra.mxu2 %v5105_v9  ;;  %1641 = vmatpush.bf16.msra.mxu3 %v5109_v54  ;;  %6523 = vst [vmem:[#allocation91_spill] sm:$0xff] %v5227_v29 }
 0x1d7   :  { %1654 = vmatpush.bf16.msra.mxu0 %v5113_v30  ;;  %1667 = vmatpush.bf16.msrb.mxu1 %v5115_v22  ;;  %v1138_v16 = vpop.f32.mrf.mxu0  ;;  %6524 = vst [vmem:[#allocation92_spill] sm:$0xff] %v5230_v38  ;;  %v5232_v30 = vperm.slane %v550_v5, 1 }
 0x1d8   :  { %v1151_v50 = vpop.f32.mrf.mxu1 }
 0x1d9   :  { %6525 = vst [vmem:[#allocation93_spill] sm:$0xff] %v5232_v30 }
 0x1dc   :  { %v1112_v33 = vpop.f32.mrf.mxu2  ;;  %v1125_v0 = vpop.f32.mrf.mxu3 }
 0x216   :  { %v1348_v47 = vpop.f32.mrf.mxu0  ;;  %v1361_v61 = vpop.f32.mrf.mxu1 }
 0x217   :  { %v1362_v9 = vadd.f32 %v1361_v61, %v1149_v55 }
 0x219   :  { %v1377_v54 = vadd.f32 %v5227_v29, %v1362_v9 }
 0x21b   :  { %v4092_v22 = vmul.f32 -1.442695, %v1377_v54  ;;  %v1322_v16 = vpop.f32.mrf.mxu2  ;;  %v1335_v50 = vpop.f32.mrf.mxu3  ;;  %v1447_v54 = vunpack.c.h.bf16 %v6526_v31 }
 0x21c   :  { %v1323_v33 = vadd.f32 %v1322_v16, %v1110_v28  ;;  %v1336_v0 = vadd.f32 %v1335_v50, %v1123_v15 }
 0x21d   :  { %4294 = vpow2.f32 %v4092_v22 }
 0x21e   :  { %v1374_v41 = vadd.f32 %v5230_v38, %v1323_v33  ;;  %v1375_v18 = vadd.f32 %v5232_v30, %v1336_v0  ;;  %v1350_v7 = vpop.f32.mrf.mxu0  ;;  %v1363_v19 = vpop.f32.mrf.mxu1 }
 0x220   :  { %v4090_v23 = vmul.f32 -1.442695, %v1374_v41  ;;  %v4091_v55 = vmul.f32 -1.442695, %v1375_v18 }
 0x222   :  { %4296 = vpow2.f32 %v4090_v23 }
 0x223   :  { %v4295_v61 = vpop.eup %4294  ;;  %4298 = vpow2.f32 %v4091_v55  ;;  %v1324_v9 = vpop.f32.mrf.mxu2  ;;  %v1349_v55 = vadd.f32 %v1348_v47, %v1136_v63 }
 0x224   :  { %v1337_v29 = vpop.f32.mrf.mxu3  ;;  %v5237_v11 = vadd.f32 1.0, %v4295_v61  ;;  %v5244_v61 = vperm.slane %v550_v5, 2 }
 0x225   :  { %v6527_v29 = vld [vmem:[#allocation21_spill] sm:$0xff] }
 0x226   :  { %v5239_v28 = vpop.f32.mrf.mxu0  ;;  %v1496_v22 = vpop.f32.mrf.mxu1  ;;  %4300 = vrcp.f32 %v5237_v11  ;;  %v1444_v41 = vunpack.c.l.bf16 %v6527_v29  ;;  %v1445_v0 = vunpack.c.h.bf16 %v6527_v29  ;;  %6528 = vst [vmem:[#allocation22_spill] sm:$0xff] %v5244_v61  ;;  %v1376_v4 = vadd.f32 %v5244_v61, %v1349_v55 }
 0x227   :  { %v1503_v15 = vadd.f32 %v1496_v22, %v1447_v54  ;;  %vm1426_vm6 = vweird.f32 %v5237_v11 }
 0x228   :  { %v4297_v16 = vpop.eup %4296 }
 0x229   :  { %v4299_v50 = vpop.eup %4298  ;;  %v1381_v33 = vadd.f32 1.0, %v4297_v16  ;;  %v4095_v7 = vmul.f32 -1.442695, %v1503_v15 }
 0x22a   :  { %v1400_v18 = vadd.f32 1.0, %v4299_v50 }
 0x22b   :  { %4302 = vrcp.f32 %v1381_v33  ;;  %v1457_v19 = vpop.f32.mrf.mxu2  ;;  %vm1387_vm14 = vweird.f32 %v1381_v33 }
 0x22c   :  { %v1470_v23 = vpop.f32.mrf.mxu3  ;;  %4304 = vrcp.f32 %v1400_v18  ;;  %v1500_v9 = vadd.f32 %v1457_v19, %v1444_v41  ;;  %v5246_v15 = vpop.eup %4300  ;;  %vm1406_vm0 = vweird.f32 %v1400_v18 }
 0x22d   :  { %4306 = vpow2.f32 %v4095_v7  ;;  %v1501_v54 = vadd.f32 %v1470_v23, %v1445_v0  ;;  %v1422_v7 = vmul.f32 %v5246_v15, %v5237_v11  ;;  %v1391_v0 = vand.u32 2147483647, %v1381_v33 }
 0x22e   :  { %v1485_v22 = vpop.f32.mrf.mxu0  ;;  %v1498_v16 = vpop.f32.mrf.mxu1  ;;  %v4093_v30 = vmul.f32 -1.442695, %v1500_v9  ;;  %vm1427_vm5 = vweird.f32 %v5246_v15 }
 0x22f   :  { %v4094_v50 = vmul.f32 -1.442695, %v1501_v54  ;;  %v1393_v54 = vand.u32 2147483648, %v1381_v33  ;;  %v1412_v22 = vand.u32 2147483648, %v1400_v18  ;;  %vm1392_vm3 = vcmp.eq.f32.partialorder %v1391_v0, 8.507059e+37  ;;  %vm5278_vm7 = vmor %vm1426_vm6, %vm1427_vm5 }
 0x230   :  { %4308 = vpow2.f32 %v4093_v30 }
 0x231   :  { %v4303_v38 = vpop.eup %4302  ;;  %4310 = vpow2.f32 %v4094_v50 }
 0x232   :  { %v4305_v35 = vpop.eup %4304  ;;  %v1383_v51 = vmul.f32 %v4303_v38, %v1381_v33  ;;  %4312 = vtanh.f32 %v1376_v4  ;;  %vm1388_vm13 = vweird.f32 %v4303_v38 }
 0x233   :  { %v4307_v44 = vpop.eup %4306  ;;  %v1402_v29 = vmul.f32 %v4305_v35, %v1400_v18  ;;  %v1459_v47 = vpop.f32.mrf.mxu2  ;;  %vm1407_vm15 = vweird.f32 %v4305_v35  ;;  %vm5253_vm1 = vmor %vm1387_vm14, %vm1388_vm13 }
 0x234   :  { %v1472_v5 = vpop.f32.mrf.mxu3  ;;  %v1384_v63 = vsub.f32 1.0, %v1383_v51  ;;  %v5251_v41 = vadd.f32 1.0, %v4307_v44  ;;  %v1423_v51 = vsub.f32 1.0, %v1422_v7  ;;  %vm1408_vm2 = vmor %vm1406_vm0, %vm1407_vm15  ;;  %v1413_v7 = vor.u32 1.1754944e-38, %v1412_v22 }
 0x235   :  { %v1403_v19 = vsub.f32 1.0, %v1402_v29  ;;  %v1410_v29 = vand.u32 2147483647, %v1400_v18 }
 0x236   :  { %v1385_v23 = vmul.f32 %v4303_v38, %v1384_v63  ;;  %v4309_v30 = vpop.eup %4308  ;;  %4314 = vrcp.f32 %v5251_v41  ;;  %v1424_v18 = vmul.f32 %v5246_v15, %v1423_v51 }
 0x237   :  { %v1404_v55 = vmul.f32 %v4305_v35, %v1403_v19  ;;  %v4311_v16 = vpop.eup %4310  ;;  %v1507_v47 = vadd.f32 1.0, %v4309_v30  ;;  %v1394_v19 = vor.u32 1.1754944e-38, %v1393_v54  ;;  %vm1411_vm4 = vcmp.eq.f32.partialorder %v1410_v29, 8.507059e+37 }
 0x238   :  { %v1386_v9 = vadd.f32 %v4303_v38, %v1385_v23  ;;  %v5258_v44 = vadd.f32 1.0, %v4311_v16  ;;  %v4313_v63 = vpop.eup %4312  ;;  %v1446_v30 = vunpack.c.l.bf16 %v6526_v31  ;;  %v1432_v31 = vand.u32 2147483648, %v5237_v11 }
 0x239   :  { %v1405_v4 = vadd.f32 %v4305_v35, %v1404_v55  ;;  %4316 = vrcp.f32 %v1507_v47  ;;  %v1519_v29 = vand.u32 2147483648, %v1507_v47  ;;  %vm1513_vm10 = vweird.f32 %v1507_v47 }
 0x23a   :  { %v1390_v5 = vsel %vm5253_vm1, %v4303_v38, %v1386_v9  ;;  %4318 = vrcp.f32 %v5258_v44  ;;  %v1425_v9 = vadd.f32 %v5246_v15, %v1424_v18  ;;  %vm1532_vm13 = vweird.f32 %v5258_v44 }
 0x23b   :  { %v1409_v33 = vsel %vm1408_vm2, %v4305_v35, %v1405_v4  ;;  %v1395_v23 = vsel %vm1392_vm3, %v1394_v19, %v1390_v5  ;;  %v1502_v35 = vadd.f32 %v5239_v28, %v1446_v30  ;;  %v1517_v19 = vand.u32 2147483647, %v1507_v47 }
 0x23c   :  { %v1414_v55 = vsel %vm1411_vm4, %v1413_v7, %v1409_v33  ;;  %v1437_v61 = vmul.f32 %v4313_v63, %v1395_v23  ;;  %v5265_v36 = vpop.eup %4314  ;;  %v1429_v33 = vsel %vm5278_vm7, %v5246_v15, %v1425_v9  ;;  %v1538_v7 = vand.u32 2147483648, %v5258_v44 }
 0x23d   :  { %v1436_v16 = vmul.f32 0.0, %v1414_v55  ;;  %v1548_v50 = vmul.f32 %v5265_v36, %v5251_v41  ;;  %v1536_v23 = vand.u32 2147483647, %v5258_v44  ;;  %v1433_v55 = vor.u32 1.1754944e-38, %v1432_v31 }
 0x23e   :  { %vm1518_vm14 = vcmp.eq.f32.partialorder %v1517_v19, 8.507059e+37  ;;  %vm1553_vm1 = vweird.f32 %v5265_v36  ;;  %vm1552_vm2 = vweird.f32 %v5251_v41 }
 0x23f   :  { %v4317_v38 = vpop.eup %4316  ;;  %v5270_v54 = vadd.f32 %v1437_v61, %v1436_v16  ;;  %v1430_v61 = vand.u32 2147483647, %v5237_v11  ;;  %v1549_v30 = vsub.f32 1.0, %v1548_v50  ;;  %vm1537_vm0 = vcmp.eq.f32.partialorder %v1536_v23, 8.507059e+37  ;;  %vm1554_vm3 = vmor %vm1552_vm2, %vm1553_vm1 }
 0x240   :  { %v4319_v0 = vpop.eup %4318  ;;  %v1509_v22 = vmul.f32 %v4317_v38, %v1507_v47  ;;  %vm1514_vm8 = vweird.f32 %v4317_v38 }
 0x241   :  { %v1528_v51 = vmul.f32 %v4319_v0, %v5258_v44  ;;  %4320 = vtanh.f32 %v5270_v54  ;;  %vm1533_vm9 = vweird.f32 %v4319_v0  ;;  %vm1431_vm11 = vcmp.eq.f32.partialorder %v1430_v61, 8.507059e+37  ;;  %vm1515_vm12 = vmor %vm1513_vm10, %vm1514_vm8 }
 0x242   :  { %v1510_v28 = vsub.f32 1.0, %v1509_v22  ;;  %4322 = vtanh.f32 %v1502_v35  ;;  %v1520_v35 = vor.u32 1.1754944e-38, %v1519_v29  ;;  %v1434_v15 = vsel %vm1431_vm11, %v1433_v55, %v1429_v33  ;;  %vm1534_vm15 = vmor %vm1532_vm13, %vm1533_vm9  ;;  %v6534_v55 = vld [vmem:[#allocation16_spill] sm:$0xff] }
 0x243   :  { %v1529_v5 = vsub.f32 1.0, %v1528_v51  ;;  %v1539_v51 = vor.u32 1.1754944e-38, %v1538_v7  ;;  %v1550_v47 = vmul.f32 %v5265_v36, %v1549_v30  ;;  %v6535_v30 = vld [vmem:[#allocation17_spill] sm:$0xff] }
 0x244   :  { %v1511_v63 = vmul.f32 %v4317_v38, %v1510_v28 }
 0x245   :  { %v1530_v18 = vmul.f32 %v4319_v0, %v1529_v5 }
 0x246   :  { %v1512_v16 = vadd.f32 %v4317_v38, %v1511_v63 }
 0x247   :  { %v4321_v11 = vpop.eup %4320  ;;  %v1531_v22 = vadd.f32 %v4319_v0, %v1530_v18 }
 0x248   :  { %v1516_v9 = vsel %vm1515_vm12, %v4317_v38, %v1512_v16  ;;  %v1440_v28 = vmul.f32 %v4321_v11, %v1434_v15  ;;  %v4323_v4 = vpop.eup %4322  ;;  %v1551_v38 = vadd.f32 %v5265_v36, %v1550_v47  ;;  %v6536_v16 = vld [vmem:[#allocation18_spill] sm:$0xff]  ;;  %v6537_v11 = vld [vmem:[#allocation19_spill] sm:$0xff]  ;;  %v6540_v15 = vld [vmem:[#allocation24_spill] sm:$0xff] }
 0x249   :  { %v1521_v5 = vsel %vm1518_vm14, %v1520_v35, %v1516_v9  ;;  %v1535_v31 = vsel %vm1534_vm15, %v4319_v0, %v1531_v22  ;;  %v1558_v0 = vand.u32 2147483648, %v5251_v41  ;;  %v6538_v35 = vld [vmem:[#allocation20_spill] sm:$0xff]  ;;  %v6539_v22 = vld [vmem:[#allocation23_spill] sm:$0xff]  ;;  %v6541_v9 = vld [vmem:[#allocation25_spill] sm:$0xff] }
 0x24a   :  { %v1563_v50 = vmul.f32 %v4323_v4, %v1521_v5  ;;  %v1540_v61 = vsel %vm1537_vm0, %v1539_v51, %v1535_v31  ;;  %v1568_v63 = vpack.c.bf16 %v1440_v28, %v1440_v28  ;;  %v1555_v33 = vsel %vm1554_vm3, %v5265_v36, %v1551_v38  ;;  %v6542_v51 = vld [vmem:[#allocation26_spill] sm:$0xff]  ;;  %v6543_v28 = vld [vmem:[#allocation27_spill] sm:$0xff]  ;;  %v6544_v4 = vld [vmem:[#allocation28_spill] sm:$0xff] }
 0x24b   :  { %v1562_v29 = vmul.f32 %v1540_v61, %v5156_v53  ;;  %v1556_v53 = vand.u32 2147483647, %v5251_v41  ;;  %v1559_v19 = vor.u32 1.1754944e-38, %v1558_v0  ;;  %v6533_v41 = vld [vmem:[#allocation15_spill] sm:$0xff]  ;;  %v6545_v5 = vld [vmem:[#allocation29_spill] sm:$0xff]  ;;  %v6546_v31 = vld [vmem:[#allocation30_spill] sm:$0xff] }
 0x24c   :  { %1577 = vmatmul.bf16.vlgmr.msrb.gmra.mxu2 %v1568_v63  ;;  %1590 = vmatmul.bf16.vlgmr.msrb.gmra.mxu3 %v1568_v63  ;;  %v6547_v47 = vld [vmem:[#allocation33_spill] sm:$0xff]  ;;  %v6549_v61 = vld [vmem:[#allocation35_spill] sm:$0xff]  ;;  %v6552_v38 = vld [vmem:[#allocation38_spill] sm:$0xff] }
 0x24d   :  { %v5292_v44 = vadd.f32 %v1563_v50, %v1562_v29  ;;  %1603 = vmatmul.bf16.vlgmr.msrb.gmra.mxu0 %v1568_v63  ;;  %1616 = vmatmul.bf16.vlgmr.msra.gmra.mxu1 %v1568_v63  ;;  %vm1557_vm4 = vcmp.eq.f32.partialorder %v1556_v53, 8.507059e+37  ;;  %v6548_v50 = vld [vmem:[#allocation34_spill] sm:$0xff]  ;;  %v6550_v63 = vld [vmem:[#allocation36_spill] sm:$0xff]  ;;  %v6551_v29 = vld [vmem:[#allocation37_spill] sm:$0xff] }
 0x24e   :  { %1747 = vmatpush.bf16.msrb.mxu2 %v4732_v43  ;;  %1760 = vmatpush.bf16.msrb.mxu3 %v4729_v39  ;;  %v1560_v18 = vsel %vm1557_vm4, %v1559_v19, %v1555_v33  ;;  %v6553_v0 = vld [vmem:[#allocation39_spill] sm:$0xff]  ;;  %v6554_v53 = vld [vmem:[#allocation40_spill] sm:$0xff] }
 0x24f   :  { %4324 = vtanh.f32 %v5292_v44  ;;  %1773 = vmatpush.bf16.msrb.mxu0 %v4751_v60  ;;  %1786 = vmatpush.bf16.msra.mxu1 %v4793_v57  ;;  %v6555_v33 = vld [vmem:[#allocation43_spill] sm:$0xff]  ;;  %v6556_v19 = vld [vmem:[#allocation44_spill] sm:$0xff] }
 0x252   :  { %1748 = vmatpush.bf16.msrb.mxu2 %v4738_v48  ;;  %1761 = vmatpush.bf16.msrb.mxu3 %v4734_v45 }
 0x253   :  { %1774 = vmatpush.bf16.msrb.mxu0 %v4762_v10  ;;  %1787 = vmatpush.bf16.msra.mxu1 %v4802_v2 }
 0x255   :  { %v4325_v7 = vpop.eup %4324 }
 0x256   :  { %v1566_v23 = vmul.f32 %v4325_v7, %v1560_v18  ;;  %1749 = vmatpush.bf16.msrb.mxu2 %v4749_v56  ;;  %1762 = vmatpush.bf16.msrb.mxu3 %v4741_v52  ;;  %v6557_v7 = vld [vmem:[#allocation45_spill] sm:$0xff]  ;;  %v6558_v18 = vld [vmem:[#allocation46_spill] sm:$0xff] }
 0x257   :  { %1775 = vmatpush.bf16.msrb.mxu0 %v4771_v20  ;;  %1788 = vmatpush.bf16.msra.mxu1 %v4811_v13 }
 0x258   :  { %v1567_v36 = vpack.c.bf16 %v1566_v23, %v1566_v23  ;;  %v6559_v23 = vld [vmem:[#allocation47_spill] sm:$0xff] }
 0x25a   :  { %1750 = vmatpush.bf16.msrb.mxu2 %v4760_v8  ;;  %1763 = vmatpush.bf16.msrb.mxu3 %v4754_v62 }
 0x25b   :  { %1776 = vmatpush.bf16.msrb.mxu0 %v4785_v37  ;;  %1789 = vmatpush.bf16.msra.mxu1 %v4820_v27 }
 0x25c   :  { %1629 = vmatmul.bf16.vlgmr.msra.gmra.mxu2 %v1567_v36  ;;  %1642 = vmatmul.bf16.vlgmr.msra.gmra.mxu3 %v1567_v36 }
 0x25d   :  { %1655 = vmatmul.bf16.vlgmr.msra.gmra.mxu0 %v1567_v36  ;;  %1668 = vmatmul.bf16.vlgmr.msrb.gmra.mxu1 %v1567_v36 }
 0x25e   :  { %1751 = vmatpush.bf16.msrb.mxu2 %v4768_v17  ;;  %1764 = vmatpush.bf16.msrb.mxu3 %v4766_v14 }
 0x25f   :  { %1777 = vmatpush.bf16.msrb.mxu0 %v4791_v49  ;;  %1790 = vmatpush.bf16.msra.mxu1 %v4824_v34 }
 0x262   :  { %1752 = vmatpush.bf16.msrb.mxu2 %v4774_v24  ;;  %1765 = vmatpush.bf16.msrb.mxu3 %v4777_v26 }
 0x263   :  { %1778 = vmatpush.bf16.msrb.mxu0 %v4800_v1  ;;  %1791 = vmatpush.bf16.msra.mxu1 %v4827_v40 }
 0x266   :  { %1753 = vmatpush.bf16.msrb.mxu2 %v4783_v32  ;;  %1766 = vmatpush.bf16.msrb.mxu3 %v4796_v59 }
 0x267   :  { %1779 = vmatpush.bf16.msrb.mxu0 %v4808_v12  ;;  %1792 = vmatpush.bf16.msra.mxu1 %v4830_v46 }
 0x26a   :  { %1754 = vmatpush.bf16.msrb.mxu2 %v4789_v42  ;;  %1767 = vmatpush.bf16.msrb.mxu3 %v4805_v6 }
 0x26b   :  { %1780 = vmatpush.bf16.msrb.mxu0 %v4817_v25  ;;  %1793 = vmatpush.bf16.msra.mxu1 %v4835_v58 }
 0x26d   :  { %1755 = vmatmul.bf16.vlgmr.msrb.gmra.mxu2 %v1567_v36  ;;  %1768 = vmatmul.bf16.vlgmr.msrb.gmra.mxu3 %v1567_v36 }
 0x26e   :  { %1868 = vmatpush.bf16.msra.mxu2 %v4853_v21  ;;  %1881 = vmatpush.bf16.msra.mxu3 %v6471_v3 }
 0x26f   :  { %1781 = vmatmul.bf16.vlgmr.msrb.gmra.mxu0 %v1567_v36  ;;  %1794 = vmatmul.bf16.vlgmr.msra.gmra.mxu1 %v1567_v36  ;;  %v6560_v36 = vld [vmem:[#allocation48_spill] sm:$0xff] }
 0x270   :  { %1894 = vmatpush.bf16.msra.mxu0 %v6533_v41  ;;  %1907 = vmatpush.bf16.msrb.mxu1 %v6534_v55 }
 0x272   :  { %1869 = vmatpush.bf16.msra.mxu2 %v6535_v30  ;;  %1882 = vmatpush.bf16.msra.mxu3 %v6536_v16 }
 0x274   :  { %1895 = vmatpush.bf16.msra.mxu0 %v6537_v11  ;;  %1908 = vmatpush.bf16.msrb.mxu1 %v6538_v35  ;;  %v6600_v11 = vld [vmem:[#allocation22_spill] sm:$0xff] }
 0x276   :  { %1870 = vmatpush.bf16.msra.mxu2 %v6539_v22  ;;  %1883 = vmatpush.bf16.msra.mxu3 %v6540_v15  ;;  %v6597_v15 = vld [vmem:[#allocation93_spill] sm:$0xff] }
 0x278   :  { %1896 = vmatpush.bf16.msra.mxu0 %v6541_v9  ;;  %1909 = vmatpush.bf16.msrb.mxu1 %v6542_v51 }
 0x27a   :  { %1871 = vmatpush.bf16.msra.mxu2 %v6543_v28  ;;  %1884 = vmatpush.bf16.msra.mxu3 %v6544_v4 }
 0x27c   :  { %1897 = vmatpush.bf16.msra.mxu0 %v6545_v5  ;;  %1910 = vmatpush.bf16.msrb.mxu1 %v6546_v31 }
 0x27e   :  { %1872 = vmatpush.bf16.msra.mxu2 %v6547_v47  ;;  %1885 = vmatpush.bf16.msra.mxu3 %v6548_v50 }
 0x280   :  { %1898 = vmatpush.bf16.msra.mxu0 %v6549_v61  ;;  %1911 = vmatpush.bf16.msrb.mxu1 %v6550_v63  ;;  %v6561_v63 = vld [vmem:[#allocation52_spill] sm:$0xff] }
 0x282   :  { %1873 = vmatpush.bf16.msra.mxu2 %v6551_v29  ;;  %1886 = vmatpush.bf16.msra.mxu3 %v6552_v38  ;;  %v6562_v29 = vld [vmem:[#allocation54_spill] sm:$0xff]  ;;  %v6563_v38 = vld [vmem:[#allocation49_spill] sm:$0xff] }
 0x284   :  { %1899 = vmatpush.bf16.msra.mxu0 %v6553_v0  ;;  %1912 = vmatpush.bf16.msrb.mxu1 %v6554_v53  ;;  %v6564_v0 = vld [vmem:[#allocation50_spill] sm:$0xff]  ;;  %v6565_v53 = vld [vmem:[#allocation55_spill] sm:$0xff] }
 0x286   :  { %1874 = vmatpush.bf16.msra.mxu2 %v6555_v33  ;;  %1887 = vmatpush.bf16.msra.mxu3 %v6556_v19  ;;  %v6566_v33 = vld [vmem:[#allocation56_spill] sm:$0xff]  ;;  %v6567_v19 = vld [vmem:[#allocation57_spill] sm:$0xff] }
 0x288   :  { %1900 = vmatpush.bf16.msra.mxu0 %v6557_v7  ;;  %1913 = vmatpush.bf16.msrb.mxu1 %v6558_v18  ;;  %v6568_v7 = vld [vmem:[#allocation58_spill] sm:$0xff]  ;;  %v6569_v18 = vld [vmem:[#allocation59_spill] sm:$0xff] }
 0x28a   :  { %1875 = vmatpush.bf16.msra.mxu2 %v6559_v23  ;;  %1888 = vmatpush.bf16.msra.mxu3 %v6560_v36  ;;  %v6570_v23 = vld [vmem:[#allocation60_spill] sm:$0xff]  ;;  %v6571_v36 = vld [vmem:[#allocation61_spill] sm:$0xff] }
 0x28c   :  { %1901 = vmatpush.bf16.msra.mxu0 %v6563_v38  ;;  %1914 = vmatpush.bf16.msrb.mxu1 %v6564_v0  ;;  %v6574_v38 = vld [vmem:[#allocation65_spill] sm:$0xff]  ;;  %v6575_v0 = vld [vmem:[#allocation67_spill] sm:$0xff] }
 0x28e   :  { %1920 = vmatpush.bf16.msrb.mxu2 %v6561_v63  ;;  %1933 = vmatpush.bf16.msrb.mxu3 %v6562_v29  ;;  %v6572_v63 = vld [vmem:[#allocation62_spill] sm:$0xff]  ;;  %v6573_v29 = vld [vmem:[#allocation63_spill] sm:$0xff] }
 0x290   :  { %1946 = vmatpush.bf16.msrb.mxu0 %v6565_v53  ;;  %1959 = vmatpush.bf16.msra.mxu1 %v6566_v33  ;;  %v6576_v53 = vld [vmem:[#allocation68_spill] sm:$0xff]  ;;  %v6577_v33 = vld [vmem:[#allocation69_spill] sm:$0xff] }
 0x292   :  { %1921 = vmatpush.bf16.msrb.mxu2 %v6567_v19  ;;  %1934 = vmatpush.bf16.msrb.mxu3 %v6568_v7  ;;  %v6578_v19 = vld [vmem:[#allocation70_spill] sm:$0xff]  ;;  %v6579_v7 = vld [vmem:[#allocation71_spill] sm:$0xff] }
 0x294   :  { %1947 = vmatpush.bf16.msrb.mxu0 %v6569_v18  ;;  %1960 = vmatpush.bf16.msra.mxu1 %v6570_v23  ;;  %v6580_v18 = vld [vmem:[#allocation72_spill] sm:$0xff]  ;;  %v6581_v23 = vld [vmem:[#allocation73_spill] sm:$0xff] }
 0x296   :  { %1922 = vmatpush.bf16.msrb.mxu2 %v6571_v36  ;;  %1935 = vmatpush.bf16.msrb.mxu3 %v6572_v63  ;;  %v6582_v36 = vld [vmem:[#allocation75_spill] sm:$0xff]  ;;  %v6583_v63 = vld [vmem:[#allocation77_spill] sm:$0xff] }
 0x298   :  { %1948 = vmatpush.bf16.msrb.mxu0 %v6573_v29  ;;  %1961 = vmatpush.bf16.msra.mxu1 %v6574_v38  ;;  %v6584_v29 = vld [vmem:[#allocation78_spill] sm:$0xff]  ;;  %v6585_v38 = vld [vmem:[#allocation79_spill] sm:$0xff] }
 0x29a   :  { %1923 = vmatpush.bf16.msrb.mxu2 %v6575_v0  ;;  %1936 = vmatpush.bf16.msrb.mxu3 %v6576_v53  ;;  %v6586_v0 = vld [vmem:[#allocation80_spill] sm:$0xff]  ;;  %v6587_v53 = vld [vmem:[#allocation81_spill] sm:$0xff] }
 0x29c   :  { %1949 = vmatpush.bf16.msrb.mxu0 %v6577_v33  ;;  %1962 = vmatpush.bf16.msra.mxu1 %v6578_v19  ;;  %v6588_v33 = vld [vmem:[#allocation82_spill] sm:$0xff]  ;;  %v6589_v19 = vld [vmem:[#allocation83_spill] sm:$0xff] }
 0x29e   :  { %1924 = vmatpush.bf16.msrb.mxu2 %v6579_v7  ;;  %1937 = vmatpush.bf16.msrb.mxu3 %v6580_v18  ;;  %v6590_v7 = vld [vmem:[#allocation85_spill] sm:$0xff]  ;;  %v6591_v18 = vld [vmem:[#allocation87_spill] sm:$0xff] }
 0x2a0   :  { %1950 = vmatpush.bf16.msrb.mxu0 %v6581_v23  ;;  %1963 = vmatpush.bf16.msra.mxu1 %v6582_v36  ;;  %v6592_v23 = vld [vmem:[#allocation88_spill] sm:$0xff]  ;;  %v6593_v36 = vld [vmem:[#allocation89_spill] sm:$0xff] }
 0x2a2   :  { %1925 = vmatpush.bf16.msrb.mxu2 %v6583_v63  ;;  %1938 = vmatpush.bf16.msrb.mxu3 %v6584_v29  ;;  %v6594_v63 = vld [vmem:[#allocation90_spill] sm:$0xff] }
 0x2a4   :  { %1951 = vmatpush.bf16.msrb.mxu0 %v6585_v38  ;;  %1964 = vmatpush.bf16.msra.mxu1 %v6586_v0 }
 0x2a6   :  { %1926 = vmatpush.bf16.msrb.mxu2 %v6587_v53  ;;  %1939 = vmatpush.bf16.msrb.mxu3 %v6588_v33 }
 0x2a8   :  { %1952 = vmatpush.bf16.msrb.mxu0 %v6589_v19  ;;  %1965 = vmatpush.bf16.msra.mxu1 %v6590_v7  ;;  %v6595_v7 = vld [vmem:[#allocation91_spill] sm:$0xff] }
 0x2aa   :  { %1927 = vmatpush.bf16.msrb.mxu2 %v6591_v18  ;;  %1940 = vmatpush.bf16.msrb.mxu3 %v6592_v23 }
 0x2ac   :  { %1953 = vmatpush.bf16.msrb.mxu0 %v6593_v36  ;;  %1966 = vmatpush.bf16.msra.mxu1 %v6594_v63  ;;  %v6596_v63 = vld [vmem:[#allocation92_spill] sm:$0xff] }
 0x2ca   :  { %v1604_v29 = vpop.f32.mrf.mxu0  ;;  %v1617_v38 = vpop.f32.mrf.mxu1 }
 0x2cf   :  { %v1578_v61 = vpop.f32.mrf.mxu2  ;;  %v1591_v0 = vpop.f32.mrf.mxu3 }
 0x2d2   :  { %v1606_v50 = vpop.f32.mrf.mxu0  ;;  %v1619_v53 = vpop.f32.mrf.mxu1 }
 0x2d7   :  { %v1580_v47 = vpop.f32.mrf.mxu2  ;;  %v1593_v33 = vpop.f32.mrf.mxu3 }
 0x2da   :  { %v1656_v31 = vpop.f32.mrf.mxu0  ;;  %v1669_v19 = vpop.f32.mrf.mxu1 }
 0x2db   :  { %v1670_v5 = vadd.f32 %v1669_v19, %v1617_v38 }
 0x2dd   :  { %v1676_v4 = vadd.f32 %v1670_v5, %v6595_v7 }
 0x2df   :  { %v4098_v18 = vmul.f32 -1.442695, %v1676_v4  ;;  %v1630_v28 = vpop.f32.mrf.mxu2  ;;  %v1643_v23 = vpop.f32.mrf.mxu3  ;;  %v6598_v4 = vld [vmem:[#allocation32_spill] sm:$0xff] }
 0x2e0   :  { %v1631_v51 = vadd.f32 %v1630_v28, %v1578_v61  ;;  %v1644_v36 = vadd.f32 %v1643_v23, %v1591_v0  ;;  %v1746_v7 = vunpack.c.h.bf16 %v6598_v4 }
 0x2e1   :  { %4326 = vpow2.f32 %v4098_v18 }
 0x2e2   :  { %v1673_v9 = vadd.f32 %v1631_v51, %v6596_v63  ;;  %v1674_v22 = vadd.f32 %v1644_v36, %v6597_v15  ;;  %v1658_v35 = vpop.f32.mrf.mxu0  ;;  %v1671_v50 = vpop.f32.mrf.mxu1 }
 0x2e4   :  { %v4096_v53 = vmul.f32 -1.442695, %v1673_v9  ;;  %v4097_v47 = vmul.f32 -1.442695, %v1674_v22  ;;  %v6599_v9 = vld [vmem:[#allocation31_spill] sm:$0xff] }
 0x2e5   :  { %v1743_v36 = vunpack.c.l.bf16 %v6599_v9 }
 0x2e6   :  { %4328 = vpow2.f32 %v4096_v53  ;;  %v1744_v53 = vunpack.c.h.bf16 %v6599_v9 }
 0x2e7   :  { %v4327_v33 = vpop.eup %4326  ;;  %4330 = vpow2.f32 %v4097_v47  ;;  %v1632_v38 = vpop.f32.mrf.mxu2 }
 0x2e8   :  { %v1645_v19 = vpop.f32.mrf.mxu3  ;;  %v5400_v5 = vadd.f32 1.0, %v4327_v33  ;;  %v1657_v33 = vadd.f32 %v1656_v31, %v1604_v29 }
 0x2ea   :  { %4332 = vrcp.f32 %v5400_v5  ;;  %v1675_v16 = vadd.f32 %v1657_v33, %v6600_v11  ;;  %vm1725_vm14 = vweird.f32 %v5400_v5 }
 0x2ec   :  { %v5403_v28 = vpop.f32.mrf.mxu0  ;;  %v1795_v61 = vpop.f32.mrf.mxu1 }
 0x2ed   :  { %v4329_v0 = vpop.eup %4328  ;;  %v1802_v51 = vadd.f32 %v1795_v61, %v1746_v7 }
 0x2ee   :  { %v4331_v18 = vpop.eup %4330  ;;  %v1680_v23 = vadd.f32 1.0, %v4329_v0 }
 0x2ef   :  { %v1699_v35 = vadd.f32 1.0, %v4331_v18  ;;  %v4101_v22 = vmul.f32 -1.442695, %v1802_v51 }
 0x2f0   :  { %4334 = vrcp.f32 %v1680_v23  ;;  %v1756_v50 = vpop.f32.mrf.mxu2  ;;  %v1769_v47 = vpop.f32.mrf.mxu3  ;;  %vm1686_vm6 = vweird.f32 %v1680_v23 }
 0x2f1   :  { %4336 = vrcp.f32 %v1699_v35  ;;  %v1799_v38 = vadd.f32 %v1756_v50, %v1743_v36  ;;  %v1800_v19 = vadd.f32 %v1769_v47, %v1744_v53  ;;  %v5408_v61 = vpop.eup %4332  ;;  %v1690_v53 = vand.u32 2147483647, %v1680_v23 }
 0x2f2   :  { %4338 = vpow2.f32 %v4101_v22  ;;  %vm1705_vm8 = vweird.f32 %v1699_v35  ;;  %vm1726_vm13 = vweird.f32 %v5408_v61 }
 0x2f3   :  { %v4099_v0 = vmul.f32 -1.442695, %v1799_v38  ;;  %v4100_v63 = vmul.f32 -1.442695, %v1800_v19  ;;  %v1692_v19 = vand.u32 2147483648, %v1680_v23  ;;  %vm1691_vm11 = vcmp.eq.f32.partialorder %v1690_v53, 8.507059e+37  ;;  %vm5441_vm15 = vmor %vm1725_vm14, %vm1726_vm13 }
 0x2f4   :  { %v1784_v15 = vpop.f32.mrf.mxu0  ;;  %v1797_v7 = vpop.f32.mrf.mxu1 }
 0x2f5   :  { %4340 = vpow2.f32 %v4099_v0  ;;  %v1721_v15 = vmul.f32 %v5408_v61, %v5400_v5 }
 0x2f6   :  { %v4335_v18 = vpop.eup %4334  ;;  %4342 = vpow2.f32 %v4100_v63 }
 0x2f7   :  { %v4337_v51 = vpop.eup %4336  ;;  %v1682_v30 = vmul.f32 %v4335_v18, %v1680_v23  ;;  %4344 = vtanh.f32 %v1675_v16  ;;  %vm1687_vm5 = vweird.f32 %v4335_v18  ;;  %v1722_v7 = vsub.f32 1.0, %v1721_v15 }
 0x2f8   :  { %v4339_v55 = vpop.eup %4338  ;;  %v1701_v41 = vmul.f32 %v4337_v51, %v1699_v35  ;;  %v1758_v22 = vpop.f32.mrf.mxu2  ;;  %vm1706_vm7 = vweird.f32 %v4337_v51  ;;  %vm5415_vm9 = vmor %vm1686_vm6, %vm1687_vm5  ;;  %v1709_v16 = vand.u32 2147483647, %v1699_v35 }
 0x2f9   :  { %v1683_v9 = vsub.f32 1.0, %v1682_v30  ;;  %v1771_v31 = vpop.f32.mrf.mxu3  ;;  %v5413_v50 = vadd.f32 1.0, %v4339_v55  ;;  %v1711_v30 = vand.u32 2147483648, %v1699_v35  ;;  %vm1707_vm10 = vmor %vm1705_vm8, %vm1706_vm7  ;;  %v1723_v35 = vmul.f32 %v5408_v61, %v1722_v7 }
 0x2fa   :  { %v1702_v29 = vsub.f32 1.0, %v1701_v41  ;;  %vm1710_vm12 = vcmp.eq.f32.partialorder %v1709_v16, 8.507059e+37 }
 0x2fb   :  { %v1684_v36 = vmul.f32 %v4335_v18, %v1683_v9  ;;  %v4341_v33 = vpop.eup %4340  ;;  %4346 = vrcp.f32 %v5413_v50  ;;  %v1712_v15 = vor.u32 1.1754944e-38, %v1711_v30 }
 0x2fc   :  { %v1703_v47 = vmul.f32 %v4337_v51, %v1702_v29  ;;  %v4343_v63 = vpop.eup %4342  ;;  %v1806_v9 = vadd.f32 1.0, %v4341_v33  ;;  %v1693_v29 = vor.u32 1.1754944e-38, %v1692_v19  ;;  %v1745_v33 = vunpack.c.l.bf16 %v6598_v4 }
 0x2fd   :  { %v1685_v38 = vadd.f32 %v4335_v18, %v1684_v36  ;;  %v5420_v55 = vadd.f32 1.0, %v4343_v63  ;;  %v4345_v31 = vpop.eup %4344 }
 0x2fe   :  { %v1704_v41 = vadd.f32 %v4337_v51, %v1703_v47  ;;  %4348 = vrcp.f32 %v1806_v9  ;;  %v1818_v16 = vand.u32 2147483648, %v1806_v9  ;;  %vm1812_vm2 = vweird.f32 %v1806_v9 }
 0x2ff   :  { %v1689_v22 = vsel %vm5415_vm9, %v4335_v18, %v1685_v38  ;;  %4350 = vrcp.f32 %v5420_v55  ;;  %v1724_v38 = vadd.f32 %v5408_v61, %v1723_v35  ;;  %vm1831_vm5 = vweird.f32 %v5420_v55 }
 0x300   :  { %v1708_v23 = vsel %vm1707_vm10, %v4337_v51, %v1704_v41  ;;  %v1694_v36 = vsel %vm1691_vm11, %v1693_v29, %v1689_v22  ;;  %v1801_v51 = vadd.f32 %v5403_v28, %v1745_v33  ;;  %v1816_v29 = vand.u32 2147483647, %v1806_v9 }
 0x301   :  { %v1713_v47 = vsel %vm1710_vm12, %v1712_v15, %v1708_v23  ;;  %v1736_v11 = vmul.f32 %v4345_v31, %v1694_v36  ;;  %v5428_v0 = vpop.eup %4346  ;;  %v1728_v23 = vsel %vm5441_vm15, %v5408_v61, %v1724_v38  ;;  %v1837_v15 = vand.u32 2147483648, %v5420_v55 }
 0x302   :  { %v1735_v63 = vmul.f32 %v1713_v47, %v5270_v54  ;;  %v1731_v54 = vand.u32 2147483648, %v5400_v5  ;;  %v1847_v4 = vmul.f32 %v5428_v0, %v5413_v50  ;;  %v1835_v36 = vand.u32 2147483647, %v5420_v55 }
 0x303   :  { %vm1817_vm6 = vcmp.eq.f32.partialorder %v1816_v29, 8.507059e+37  ;;  %vm1852_vm9 = vweird.f32 %v5428_v0  ;;  %vm1851_vm10 = vweird.f32 %v5413_v50 }
 0x304   :  { %v4349_v18 = vpop.eup %4348  ;;  %v5433_v53 = vadd.f32 %v1736_v11, %v1735_v63  ;;  %v1729_v11 = vand.u32 2147483647, %v5400_v5  ;;  %v1732_v47 = vor.u32 1.1754944e-38, %v1731_v54  ;;  %v1848_v33 = vsub.f32 1.0, %v1847_v4  ;;  %vm1853_vm11 = vmor %vm1851_vm10, %vm1852_vm9 }
 0x305   :  { %v4351_v19 = vpop.eup %4350  ;;  %v1808_v30 = vmul.f32 %v4349_v18, %v1806_v9  ;;  %vm1813_vm0 = vweird.f32 %v4349_v18  ;;  %vm1836_vm8 = vcmp.eq.f32.partialorder %v1835_v36, 8.507059e+37 }
 0x306   :  { %v1827_v7 = vmul.f32 %v4351_v19, %v5420_v55  ;;  %4352 = vtanh.f32 %v5433_v53  ;;  %vm1832_vm1 = vweird.f32 %v4351_v19  ;;  %vm1730_vm3 = vcmp.eq.f32.partialorder %v1729_v11, 8.507059e+37  ;;  %vm1814_vm4 = vmor %vm1812_vm2, %vm1813_vm0 }
 0x307   :  { %v1809_v28 = vsub.f32 1.0, %v1808_v30  ;;  %4354 = vtanh.f32 %v1801_v51  ;;  %v1819_v51 = vor.u32 1.1754944e-38, %v1818_v16  ;;  %v1733_v61 = vsel %vm1730_vm3, %v1732_v47, %v1728_v23  ;;  %vm1833_vm7 = vmor %vm1831_vm5, %vm1832_vm1  ;;  %v6606_v47 = vld [vmem:[#allocation16_spill] sm:$0xff] }
 0x308   :  { %v1828_v22 = vsub.f32 1.0, %v1827_v7  ;;  %v1838_v7 = vor.u32 1.1754944e-38, %v1837_v15  ;;  %v1849_v9 = vmul.f32 %v5428_v0, %v1848_v33  ;;  %v6607_v33 = vld [vmem:[#allocation17_spill] sm:$0xff] }
 0x309   :  { %v1810_v31 = vmul.f32 %v4349_v18, %v1809_v28 }
 0x30a   :  { %v1829_v35 = vmul.f32 %v4351_v19, %v1828_v22 }
 0x30b   :  { %v1811_v63 = vadd.f32 %v4349_v18, %v1810_v31 }
 0x30c   :  { %v4353_v5 = vpop.eup %4352  ;;  %v1830_v30 = vadd.f32 %v4351_v19, %v1829_v35 }
 0x30d   :  { %v1815_v38 = vsel %vm1814_vm4, %v4349_v18, %v1811_v63  ;;  %v1739_v28 = vmul.f32 %v4353_v5, %v1733_v61  ;;  %v4355_v41 = vpop.eup %4354  ;;  %v1850_v18 = vadd.f32 %v5428_v0, %v1849_v9  ;;  %v6608_v63 = vld [vmem:[#allocation18_spill] sm:$0xff]  ;;  %v6609_v5 = vld [vmem:[#allocation19_spill] sm:$0xff]  ;;  %v6612_v61 = vld [vmem:[#allocation24_spill] sm:$0xff] }
 0x30e   :  { %v1820_v22 = vsel %vm1817_vm6, %v1819_v51, %v1815_v38  ;;  %v1834_v54 = vsel %vm1833_vm7, %v4351_v19, %v1830_v30  ;;  %v1857_v19 = vand.u32 2147483648, %v5413_v50  ;;  %v6610_v51 = vld [vmem:[#allocation20_spill] sm:$0xff]  ;;  %v6611_v30 = vld [vmem:[#allocation23_spill] sm:$0xff]  ;;  %v6613_v38 = vld [vmem:[#allocation25_spill] sm:$0xff] }
 0x30f   :  { %v1862_v4 = vmul.f32 %v4355_v41, %v1820_v22  ;;  %v1839_v11 = vsel %vm1836_vm8, %v1838_v7, %v1834_v54  ;;  %v1867_v31 = vpack.c.bf16 %v1739_v28, %v1739_v28  ;;  %v1854_v23 = vsel %vm1853_vm11, %v5428_v0, %v1850_v18  ;;  %v6605_v0 = vld [vmem:[#allocation15_spill] sm:$0xff]  ;;  %v6614_v7 = vld [vmem:[#allocation26_spill] sm:$0xff]  ;;  %v6616_v41 = vld [vmem:[#allocation28_spill] sm:$0xff] }
 0x310   :  { %v1861_v16 = vmul.f32 %v1839_v11, %v5292_v44  ;;  %v1855_v44 = vand.u32 2147483647, %v5413_v50  ;;  %v1858_v29 = vor.u32 1.1754944e-38, %v1857_v19  ;;  %v6615_v28 = vld [vmem:[#allocation27_spill] sm:$0xff]  ;;  %v6617_v22 = vld [vmem:[#allocation29_spill] sm:$0xff]  ;;  %v6618_v54 = vld [vmem:[#allocation30_spill] sm:$0xff] }
 0x311   :  { %1876 = vmatmul.bf16.vlgmr.msra.gmra.mxu2 %v1867_v31  ;;  %1889 = vmatmul.bf16.vlgmr.msra.gmra.mxu3 %v1867_v31  ;;  %v6619_v9 = vld [vmem:[#allocation33_spill] sm:$0xff]  ;;  %v6621_v11 = vld [vmem:[#allocation35_spill] sm:$0xff]  ;;  %v6624_v18 = vld [vmem:[#allocation38_spill] sm:$0xff] }
 0x312   :  { %v5455_v55 = vadd.f32 %v1862_v4, %v1861_v16  ;;  %1902 = vmatmul.bf16.vlgmr.msra.gmra.mxu0 %v1867_v31  ;;  %1915 = vmatmul.bf16.vlgmr.msrb.gmra.mxu1 %v1867_v31  ;;  %vm1856_vm12 = vcmp.eq.f32.partialorder %v1855_v44, 8.507059e+37  ;;  %v6620_v4 = vld [vmem:[#allocation34_spill] sm:$0xff]  ;;  %v6622_v31 = vld [vmem:[#allocation36_spill] sm:$0xff]  ;;  %v6623_v16 = vld [vmem:[#allocation37_spill] sm:$0xff] }
 0x313   :  { %2046 = vmatpush.bf16.msra.mxu2 %v4732_v43  ;;  %2059 = vmatpush.bf16.msra.mxu3 %v4729_v39  ;;  %v1859_v35 = vsel %vm1856_vm12, %v1858_v29, %v1854_v23  ;;  %v6625_v19 = vld [vmem:[#allocation39_spill] sm:$0xff]  ;;  %v6626_v44 = vld [vmem:[#allocation40_spill] sm:$0xff] }
 0x314   :  { %4356 = vtanh.f32 %v5455_v55  ;;  %2072 = vmatpush.bf16.msra.mxu0 %v4751_v60  ;;  %2085 = vmatpush.bf16.msrb.mxu1 %v4793_v57  ;;  %v6627_v23 = vld [vmem:[#allocation43_spill] sm:$0xff]  ;;  %v6628_v29 = vld [vmem:[#allocation44_spill] sm:$0xff] }
 0x317   :  { %2047 = vmatpush.bf16.msra.mxu2 %v4738_v48  ;;  %2060 = vmatpush.bf16.msra.mxu3 %v4734_v45 }
 0x318   :  { %2073 = vmatpush.bf16.msra.mxu0 %v4762_v10  ;;  %2086 = vmatpush.bf16.msrb.mxu1 %v4802_v2 }
 0x31a   :  { %v4357_v15 = vpop.eup %4356 }
 0x31b   :  { %v1865_v36 = vmul.f32 %v4357_v15, %v1859_v35  ;;  %2048 = vmatpush.bf16.msra.mxu2 %v4749_v56  ;;  %2061 = vmatpush.bf16.msra.mxu3 %v4741_v52  ;;  %v6629_v15 = vld [vmem:[#allocation45_spill] sm:$0xff]  ;;  %v6630_v35 = vld [vmem:[#allocation46_spill] sm:$0xff] }
 0x31c   :  { %2074 = vmatpush.bf16.msra.mxu0 %v4771_v20  ;;  %2087 = vmatpush.bf16.msrb.mxu1 %v4811_v13 }
 0x31d   :  { %v1866_v50 = vpack.c.bf16 %v1865_v36, %v1865_v36  ;;  %v6631_v36 = vld [vmem:[#allocation47_spill] sm:$0xff] }
 0x31f   :  { %2049 = vmatpush.bf16.msra.mxu2 %v4760_v8  ;;  %2062 = vmatpush.bf16.msra.mxu3 %v4754_v62 }
 0x320   :  { %2075 = vmatpush.bf16.msra.mxu0 %v4785_v37  ;;  %2088 = vmatpush.bf16.msrb.mxu1 %v4820_v27 }
 0x321   :  { %1928 = vmatmul.bf16.vlgmr.msrb.gmra.mxu2 %v1866_v50  ;;  %1941 = vmatmul.bf16.vlgmr.msrb.gmra.mxu3 %v1866_v50 }
 0x322   :  { %1954 = vmatmul.bf16.vlgmr.msrb.gmra.mxu0 %v1866_v50  ;;  %1967 = vmatmul.bf16.vlgmr.msra.gmra.mxu1 %v1866_v50 }
 0x323   :  { %2050 = vmatpush.bf16.msra.mxu2 %v4768_v17  ;;  %2063 = vmatpush.bf16.msra.mxu3 %v4766_v14 }
 0x324   :  { %2076 = vmatpush.bf16.msra.mxu0 %v4791_v49  ;;  %2089 = vmatpush.bf16.msrb.mxu1 %v4824_v34 }
 0x327   :  { %2051 = vmatpush.bf16.msra.mxu2 %v4774_v24  ;;  %2064 = vmatpush.bf16.msra.mxu3 %v4777_v26 }
 0x328   :  { %2077 = vmatpush.bf16.msra.mxu0 %v4800_v1  ;;  %2090 = vmatpush.bf16.msrb.mxu1 %v4827_v40 }
 0x32b   :  { %2052 = vmatpush.bf16.msra.mxu2 %v4783_v32  ;;  %2065 = vmatpush.bf16.msra.mxu3 %v4796_v59 }
 0x32c   :  { %2078 = vmatpush.bf16.msra.mxu0 %v4808_v12  ;;  %2091 = vmatpush.bf16.msrb.mxu1 %v4830_v46 }
 0x32f   :  { %2053 = vmatpush.bf16.msra.mxu2 %v4789_v42  ;;  %2066 = vmatpush.bf16.msra.mxu3 %v4805_v6 }
 0x330   :  { %2079 = vmatpush.bf16.msra.mxu0 %v4817_v25  ;;  %2092 = vmatpush.bf16.msrb.mxu1 %v4835_v58 }
 0x332   :  { %2054 = vmatmul.bf16.vlgmr.msra.gmra.mxu2 %v1866_v50  ;;  %2067 = vmatmul.bf16.vlgmr.msra.gmra.mxu3 %v1866_v50 }
 0x333   :  { %2167 = vmatpush.bf16.msrb.mxu2 %v4853_v21  ;;  %2180 = vmatpush.bf16.msrb.mxu3 %v6471_v3 }
 0x334   :  { %2080 = vmatmul.bf16.vlgmr.msra.gmra.mxu0 %v1866_v50  ;;  %2093 = vmatmul.bf16.vlgmr.msrb.gmra.mxu1 %v1866_v50  ;;  %v6632_v50 = vld [vmem:[#allocation48_spill] sm:$0xff] }
 0x335   :  { %2193 = vmatpush.bf16.msrb.mxu0 %v6605_v0  ;;  %2206 = vmatpush.bf16.msra.mxu1 %v6606_v47 }
 0x337   :  { %2168 = vmatpush.bf16.msrb.mxu2 %v6607_v33  ;;  %2181 = vmatpush.bf16.msrb.mxu3 %v6608_v63 }
 0x339   :  { %2194 = vmatpush.bf16.msrb.mxu0 %v6609_v5  ;;  %2207 = vmatpush.bf16.msra.mxu1 %v6610_v51  ;;  %v6672_v5 = vld [vmem:[#allocation22_spill] sm:$0xff] }
 0x33b   :  { %2169 = vmatpush.bf16.msrb.mxu2 %v6611_v30  ;;  %2182 = vmatpush.bf16.msrb.mxu3 %v6612_v61  ;;  %v6669_v61 = vld [vmem:[#allocation93_spill] sm:$0xff] }
 0x33d   :  { %2195 = vmatpush.bf16.msrb.mxu0 %v6613_v38  ;;  %2208 = vmatpush.bf16.msra.mxu1 %v6614_v7 }
 0x33f   :  { %2170 = vmatpush.bf16.msrb.mxu2 %v6615_v28  ;;  %2183 = vmatpush.bf16.msrb.mxu3 %v6616_v41 }
 0x341   :  { %2196 = vmatpush.bf16.msrb.mxu0 %v6617_v22  ;;  %2209 = vmatpush.bf16.msra.mxu1 %v6618_v54 }
 0x343   :  { %2171 = vmatpush.bf16.msrb.mxu2 %v6619_v9  ;;  %2184 = vmatpush.bf16.msrb.mxu3 %v6620_v4 }
 0x345   :  { %2197 = vmatpush.bf16.msrb.mxu0 %v6621_v11  ;;  %2210 = vmatpush.bf16.msra.mxu1 %v6622_v31  ;;  %v6633_v31 = vld [vmem:[#allocation52_spill] sm:$0xff] }
 0x347   :  { %2172 = vmatpush.bf16.msrb.mxu2 %v6623_v16  ;;  %2185 = vmatpush.bf16.msrb.mxu3 %v6624_v18  ;;  %v6634_v16 = vld [vmem:[#allocation54_spill] sm:$0xff]  ;;  %v6635_v18 = vld [vmem:[#allocation49_spill] sm:$0xff] }
 0x349   :  { %2198 = vmatpush.bf16.msrb.mxu0 %v6625_v19  ;;  %2211 = vmatpush.bf16.msra.mxu1 %v6626_v44  ;;  %v6636_v19 = vld [vmem:[#allocation50_spill] sm:$0xff]  ;;  %v6637_v44 = vld [vmem:[#allocation55_spill] sm:$0xff] }
 0x34b   :  { %2173 = vmatpush.bf16.msrb.mxu2 %v6627_v23  ;;  %2186 = vmatpush.bf16.msrb.mxu3 %v6628_v29  ;;  %v6638_v23 = vld [vmem:[#allocation56_spill] sm:$0xff]  ;;  %v6639_v29 = vld [vmem:[#allocation57_spill] sm:$0xff] }
 0x34d   :  { %2199 = vmatpush.bf16.msrb.mxu0 %v6629_v15  ;;  %2212 = vmatpush.bf16.msra.mxu1 %v6630_v35  ;;  %v6640_v15 = vld [vmem:[#allocation58_spill] sm:$0xff]  ;;  %v6641_v35 = vld [vmem:[#allocation59_spill] sm:$0xff] }
 0x34f   :  { %2174 = vmatpush.bf16.msrb.mxu2 %v6631_v36  ;;  %2187 = vmatpush.bf16.msrb.mxu3 %v6632_v50  ;;  %v6642_v36 = vld [vmem:[#allocation60_spill] sm:$0xff]  ;;  %v6643_v50 = vld [vmem:[#allocation61_spill] sm:$0xff] }
 0x351   :  { %2200 = vmatpush.bf16.msrb.mxu0 %v6635_v18  ;;  %2213 = vmatpush.bf16.msra.mxu1 %v6636_v19  ;;  %v6646_v18 = vld [vmem:[#allocation65_spill] sm:$0xff]  ;;  %v6647_v19 = vld [vmem:[#allocation67_spill] sm:$0xff] }
 0x353   :  { %2219 = vmatpush.bf16.msra.mxu2 %v6633_v31  ;;  %2232 = vmatpush.bf16.msra.mxu3 %v6634_v16  ;;  %v6644_v31 = vld [vmem:[#allocation62_spill] sm:$0xff]  ;;  %v6645_v16 = vld [vmem:[#allocation63_spill] sm:$0xff] }
 0x355   :  { %2245 = vmatpush.bf16.msra.mxu0 %v6637_v44  ;;  %2258 = vmatpush.bf16.msrb.mxu1 %v6638_v23  ;;  %v6648_v44 = vld [vmem:[#allocation68_spill] sm:$0xff]  ;;  %v6649_v23 = vld [vmem:[#allocation69_spill] sm:$0xff] }
 0x357   :  { %2220 = vmatpush.bf16.msra.mxu2 %v6639_v29  ;;  %2233 = vmatpush.bf16.msra.mxu3 %v6640_v15  ;;  %v6650_v29 = vld [vmem:[#allocation70_spill] sm:$0xff]  ;;  %v6651_v15 = vld [vmem:[#allocation71_spill] sm:$0xff] }
 0x359   :  { %2246 = vmatpush.bf16.msra.mxu0 %v6641_v35  ;;  %2259 = vmatpush.bf16.msrb.mxu1 %v6642_v36  ;;  %v6652_v35 = vld [vmem:[#allocation72_spill] sm:$0xff]  ;;  %v6653_v36 = vld [vmem:[#allocation73_spill] sm:$0xff] }
 0x35b   :  { %2221 = vmatpush.bf16.msra.mxu2 %v6643_v50  ;;  %2234 = vmatpush.bf16.msra.mxu3 %v6644_v31  ;;  %v6654_v50 = vld [vmem:[#allocation75_spill] sm:$0xff]  ;;  %v6655_v31 = vld [vmem:[#allocation77_spill] sm:$0xff] }
 0x35d   :  { %2247 = vmatpush.bf16.msra.mxu0 %v6645_v16  ;;  %2260 = vmatpush.bf16.msrb.mxu1 %v6646_v18  ;;  %v6656_v16 = vld [vmem:[#allocation78_spill] sm:$0xff]  ;;  %v6657_v18 = vld [vmem:[#allocation79_spill] sm:$0xff] }
 0x35f   :  { %2222 = vmatpush.bf16.msra.mxu2 %v6647_v19  ;;  %2235 = vmatpush.bf16.msra.mxu3 %v6648_v44  ;;  %v6658_v19 = vld [vmem:[#allocation80_spill] sm:$0xff]  ;;  %v6659_v44 = vld [vmem:[#allocation81_spill] sm:$0xff] }
 0x361   :  { %2248 = vmatpush.bf16.msra.mxu0 %v6649_v23  ;;  %2261 = vmatpush.bf16.msrb.mxu1 %v6650_v29  ;;  %v6660_v23 = vld [vmem:[#allocation82_spill] sm:$0xff]  ;;  %v6661_v29 = vld [vmem:[#allocation83_spill] sm:$0xff] }
 0x363   :  { %2223 = vmatpush.bf16.msra.mxu2 %v6651_v15  ;;  %2236 = vmatpush.bf16.msra.mxu3 %v6652_v35  ;;  %v6662_v15 = vld [vmem:[#allocation85_spill] sm:$0xff]  ;;  %v6663_v35 = vld [vmem:[#allocation87_spill] sm:$0xff] }
 0x365   :  { %2249 = vmatpush.bf16.msra.mxu0 %v6653_v36  ;;  %2262 = vmatpush.bf16.msrb.mxu1 %v6654_v50  ;;  %v6664_v36 = vld [vmem:[#allocation88_spill] sm:$0xff]  ;;  %v6665_v50 = vld [vmem:[#allocation89_spill] sm:$0xff] }
 0x367   :  { %2224 = vmatpush.bf16.msra.mxu2 %v6655_v31  ;;  %2237 = vmatpush.bf16.msra.mxu3 %v6656_v16  ;;  %v6666_v31 = vld [vmem:[#allocation90_spill] sm:$0xff] }
 0x369   :  { %2250 = vmatpush.bf16.msra.mxu0 %v6657_v18  ;;  %2263 = vmatpush.bf16.msrb.mxu1 %v6658_v19 }
 0x36b   :  { %2225 = vmatpush.bf16.msra.mxu2 %v6659_v44  ;;  %2238 = vmatpush.bf16.msra.mxu3 %v6660_v23 }
 0x36d   :  { %2251 = vmatpush.bf16.msra.mxu0 %v6661_v29  ;;  %2264 = vmatpush.bf16.msrb.mxu1 %v6662_v15  ;;  %v6667_v15 = vld [vmem:[#allocation91_spill] sm:$0xff] }
 0x36f   :  { %2226 = vmatpush.bf16.msra.mxu2 %v6663_v35  ;;  %2239 = vmatpush.bf16.msra.mxu3 %v6664_v36 }
 0x371   :  { %2252 = vmatpush.bf16.msra.mxu0 %v6665_v50  ;;  %2265 = vmatpush.bf16.msrb.mxu1 %v6666_v31  ;;  %v6668_v31 = vld [vmem:[#allocation92_spill] sm:$0xff] }
 0x38f   :  { %v1903_v16 = vpop.f32.mrf.mxu0  ;;  %v1916_v18 = vpop.f32.mrf.mxu1 }
 0x394   :  { %v1877_v11 = vpop.f32.mrf.mxu2  ;;  %v1890_v19 = vpop.f32.mrf.mxu3 }
 0x397   :  { %v1905_v4 = vpop.f32.mrf.mxu0  ;;  %v1918_v44 = vpop.f32.mrf.mxu1 }
 0x39c   :  { %v1879_v9 = vpop.f32.mrf.mxu2  ;;  %v1892_v23 = vpop.f32.mrf.mxu3 }
 0x39f   :  { %v1955_v54 = vpop.f32.mrf.mxu0  ;;  %v1968_v29 = vpop.f32.mrf.mxu1 }
 0x3a0   :  { %v1969_v22 = vadd.f32 %v1968_v29, %v1916_v18 }
 0x3a2   :  { %v1975_v41 = vadd.f32 %v1969_v22, %v6667_v15 }
 0x3a4   :  { %v4104_v35 = vmul.f32 -1.442695, %v1975_v41  ;;  %v1929_v28 = vpop.f32.mrf.mxu2  ;;  %v1942_v36 = vpop.f32.mrf.mxu3  ;;  %v6670_v41 = vld [vmem:[#allocation42_spill] sm:$0xff] }
 0x3a5   :  { %v1930_v7 = vadd.f32 %v1929_v28, %v1877_v11  ;;  %v1943_v50 = vadd.f32 %v1942_v36, %v1890_v19  ;;  %v2045_v15 = vunpack.c.h.bf16 %v6670_v41 }
 0x3a6   :  { %4358 = vpow2.f32 %v4104_v35 }
 0x3a7   :  { %v1972_v38 = vadd.f32 %v1930_v7, %v6668_v31  ;;  %v1973_v30 = vadd.f32 %v1943_v50, %v6669_v61  ;;  %v1957_v51 = vpop.f32.mrf.mxu0  ;;  %v1970_v4 = vpop.f32.mrf.mxu1 }
 0x3a9   :  { %v4102_v44 = vmul.f32 -1.442695, %v1972_v38  ;;  %v4103_v9 = vmul.f32 -1.442695, %v1973_v30  ;;  %v6671_v38 = vld [vmem:[#allocation41_spill] sm:$0xff] }
 0x3aa   :  { %v2042_v50 = vunpack.c.l.bf16 %v6671_v38 }
 0x3ab   :  { %4360 = vpow2.f32 %v4102_v44  ;;  %v2043_v44 = vunpack.c.h.bf16 %v6671_v38 }
 0x3ac   :  { %v4359_v23 = vpop.eup %4358  ;;  %4362 = vpow2.f32 %v4103_v9  ;;  %v1931_v18 = vpop.f32.mrf.mxu2 }
 0x3ad   :  { %v1944_v29 = vpop.f32.mrf.mxu3  ;;  %v5563_v22 = vadd.f32 1.0, %v4359_v23  ;;  %v1956_v23 = vadd.f32 %v1955_v54, %v1903_v16 }
 0x3af   :  { %4364 = vrcp.f32 %v5563_v22  ;;  %vm2024_vm6 = vweird.f32 %v5563_v22 }
 0x3b1   :  { %v5566_v28 = vpop.f32.mrf.mxu0  ;;  %v2094_v11 = vpop.f32.mrf.mxu1 }
 0x3b2   :  { %v4361_v19 = vpop.eup %4360  ;;  %v2101_v7 = vadd.f32 %v2094_v11, %v2045_v15 }
 0x3b3   :  { %v4363_v35 = vpop.eup %4362  ;;  %v1979_v36 = vadd.f32 1.0, %v4361_v19 }
 0x3b4   :  { %v1998_v51 = vadd.f32 1.0, %v4363_v35  ;;  %v4107_v30 = vmul.f32 -1.442695, %v2101_v7  ;;  %v1974_v7 = vadd.f32 %v1956_v23, %v6672_v5 }
 0x3b5   :  { %4366 = vrcp.f32 %v1979_v36  ;;  %v2055_v4 = vpop.f32.mrf.mxu2  ;;  %v2068_v9 = vpop.f32.mrf.mxu3  ;;  %vm1985_vm15 = vweird.f32 %v1979_v36 }
 0x3b6   :  { %4368 = vrcp.f32 %v1998_v51  ;;  %v2098_v18 = vadd.f32 %v2055_v4, %v2042_v50  ;;  %v2099_v29 = vadd.f32 %v2068_v9, %v2043_v44  ;;  %v5571_v11 = vpop.eup %4364  ;;  %v1991_v50 = vand.u32 2147483648, %v1979_v36 }
 0x3b7   :  { %4370 = vpow2.f32 %v4107_v30  ;;  %v2020_v54 = vmul.f32 %v5571_v11, %v5563_v22  ;;  %v1989_v9 = vand.u32 2147483647, %v1979_v36  ;;  %vm2004_vm1 = vweird.f32 %v1998_v51 }
 0x3b8   :  { %v4105_v19 = vmul.f32 -1.442695, %v2098_v18  ;;  %v4106_v31 = vmul.f32 -1.442695, %v2099_v29  ;;  %v2010_v18 = vand.u32 2147483648, %v1998_v51  ;;  %vm2025_vm5 = vweird.f32 %v5571_v11 }
 0x3b9   :  { %v2083_v61 = vpop.f32.mrf.mxu0  ;;  %v2096_v15 = vpop.f32.mrf.mxu1  ;;  %v2008_v29 = vand.u32 2147483647, %v1998_v51  ;;  %vm1990_vm2 = vcmp.eq.f32.partialorder %v1989_v9, 8.507059e+37  ;;  %vm5594_vm7 = vmor %vm2024_vm6, %vm2025_vm5 }
 0x3ba   :  { %4372 = vpow2.f32 %v4105_v19  ;;  %v2021_v19 = vsub.f32 1.0, %v2020_v54 }
 0x3bb   :  { %v4367_v35 = vpop.eup %4366  ;;  %4374 = vpow2.f32 %v4106_v31  ;;  %vm2009_vm4 = vcmp.eq.f32.partialorder %v2008_v29, 8.507059e+37 }
 0x3bc   :  { %v4369_v63 = vpop.eup %4368  ;;  %v1981_v33 = vmul.f32 %v4367_v35, %v1979_v36  ;;  %4376 = vtanh.f32 %v1974_v7  ;;  %vm1986_vm13 = vweird.f32 %v4367_v35  ;;  %v2022_v36 = vmul.f32 %v5571_v11, %v2021_v19 }
 0x3bd   :  { %v2000_v47 = vmul.f32 %v4369_v63, %v1998_v51  ;;  %v2057_v38 = vpop.f32.mrf.mxu2  ;;  %v2070_v30 = vpop.f32.mrf.mxu3  ;;  %vm2005_vm14 = vweird.f32 %v4369_v63  ;;  %vm1987_vm0 = vmor %vm1985_vm15, %vm1986_vm13 }
 0x3be   :  { %v1982_v16 = vsub.f32 1.0, %v1981_v33  ;;  %v4371_v61 = vpop.eup %4370  ;;  %v1992_v38 = vor.u32 1.1754944e-38, %v1991_v50  ;;  %vm2006_vm3 = vmor %vm2004_vm1, %vm2005_vm14  ;;  %v2023_v9 = vadd.f32 %v5571_v11, %v2022_v36 }
 0x3bf   :  { %v2001_v4 = vsub.f32 1.0, %v2000_v47  ;;  %v5576_v5 = vadd.f32 1.0, %v4371_v61 }
 0x3c0   :  { %v1983_v44 = vmul.f32 %v4367_v35, %v1982_v16  ;;  %v4373_v15 = vpop.eup %4372  ;;  %v2011_v16 = vor.u32 1.1754944e-38, %v2010_v18 }
 0x3c1   :  { %v2002_v23 = vmul.f32 %v4369_v63, %v2001_v4  ;;  %v4375_v33 = vpop.eup %4374  ;;  %v2105_v7 = vadd.f32 1.0, %v4373_v15 }
 0x3c2   :  { %v1984_v31 = vadd.f32 %v4367_v35, %v1983_v44  ;;  %v2124_v4 = vadd.f32 1.0, %v4375_v33  ;;  %v4377_v0 = vpop.eup %4376  ;;  %v2030_v44 = vand.u32 2147483648, %v5563_v22 }
 0x3c3   :  { %v2003_v30 = vadd.f32 %v4369_v63, %v2002_v23  ;;  %4378 = vrcp.f32 %v2105_v7  ;;  %v2117_v33 = vand.u32 2147483648, %v2105_v7  ;;  %vm2111_vm10 = vweird.f32 %v2105_v7 }
 0x3c4   :  { %v1988_v47 = vsel %vm1987_vm0, %v4367_v35, %v1984_v31  ;;  %4380 = vrcp.f32 %v5576_v5  ;;  %v2044_v35 = vunpack.c.l.bf16 %v6670_v41  ;;  %v2031_v15 = vor.u32 1.1754944e-38, %v2030_v44 }
 0x3c5   :  { %v1993_v3 = vsel %vm1990_vm2, %v1992_v38, %v1988_v47  ;;  %v2007_v21 = vsel %vm2006_vm3, %v4369_v63, %v2003_v30  ;;  %4382 = vrcp.f32 %v2124_v4  ;;  %v2115_v31 = vand.u32 2147483647, %v2105_v7 }
 0x3c6   :  { %v2035_v54 = vmul.f32 %v4377_v0, %v1993_v3  ;;  %v2012_v61 = vsel %vm2009_vm4, %v2011_v16, %v2007_v21  ;;  %v2100_v18 = vadd.f32 %v5566_v28, %v2044_v35  ;;  %v2027_v28 = vsel %vm5594_vm7, %v5571_v11, %v2023_v9 }
 0x3c7   :  { %v2034_v51 = vmul.f32 %v2012_v61, %v5433_v53  ;;  %v2028_v53 = vand.u32 2147483647, %v5563_v22  ;;  %v2134_v47 = vand.u32 2147483647, %v2124_v4  ;;  %v2136_v16 = vand.u32 2147483648, %v2124_v4 }
 0x3c8   :  { %vm2116_vm13 = vcmp.eq.f32.partialorder %v2115_v31, 8.507059e+37  ;;  %v2118_v35 = vor.u32 1.1754944e-38, %v2117_v33  ;;  %vm2130_vm14 = vweird.f32 %v2124_v4  ;;  %vm2150_vm2 = vweird.f32 %v5576_v5 }
 0x3c9   :  { %v5583_v50 = vadd.f32 %v2035_v54, %v2034_v51  ;;  %v4379_v63 = vpop.eup %4378  ;;  %vm2029_vm9 = vcmp.eq.f32.partialorder %v2028_v53, 8.507059e+37  ;;  %v2137_v53 = vor.u32 1.1754944e-38, %v2136_v16  ;;  %vm2135_vm0 = vcmp.eq.f32.partialorder %v2134_v47, 8.507059e+37  ;;  %v6677_v47 = vld [vmem:[#allocation15_spill] sm:$0xff]  ;;  %v6678_v16 = vld [vmem:[#allocation16_spill] sm:$0xff] }
 0x3ca   :  { %v5590_v21 = vpop.eup %4380  ;;  %v2107_v3 = vmul.f32 %v4379_v63, %v2105_v7  ;;  %vm2112_vm8 = vweird.f32 %v4379_v63  ;;  %v2032_v36 = vsel %vm2029_vm9, %v2031_v15, %v2027_v28 }
 0x3cb   :  { %4384 = vtanh.f32 %v5583_v50  ;;  %v4383_v0 = vpop.eup %4382  ;;  %v2146_v19 = vmul.f32 %v5590_v21, %v5576_v5  ;;  %vm2113_vm12 = vmor %vm2111_vm10, %vm2112_vm8  ;;  %vm2151_vm1 = vweird.f32 %v5590_v21 }
 0x3cc   :  { %v2108_v23 = vsub.f32 1.0, %v2107_v3  ;;  %v2126_v29 = vmul.f32 %v4383_v0, %v2124_v4  ;;  %4386 = vtanh.f32 %v2100_v18  ;;  %vm2131_vm11 = vweird.f32 %v4383_v0  ;;  %vm2152_vm3 = vmor %vm2150_vm2, %vm2151_vm1 }
 0x3cd   :  { %v2147_v51 = vsub.f32 1.0, %v2146_v19  ;;  %vm2132_vm15 = vmor %vm2130_vm14, %vm2131_vm11 }
 0x3ce   :  { %v2109_v38 = vmul.f32 %v4379_v63, %v2108_v23  ;;  %v2127_v22 = vsub.f32 1.0, %v2126_v29 }
 0x3cf   :  { %v2148_v29 = vmul.f32 %v5590_v21, %v2147_v51  ;;  %v6683_v51 = vld [vmem:[#allocation23_spill] sm:$0xff] }
 0x3d0   :  { %v2110_v54 = vadd.f32 %v4379_v63, %v2109_v38  ;;  %v2128_v61 = vmul.f32 %v4383_v0, %v2127_v22 }
 0x3d1   :  { %v4385_v30 = vpop.eup %4384 }
 0x3d2   :  { %v2038_v11 = vmul.f32 %v4385_v30, %v2032_v36  ;;  %v2114_v44 = vsel %vm2113_vm12, %v4379_v63, %v2110_v54  ;;  %v2129_v9 = vadd.f32 %v4383_v0, %v2128_v61  ;;  %v4387_v3 = vpop.eup %4386  ;;  %v2149_v63 = vadd.f32 %v5590_v21, %v2148_v29  ;;  %v6676_v30 = vld [vmem:[#allocation14_spill] sm:$0xff]  ;;  %v6679_v36 = vld [vmem:[#allocation17_spill] sm:$0xff]  ;;  %v6681_v61 = vld [vmem:[#allocation19_spill] sm:$0xff] }
 0x3d3   :  { %v2119_v41 = vsel %vm2116_vm13, %v2118_v35, %v2114_v44  ;;  %v6680_v54 = vld [vmem:[#allocation18_spill] sm:$0xff]  ;;  %v6684_v35 = vld [vmem:[#allocation24_spill] sm:$0xff]  ;;  %v6685_v44 = vld [vmem:[#allocation25_spill] sm:$0xff] }
 0x3d4   :  { %v2166_v18 = vpack.c.bf16 %v2038_v11, %v2038_v11  ;;  %v2161_v7 = vmul.f32 %v4387_v3, %v2119_v41  ;;  %v2133_v23 = vsel %vm2132_vm15, %v4383_v0, %v2129_v9  ;;  %v2156_v0 = vand.u32 2147483648, %v5576_v5  ;;  %v6682_v11 = vld [vmem:[#allocation20_spill] sm:$0xff]  ;;  %v6686_v9 = vld [vmem:[#allocation26_spill] sm:$0xff]  ;;  %v6689_v41 = vld [vmem:[#allocation29_spill] sm:$0xff] }
 0x3d5   :  { %v2138_v28 = vsel %vm2135_vm0, %v2137_v53, %v2133_v23  ;;  %v2153_v19 = vsel %vm2152_vm3, %v5590_v21, %v2149_v63  ;;  %v6675_v21 = vld [vmem:[#allocation13_spill] sm:$0xff]  ;;  %v6688_v3 = vld [vmem:[#allocation28_spill] sm:$0xff]  ;;  %v6690_v53 = vld [vmem:[#allocation30_spill] sm:$0xff] }
 0x3d6   :  { %2175 = vmatmul.bf16.vlgmr.msrb.gmra.mxu2 %v2166_v18  ;;  %2188 = vmatmul.bf16.vlgmr.msrb.gmra.mxu3 %v2166_v18  ;;  %v2160_v15 = vmul.f32 %v2138_v28, %v5455_v55  ;;  %v2154_v55 = vand.u32 2147483647, %v5576_v5  ;;  %v2157_v31 = vor.u32 1.1754944e-38, %v2156_v0  ;;  %v6692_v23 = vld [vmem:[#allocation34_spill] sm:$0xff]  ;;  %v6693_v29 = vld [vmem:[#allocation35_spill] sm:$0xff]  ;;  %v6694_v28 = vld [vmem:[#allocation36_spill] sm:$0xff] }
 0x3d7   :  { %2201 = vmatmul.bf16.vlgmr.msrb.gmra.mxu0 %v2166_v18  ;;  %2214 = vmatmul.bf16.vlgmr.msra.gmra.mxu1 %v2166_v18  ;;  %v6687_v18 = vld [vmem:[#allocation27_spill] sm:$0xff]  ;;  %v6696_v63 = vld [vmem:[#allocation38_spill] sm:$0xff] }
 0x3d8   :  { %2345 = vmatpush.bf16.msrb.mxu2 %v4732_v43  ;;  %2358 = vmatpush.bf16.msrb.mxu3 %v4729_v39  ;;  %v5609_v4 = vadd.f32 %v2161_v7, %v2160_v15  ;;  %vm2155_vm4 = vcmp.eq.f32.partialorder %v2154_v55, 8.507059e+37  ;;  %v6691_v7 = vld [vmem:[#allocation33_spill] sm:$0xff]  ;;  %v6697_v0 = vld [vmem:[#allocation39_spill] sm:$0xff]  ;;  %v6698_v55 = vld [vmem:[#allocation40_spill] sm:$0xff] }
 0x3d9   :  { %2371 = vmatpush.bf16.msrb.mxu0 %v4751_v60  ;;  %2384 = vmatpush.bf16.msra.mxu1 %v4793_v57  ;;  %v2158_v38 = vsel %vm2155_vm4, %v2157_v31, %v2153_v19  ;;  %v6695_v15 = vld [vmem:[#allocation37_spill] sm:$0xff]  ;;  %v6699_v19 = vld [vmem:[#allocation43_spill] sm:$0xff]  ;;  %v6700_v31 = vld [vmem:[#allocation44_spill] sm:$0xff] }
 0x3da   :  { %4388 = vtanh.f32 %v5609_v4 }
 0x3dc   :  { %2346 = vmatpush.bf16.msrb.mxu2 %v4738_v48  ;;  %2359 = vmatpush.bf16.msrb.mxu3 %v4734_v45 }
 0x3dd   :  { %2372 = vmatpush.bf16.msrb.mxu0 %v4762_v10  ;;  %2385 = vmatpush.bf16.msra.mxu1 %v4802_v2 }
 0x3e0   :  { %2347 = vmatpush.bf16.msrb.mxu2 %v4749_v56  ;;  %2360 = vmatpush.bf16.msrb.mxu3 %v4741_v52  ;;  %v4389_v33 = vpop.eup %4388 }
 0x3e1   :  { %2373 = vmatpush.bf16.msrb.mxu0 %v4771_v20  ;;  %2386 = vmatpush.bf16.msra.mxu1 %v4811_v13  ;;  %v2164_v5 = vmul.f32 %v4389_v33, %v2158_v38  ;;  %v6701_v33 = vld [vmem:[#allocation45_spill] sm:$0xff]  ;;  %v6702_v38 = vld [vmem:[#allocation46_spill] sm:$0xff] }
 0x3e3   :  { %v2165_v22 = vpack.c.bf16 %v2164_v5, %v2164_v5  ;;  %v6703_v5 = vld [vmem:[#allocation47_spill] sm:$0xff] }
 0x3e4   :  { %2348 = vmatpush.bf16.msrb.mxu2 %v4760_v8  ;;  %2361 = vmatpush.bf16.msrb.mxu3 %v4754_v62 }
 0x3e5   :  { %2374 = vmatpush.bf16.msrb.mxu0 %v4785_v37  ;;  %2387 = vmatpush.bf16.msra.mxu1 %v4820_v27 }
 0x3e6   :  { %2227 = vmatmul.bf16.vlgmr.msra.gmra.mxu2 %v2165_v22  ;;  %2240 = vmatmul.bf16.vlgmr.msra.gmra.mxu3 %v2165_v22 }
 0x3e7   :  { %2253 = vmatmul.bf16.vlgmr.msra.gmra.mxu0 %v2165_v22  ;;  %2266 = vmatmul.bf16.vlgmr.msrb.gmra.mxu1 %v2165_v22 }
 0x3e8   :  { %2349 = vmatpush.bf16.msrb.mxu2 %v4768_v17  ;;  %2362 = vmatpush.bf16.msrb.mxu3 %v4766_v14 }
 0x3e9   :  { %2375 = vmatpush.bf16.msrb.mxu0 %v4791_v49  ;;  %2388 = vmatpush.bf16.msra.mxu1 %v4824_v34 }
 0x3ec   :  { %2350 = vmatpush.bf16.msrb.mxu2 %v4774_v24  ;;  %2363 = vmatpush.bf16.msrb.mxu3 %v4777_v26 }
 0x3ed   :  { %2376 = vmatpush.bf16.msrb.mxu0 %v4800_v1  ;;  %2389 = vmatpush.bf16.msra.mxu1 %v4827_v40 }
 0x3f0   :  { %2351 = vmatpush.bf16.msrb.mxu2 %v4783_v32  ;;  %2364 = vmatpush.bf16.msrb.mxu3 %v4796_v59 }
 0x3f1   :  { %2377 = vmatpush.bf16.msrb.mxu0 %v4808_v12  ;;  %2390 = vmatpush.bf16.msra.mxu1 %v4830_v46 }
 0x3f4   :  { %2352 = vmatpush.bf16.msrb.mxu2 %v4789_v42  ;;  %2365 = vmatpush.bf16.msrb.mxu3 %v4805_v6 }
 0x3f5   :  { %2378 = vmatpush.bf16.msrb.mxu0 %v4817_v25  ;;  %2391 = vmatpush.bf16.msra.mxu1 %v4835_v58 }
 0x3f7   :  { %2353 = vmatmul.bf16.vlgmr.msrb.gmra.mxu2 %v2165_v22  ;;  %2366 = vmatmul.bf16.vlgmr.msrb.gmra.mxu3 %v2165_v22 }
 0x3f8   :  { %2466 = vmatpush.bf16.msra.mxu2 %v6675_v21  ;;  %2479 = vmatpush.bf16.msra.mxu3 %v6676_v30 }
 0x3f9   :  { %2379 = vmatmul.bf16.vlgmr.msrb.gmra.mxu0 %v2165_v22  ;;  %2392 = vmatmul.bf16.vlgmr.msra.gmra.mxu1 %v2165_v22  ;;  %v6704_v22 = vld [vmem:[#allocation48_spill] sm:$0xff] }
 0x3fa   :  { %2492 = vmatpush.bf16.msra.mxu0 %v6677_v47  ;;  %2505 = vmatpush.bf16.msrb.mxu1 %v6678_v16 }
 0x3fc   :  { %2467 = vmatpush.bf16.msra.mxu2 %v6679_v36  ;;  %2480 = vmatpush.bf16.msra.mxu3 %v6680_v54 }
 0x3fe   :  { %2493 = vmatpush.bf16.msra.mxu0 %v6681_v61  ;;  %2506 = vmatpush.bf16.msrb.mxu1 %v6682_v11  ;;  %v6744_v61 = vld [vmem:[#allocation22_spill] sm:$0xff] }
 0x400   :  { %2468 = vmatpush.bf16.msra.mxu2 %v6683_v51  ;;  %2481 = vmatpush.bf16.msra.mxu3 %v6684_v35  ;;  %v6741_v35 = vld [vmem:[#allocation93_spill] sm:$0xff] }
 0x402   :  { %2494 = vmatpush.bf16.msra.mxu0 %v6685_v44  ;;  %2507 = vmatpush.bf16.msrb.mxu1 %v6686_v9 }
 0x404   :  { %2469 = vmatpush.bf16.msra.mxu2 %v6687_v18  ;;  %2482 = vmatpush.bf16.msra.mxu3 %v6688_v3 }
 0x406   :  { %2495 = vmatpush.bf16.msra.mxu0 %v6689_v41  ;;  %2508 = vmatpush.bf16.msrb.mxu1 %v6690_v53 }
 0x408   :  { %2470 = vmatpush.bf16.msra.mxu2 %v6691_v7  ;;  %2483 = vmatpush.bf16.msra.mxu3 %v6692_v23 }
 0x40a   :  { %2496 = vmatpush.bf16.msra.mxu0 %v6693_v29  ;;  %2509 = vmatpush.bf16.msrb.mxu1 %v6694_v28  ;;  %v6705_v28 = vld [vmem:[#allocation52_spill] sm:$0xff] }
 0x40c   :  { %2471 = vmatpush.bf16.msra.mxu2 %v6695_v15  ;;  %2484 = vmatpush.bf16.msra.mxu3 %v6696_v63  ;;  %v6706_v15 = vld [vmem:[#allocation54_spill] sm:$0xff]  ;;  %v6707_v63 = vld [vmem:[#allocation49_spill] sm:$0xff] }
 0x40e   :  { %2497 = vmatpush.bf16.msra.mxu0 %v6697_v0  ;;  %2510 = vmatpush.bf16.msrb.mxu1 %v6698_v55  ;;  %v6708_v0 = vld [vmem:[#allocation50_spill] sm:$0xff]  ;;  %v6709_v55 = vld [vmem:[#allocation55_spill] sm:$0xff] }
 0x410   :  { %2472 = vmatpush.bf16.msra.mxu2 %v6699_v19  ;;  %2485 = vmatpush.bf16.msra.mxu3 %v6700_v31  ;;  %v6710_v19 = vld [vmem:[#allocation56_spill] sm:$0xff]  ;;  %v6711_v31 = vld [vmem:[#allocation57_spill] sm:$0xff] }
 0x412   :  { %2498 = vmatpush.bf16.msra.mxu0 %v6701_v33  ;;  %2511 = vmatpush.bf16.msrb.mxu1 %v6702_v38  ;;  %v6712_v33 = vld [vmem:[#allocation58_spill] sm:$0xff]  ;;  %v6713_v38 = vld [vmem:[#allocation59_spill] sm:$0xff] }
 0x414   :  { %2473 = vmatpush.bf16.msra.mxu2 %v6703_v5  ;;  %2486 = vmatpush.bf16.msra.mxu3 %v6704_v22  ;;  %v6714_v5 = vld [vmem:[#allocation60_spill] sm:$0xff]  ;;  %v6715_v22 = vld [vmem:[#allocation61_spill] sm:$0xff] }
 0x416   :  { %2499 = vmatpush.bf16.msra.mxu0 %v6707_v63  ;;  %2512 = vmatpush.bf16.msrb.mxu1 %v6708_v0  ;;  %v6718_v63 = vld [vmem:[#allocation65_spill] sm:$0xff]  ;;  %v6719_v0 = vld [vmem:[#allocation67_spill] sm:$0xff] }
 0x418   :  { %2518 = vmatpush.bf16.msrb.mxu2 %v6705_v28  ;;  %2531 = vmatpush.bf16.msrb.mxu3 %v6706_v15  ;;  %v6716_v28 = vld [vmem:[#allocation62_spill] sm:$0xff]  ;;  %v6717_v15 = vld [vmem:[#allocation63_spill] sm:$0xff] }
 0x41a   :  { %2544 = vmatpush.bf16.msrb.mxu0 %v6709_v55  ;;  %2557 = vmatpush.bf16.msra.mxu1 %v6710_v19  ;;  %v6720_v55 = vld [vmem:[#allocation68_spill] sm:$0xff]  ;;  %v6721_v19 = vld [vmem:[#allocation69_spill] sm:$0xff] }
 0x41c   :  { %2519 = vmatpush.bf16.msrb.mxu2 %v6711_v31  ;;  %2532 = vmatpush.bf16.msrb.mxu3 %v6712_v33  ;;  %v6722_v31 = vld [vmem:[#allocation70_spill] sm:$0xff]  ;;  %v6723_v33 = vld [vmem:[#allocation71_spill] sm:$0xff] }
 0x41e   :  { %2545 = vmatpush.bf16.msrb.mxu0 %v6713_v38  ;;  %2558 = vmatpush.bf16.msra.mxu1 %v6714_v5  ;;  %v6724_v38 = vld [vmem:[#allocation72_spill] sm:$0xff]  ;;  %v6725_v5 = vld [vmem:[#allocation73_spill] sm:$0xff] }
 0x420   :  { %2520 = vmatpush.bf16.msrb.mxu2 %v6715_v22  ;;  %2533 = vmatpush.bf16.msrb.mxu3 %v6716_v28  ;;  %v6726_v22 = vld [vmem:[#allocation75_spill] sm:$0xff]  ;;  %v6727_v28 = vld [vmem:[#allocation77_spill] sm:$0xff] }
 0x422   :  { %2546 = vmatpush.bf16.msrb.mxu0 %v6717_v15  ;;  %2559 = vmatpush.bf16.msra.mxu1 %v6718_v63  ;;  %v6728_v15 = vld [vmem:[#allocation78_spill] sm:$0xff]  ;;  %v6729_v63 = vld [vmem:[#allocation79_spill] sm:$0xff] }
 0x424   :  { %2521 = vmatpush.bf16.msrb.mxu2 %v6719_v0  ;;  %2534 = vmatpush.bf16.msrb.mxu3 %v6720_v55  ;;  %v6730_v0 = vld [vmem:[#allocation80_spill] sm:$0xff]  ;;  %v6731_v55 = vld [vmem:[#allocation81_spill] sm:$0xff] }
 0x426   :  { %2547 = vmatpush.bf16.msrb.mxu0 %v6721_v19  ;;  %2560 = vmatpush.bf16.msra.mxu1 %v6722_v31  ;;  %v6732_v19 = vld [vmem:[#allocation82_spill] sm:$0xff]  ;;  %v6733_v31 = vld [vmem:[#allocation83_spill] sm:$0xff] }
 0x428   :  { %2522 = vmatpush.bf16.msrb.mxu2 %v6723_v33  ;;  %2535 = vmatpush.bf16.msrb.mxu3 %v6724_v38  ;;  %v6734_v33 = vld [vmem:[#allocation85_spill] sm:$0xff]  ;;  %v6735_v38 = vld [vmem:[#allocation87_spill] sm:$0xff] }
 0x42a   :  { %2548 = vmatpush.bf16.msrb.mxu0 %v6725_v5  ;;  %2561 = vmatpush.bf16.msra.mxu1 %v6726_v22  ;;  %v6736_v5 = vld [vmem:[#allocation88_spill] sm:$0xff]  ;;  %v6737_v22 = vld [vmem:[#allocation89_spill] sm:$0xff] }
 0x42c   :  { %2523 = vmatpush.bf16.msrb.mxu2 %v6727_v28  ;;  %2536 = vmatpush.bf16.msrb.mxu3 %v6728_v15  ;;  %v6738_v28 = vld [vmem:[#allocation90_spill] sm:$0xff] }
 0x42e   :  { %2549 = vmatpush.bf16.msrb.mxu0 %v6729_v63  ;;  %2562 = vmatpush.bf16.msra.mxu1 %v6730_v0 }
 0x430   :  { %2524 = vmatpush.bf16.msrb.mxu2 %v6731_v55  ;;  %2537 = vmatpush.bf16.msrb.mxu3 %v6732_v19 }
 0x432   :  { %2550 = vmatpush.bf16.msrb.mxu0 %v6733_v31  ;;  %2563 = vmatpush.bf16.msra.mxu1 %v6734_v33  ;;  %v6739_v33 = vld [vmem:[#allocation91_spill] sm:$0xff] }
 0x434   :  { %2525 = vmatpush.bf16.msrb.mxu2 %v6735_v38  ;;  %2538 = vmatpush.bf16.msrb.mxu3 %v6736_v5 }
 0x436   :  { %2551 = vmatpush.bf16.msrb.mxu0 %v6737_v22  ;;  %2564 = vmatpush.bf16.msra.mxu1 %v6738_v28  ;;  %v6740_v28 = vld [vmem:[#allocation92_spill] sm:$0xff] }
 0x454   :  { %v2202_v15 = vpop.f32.mrf.mxu0  ;;  %v2215_v63 = vpop.f32.mrf.mxu1 }
 0x459   :  { %v2176_v29 = vpop.f32.mrf.mxu2  ;;  %v2189_v0 = vpop.f32.mrf.mxu3 }
 0x45c   :  { %v2204_v23 = vpop.f32.mrf.mxu0  ;;  %v2217_v55 = vpop.f32.mrf.mxu1 }
 0x461   :  { %v2178_v7 = vpop.f32.mrf.mxu2  ;;  %v2191_v19 = vpop.f32.mrf.mxu3 }
 0x464   :  { %v2254_v53 = vpop.f32.mrf.mxu0  ;;  %v2267_v31 = vpop.f32.mrf.mxu1 }
 0x465   :  { %v2268_v41 = vadd.f32 %v2267_v31, %v2215_v63 }
 0x467   :  { %v2274_v3 = vadd.f32 %v2268_v41, %v6739_v33 }
 0x469   :  { %v4110_v38 = vmul.f32 -1.442695, %v2274_v3  ;;  %v2228_v18 = vpop.f32.mrf.mxu2  ;;  %v2241_v5 = vpop.f32.mrf.mxu3  ;;  %v6742_v3 = vld [vmem:[#allocation53_spill] sm:$0xff] }
 0x46a   :  { %v2229_v9 = vadd.f32 %v2228_v18, %v2176_v29  ;;  %v2242_v22 = vadd.f32 %v2241_v5, %v2189_v0  ;;  %v2344_v33 = vunpack.c.h.bf16 %v6742_v3 }
 0x46b   :  { %4390 = vpow2.f32 %v4110_v38 }
 0x46c   :  { %v2271_v44 = vadd.f32 %v2229_v9, %v6740_v28  ;;  %v2272_v51 = vadd.f32 %v2242_v22, %v6741_v35  ;;  %v2256_v11 = vpop.f32.mrf.mxu0  ;;  %v2269_v23 = vpop.f32.mrf.mxu1 }
 0x46e   :  { %v4108_v55 = vmul.f32 -1.442695, %v2271_v44  ;;  %v4109_v7 = vmul.f32 -1.442695, %v2272_v51  ;;  %v6743_v44 = vld [vmem:[#allocation51_spill] sm:$0xff] }
 0x46f   :  { %v2341_v22 = vunpack.c.l.bf16 %v6743_v44 }
 0x470   :  { %4392 = vpow2.f32 %v4108_v55  ;;  %v2342_v55 = vunpack.c.h.bf16 %v6743_v44 }
 0x471   :  { %v4391_v19 = vpop.eup %4390  ;;  %4394 = vpow2.f32 %v4109_v7  ;;  %v2230_v63 = vpop.f32.mrf.mxu2 }
 0x472   :  { %v2243_v31 = vpop.f32.mrf.mxu3  ;;  %v5713_v41 = vadd.f32 1.0, %v4391_v19  ;;  %v2255_v19 = vadd.f32 %v2254_v53, %v2202_v15 }
 0x474   :  { %4396 = vrcp.f32 %v5713_v41  ;;  %vm2323_vm14 = vweird.f32 %v5713_v41 }
 0x476   :  { %v5716_v18 = vpop.f32.mrf.mxu0  ;;  %v2393_v29 = vpop.f32.mrf.mxu1 }
 0x477   :  { %v4393_v0 = vpop.eup %4392  ;;  %v2400_v9 = vadd.f32 %v2393_v29, %v2344_v33 }
 0x478   :  { %v4395_v38 = vpop.eup %4394  ;;  %v2278_v5 = vadd.f32 1.0, %v4393_v0 }
 0x479   :  { %v2297_v11 = vadd.f32 1.0, %v4395_v38  ;;  %v4113_v51 = vmul.f32 -1.442695, %v2400_v9  ;;  %v2273_v9 = vadd.f32 %v2255_v19, %v6744_v61 }
 0x47a   :  { %4398 = vrcp.f32 %v2278_v5  ;;  %v2354_v23 = vpop.f32.mrf.mxu2  ;;  %v2367_v7 = vpop.f32.mrf.mxu3  ;;  %vm2284_vm7 = vweird.f32 %v2278_v5 }
 0x47b   :  { %4400 = vrcp.f32 %v2297_v11  ;;  %v2397_v63 = vadd.f32 %v2354_v23, %v2341_v22  ;;  %v2398_v31 = vadd.f32 %v2367_v7, %v2342_v55  ;;  %v5721_v29 = vpop.eup %4396  ;;  %v2290_v22 = vand.u32 2147483648, %v2278_v5 }
 0x47c   :  { %4402 = vpow2.f32 %v4113_v51  ;;  %v2319_v53 = vmul.f32 %v5721_v29, %v5713_v41  ;;  %v2288_v7 = vand.u32 2147483647, %v2278_v5  ;;  %vm2303_vm9 = vweird.f32 %v2297_v11 }
 0x47d   :  { %v4111_v0 = vmul.f32 -1.442695, %v2397_v63  ;;  %v4112_v28 = vmul.f32 -1.442695, %v2398_v31  ;;  %v2309_v63 = vand.u32 2147483648, %v2297_v11  ;;  %vm2324_vm13 = vweird.f32 %v5721_v29 }
 0x47e   :  { %v2382_v35 = vpop.f32.mrf.mxu0  ;;  %v2395_v33 = vpop.f32.mrf.mxu1  ;;  %v2307_v31 = vand.u32 2147483647, %v2297_v11  ;;  %vm2289_vm10 = vcmp.eq.f32.partialorder %v2288_v7, 8.507059e+37  ;;  %vm5744_vm15 = vmor %vm2323_vm14, %vm2324_vm13 }
 0x47f   :  { %4404 = vpow2.f32 %v4111_v0  ;;  %v2320_v0 = vsub.f32 1.0, %v2319_v53 }
 0x480   :  { %v4399_v38 = vpop.eup %4398  ;;  %4406 = vpow2.f32 %v4112_v28  ;;  %vm2308_vm12 = vcmp.eq.f32.partialorder %v2307_v31, 8.507059e+37 }
 0x481   :  { %v4401_v54 = vpop.eup %4400  ;;  %v2280_v36 = vmul.f32 %v4399_v38, %v2278_v5  ;;  %4408 = vtanh.f32 %v2273_v9  ;;  %vm2285_vm5 = vweird.f32 %v4399_v38  ;;  %v2321_v5 = vmul.f32 %v5721_v29, %v2320_v0 }
 0x482   :  { %v2299_v16 = vmul.f32 %v4401_v54, %v2297_v11  ;;  %v2356_v44 = vpop.f32.mrf.mxu2  ;;  %v2369_v51 = vpop.f32.mrf.mxu3  ;;  %vm2304_vm6 = vweird.f32 %v4401_v54  ;;  %vm2286_vm8 = vmor %vm2284_vm7, %vm2285_vm5 }
 0x483   :  { %v2281_v15 = vsub.f32 1.0, %v2280_v36  ;;  %v4403_v35 = vpop.eup %4402  ;;  %v2291_v44 = vor.u32 1.1754944e-38, %v2290_v22  ;;  %vm2305_vm11 = vmor %vm2303_vm9, %vm2304_vm6  ;;  %v2322_v7 = vadd.f32 %v5721_v29, %v2321_v5 }
 0x484   :  { %v2300_v23 = vsub.f32 1.0, %v2299_v16  ;;  %v5726_v61 = vadd.f32 1.0, %v4403_v35 }
 0x485   :  { %v2282_v55 = vmul.f32 %v4399_v38, %v2281_v15  ;;  %v4405_v33 = vpop.eup %4404  ;;  %v2310_v15 = vor.u32 1.1754944e-38, %v2309_v63 }
 0x486   :  { %v2301_v19 = vmul.f32 %v4401_v54, %v2300_v23  ;;  %v4407_v36 = vpop.eup %4406  ;;  %v2404_v9 = vadd.f32 1.0, %v4405_v33 }
 0x487   :  { %v2283_v28 = vadd.f32 %v4399_v38, %v2282_v55  ;;  %v2423_v23 = vadd.f32 1.0, %v4407_v36  ;;  %v4409_v47 = vpop.eup %4408  ;;  %v2329_v55 = vand.u32 2147483648, %v5713_v41 }
 0x488   :  { %v2302_v51 = vadd.f32 %v4401_v54, %v2301_v19  ;;  %4410 = vrcp.f32 %v2404_v9  ;;  %v2416_v36 = vand.u32 2147483648, %v2404_v9  ;;  %vm2410_vm2 = vweird.f32 %v2404_v9 }
 0x489   :  { %v2287_v16 = vsel %vm2286_vm8, %v4399_v38, %v2283_v28  ;;  %4412 = vrcp.f32 %v5726_v61  ;;  %v2343_v38 = vunpack.c.l.bf16 %v6742_v3  ;;  %v2330_v33 = vor.u32 1.1754944e-38, %v2329_v55 }
 0x48a   :  { %v2292_v30 = vsel %vm2289_vm10, %v2291_v44, %v2287_v16  ;;  %v2306_v21 = vsel %vm2305_vm11, %v4401_v54, %v2302_v51  ;;  %4414 = vrcp.f32 %v2423_v23  ;;  %v2414_v28 = vand.u32 2147483647, %v2404_v9 }
 0x48b   :  { %v2334_v53 = vmul.f32 %v4409_v47, %v2292_v30  ;;  %v2311_v35 = vsel %vm2308_vm12, %v2310_v15, %v2306_v21  ;;  %v2399_v63 = vadd.f32 %v5716_v18, %v2343_v38  ;;  %v2327_v30 = vand.u32 2147483647, %v5713_v41 }
 0x48c   :  { %v2333_v11 = vmul.f32 %v2311_v35, %v5583_v50  ;;  %v2326_v18 = vsel %vm5744_vm15, %v5721_v29, %v2322_v7  ;;  %v2433_v16 = vand.u32 2147483647, %v2423_v23  ;;  %v2435_v15 = vand.u32 2147483648, %v2423_v23 }
 0x48d   :  { %vm2328_vm1 = vcmp.eq.f32.partialorder %v2327_v30, 8.507059e+37  ;;  %vm2415_vm5 = vcmp.eq.f32.partialorder %v2414_v28, 8.507059e+37  ;;  %v2417_v38 = vor.u32 1.1754944e-38, %v2416_v36  ;;  %vm2429_vm6 = vweird.f32 %v2423_v23 }
 0x48e   :  { %v5733_v22 = vadd.f32 %v2334_v53, %v2333_v11  ;;  %v4411_v54 = vpop.eup %4410  ;;  %v2331_v5 = vsel %vm2328_vm1, %v2330_v33, %v2326_v18  ;;  %v2436_v30 = vor.u32 1.1754944e-38, %v2435_v15  ;;  %vm2434_vm8 = vcmp.eq.f32.partialorder %v2433_v16, 8.507059e+37  ;;  %v6749_v16 = vld [vmem:[#allocation15_spill] sm:$0xff]  ;;  %v6750_v15 = vld [vmem:[#allocation16_spill] sm:$0xff] }
 0x48f   :  { %v5740_v21 = vpop.eup %4412  ;;  %v2406_v50 = vmul.f32 %v4411_v54, %v2404_v9  ;;  %vm2411_vm0 = vweird.f32 %v4411_v54  ;;  %vm2449_vm10 = vweird.f32 %v5726_v61 }
 0x490   :  { %4416 = vtanh.f32 %v5733_v22  ;;  %v4415_v47 = vpop.eup %4414  ;;  %v2445_v0 = vmul.f32 %v5740_v21, %v5726_v61  ;;  %vm2412_vm4 = vmor %vm2410_vm2, %vm2411_vm0  ;;  %vm2450_vm9 = vweird.f32 %v5740_v21 }
 0x491   :  { %v2407_v19 = vsub.f32 1.0, %v2406_v50  ;;  %v2425_v31 = vmul.f32 %v4415_v47, %v2423_v23  ;;  %4418 = vtanh.f32 %v2399_v63  ;;  %vm2430_vm3 = vweird.f32 %v4415_v47  ;;  %vm2451_vm11 = vmor %vm2449_vm10, %vm2450_vm9 }
 0x492   :  { %v2446_v11 = vsub.f32 1.0, %v2445_v0  ;;  %vm2431_vm7 = vmor %vm2429_vm6, %vm2430_vm3 }
 0x493   :  { %v2408_v44 = vmul.f32 %v4411_v54, %v2407_v19  ;;  %v2426_v41 = vsub.f32 1.0, %v2425_v31 }
 0x494   :  { %v2447_v31 = vmul.f32 %v5740_v21, %v2446_v11  ;;  %v6755_v11 = vld [vmem:[#allocation23_spill] sm:$0xff] }
 0x495   :  { %v2409_v53 = vadd.f32 %v4411_v54, %v2408_v44  ;;  %v2427_v35 = vmul.f32 %v4415_v47, %v2426_v41 }
 0x496   :  { %v4417_v51 = vpop.eup %4416 }
 0x497   :  { %v2337_v29 = vmul.f32 %v4417_v51, %v2331_v5  ;;  %v2413_v55 = vsel %vm2412_vm4, %v4411_v54, %v2409_v53  ;;  %v2428_v7 = vadd.f32 %v4415_v47, %v2427_v35  ;;  %v4419_v50 = vpop.eup %4418  ;;  %v2448_v54 = vadd.f32 %v5740_v21, %v2447_v31  ;;  %v6748_v51 = vld [vmem:[#allocation14_spill] sm:$0xff]  ;;  %v6751_v5 = vld [vmem:[#allocation17_spill] sm:$0xff]  ;;  %v6753_v35 = vld [vmem:[#allocation19_spill] sm:$0xff] }
 0x498   :  { %v2418_v3 = vsel %vm2415_vm5, %v2417_v38, %v2413_v55  ;;  %v6752_v53 = vld [vmem:[#allocation18_spill] sm:$0xff]  ;;  %v6756_v38 = vld [vmem:[#allocation24_spill] sm:$0xff]  ;;  %v6757_v55 = vld [vmem:[#allocation25_spill] sm:$0xff] }
 0x499   :  { %v2465_v63 = vpack.c.bf16 %v2337_v29, %v2337_v29  ;;  %v2460_v9 = vmul.f32 %v4419_v50, %v2418_v3  ;;  %v2432_v19 = vsel %vm2431_vm7, %v4415_v47, %v2428_v7  ;;  %v2455_v47 = vand.u32 2147483648, %v5726_v61  ;;  %v6754_v29 = vld [vmem:[#allocation20_spill] sm:$0xff]  ;;  %v6758_v7 = vld [vmem:[#allocation26_spill] sm:$0xff]  ;;  %v6761_v3 = vld [vmem:[#allocation29_spill] sm:$0xff] }
 0x49a   :  { %v2437_v18 = vsel %vm2434_vm8, %v2436_v30, %v2432_v19  ;;  %v2452_v0 = vsel %vm2451_vm11, %v5740_v21, %v2448_v54  ;;  %v6747_v21 = vld [vmem:[#allocation13_spill] sm:$0xff]  ;;  %v6760_v50 = vld [vmem:[#allocation28_spill] sm:$0xff]  ;;  %v6762_v30 = vld [vmem:[#allocation30_spill] sm:$0xff] }
 0x49b   :  { %2474 = vmatmul.bf16.vlgmr.msra.gmra.mxu2 %v2465_v63  ;;  %2487 = vmatmul.bf16.vlgmr.msra.gmra.mxu3 %v2465_v63  ;;  %v2459_v33 = vmul.f32 %v2437_v18, %v5609_v4  ;;  %v2453_v4 = vand.u32 2147483647, %v5726_v61  ;;  %v2456_v28 = vor.u32 1.1754944e-38, %v2455_v47  ;;  %v6764_v19 = vld [vmem:[#allocation34_spill] sm:$0xff]  ;;  %v6765_v31 = vld [vmem:[#allocation35_spill] sm:$0xff]  ;;  %v6766_v18 = vld [vmem:[#allocation36_spill] sm:$0xff] }
 0x49c   :  { %2500 = vmatmul.bf16.vlgmr.msra.gmra.mxu0 %v2465_v63  ;;  %2513 = vmatmul.bf16.vlgmr.msrb.gmra.mxu1 %v2465_v63  ;;  %v6759_v63 = vld [vmem:[#allocation27_spill] sm:$0xff]  ;;  %v6768_v54 = vld [vmem:[#allocation38_spill] sm:$0xff] }
 0x49d   :  { %2644 = vmatpush.bf16.msra.mxu2 %v4732_v43  ;;  %2657 = vmatpush.bf16.msra.mxu3 %v4729_v39  ;;  %v5759_v23 = vadd.f32 %v2460_v9, %v2459_v33  ;;  %vm2454_vm12 = vcmp.eq.f32.partialorder %v2453_v4, 8.507059e+37  ;;  %v6763_v9 = vld [vmem:[#allocation33_spill] sm:$0xff]  ;;  %v6769_v47 = vld [vmem:[#allocation39_spill] sm:$0xff]  ;;  %v6770_v4 = vld [vmem:[#allocation40_spill] sm:$0xff] }
 0x49e   :  { %2670 = vmatpush.bf16.msra.mxu0 %v4751_v60  ;;  %2683 = vmatpush.bf16.msrb.mxu1 %v4793_v57  ;;  %v2457_v44 = vsel %vm2454_vm12, %v2456_v28, %v2452_v0  ;;  %v6767_v33 = vld [vmem:[#allocation37_spill] sm:$0xff]  ;;  %v6771_v0 = vld [vmem:[#allocation43_spill] sm:$0xff]  ;;  %v6772_v28 = vld [vmem:[#allocation44_spill] sm:$0xff] }
 0x49f   :  { %4420 = vtanh.f32 %v5759_v23 }
 0x4a1   :  { %2645 = vmatpush.bf16.msra.mxu2 %v4738_v48  ;;  %2658 = vmatpush.bf16.msra.mxu3 %v4734_v45 }
 0x4a2   :  { %2671 = vmatpush.bf16.msra.mxu0 %v4762_v10  ;;  %2684 = vmatpush.bf16.msrb.mxu1 %v4802_v2 }
 0x4a5   :  { %2646 = vmatpush.bf16.msra.mxu2 %v4749_v56  ;;  %2659 = vmatpush.bf16.msra.mxu3 %v4741_v52  ;;  %v4421_v36 = vpop.eup %4420 }
 0x4a6   :  { %2672 = vmatpush.bf16.msra.mxu0 %v4771_v20  ;;  %2685 = vmatpush.bf16.msrb.mxu1 %v4811_v13  ;;  %v2463_v61 = vmul.f32 %v4421_v36, %v2457_v44  ;;  %v6773_v36 = vld [vmem:[#allocation45_spill] sm:$0xff]  ;;  %v6774_v44 = vld [vmem:[#allocation46_spill] sm:$0xff] }
 0x4a8   :  { %v2464_v41 = vpack.c.bf16 %v2463_v61, %v2463_v61  ;;  %v6775_v61 = vld [vmem:[#allocation47_spill] sm:$0xff] }
 0x4a9   :  { %2647 = vmatpush.bf16.msra.mxu2 %v4760_v8  ;;  %2660 = vmatpush.bf16.msra.mxu3 %v4754_v62 }
 0x4aa   :  { %2673 = vmatpush.bf16.msra.mxu0 %v4785_v37  ;;  %2686 = vmatpush.bf16.msrb.mxu1 %v4820_v27 }
 0x4ab   :  { %2526 = vmatmul.bf16.vlgmr.msrb.gmra.mxu2 %v2464_v41  ;;  %2539 = vmatmul.bf16.vlgmr.msrb.gmra.mxu3 %v2464_v41 }
 0x4ac   :  { %2552 = vmatmul.bf16.vlgmr.msrb.gmra.mxu0 %v2464_v41  ;;  %2565 = vmatmul.bf16.vlgmr.msra.gmra.mxu1 %v2464_v41 }
 0x4ad   :  { %2648 = vmatpush.bf16.msra.mxu2 %v4768_v17  ;;  %2661 = vmatpush.bf16.msra.mxu3 %v4766_v14 }
 0x4ae   :  { %2674 = vmatpush.bf16.msra.mxu0 %v4791_v49  ;;  %2687 = vmatpush.bf16.msrb.mxu1 %v4824_v34 }
 0x4b1   :  { %2649 = vmatpush.bf16.msra.mxu2 %v4774_v24  ;;  %2662 = vmatpush.bf16.msra.mxu3 %v4777_v26 }
 0x4b2   :  { %2675 = vmatpush.bf16.msra.mxu0 %v4800_v1  ;;  %2688 = vmatpush.bf16.msrb.mxu1 %v4827_v40 }
 0x4b5   :  { %2650 = vmatpush.bf16.msra.mxu2 %v4783_v32  ;;  %2663 = vmatpush.bf16.msra.mxu3 %v4796_v59 }
 0x4b6   :  { %2676 = vmatpush.bf16.msra.mxu0 %v4808_v12  ;;  %2689 = vmatpush.bf16.msrb.mxu1 %v4830_v46 }
 0x4b9   :  { %2651 = vmatpush.bf16.msra.mxu2 %v4789_v42  ;;  %2664 = vmatpush.bf16.msra.mxu3 %v4805_v6 }
 0x4ba   :  { %2677 = vmatpush.bf16.msra.mxu0 %v4817_v25  ;;  %2690 = vmatpush.bf16.msrb.mxu1 %v4835_v58 }
 0x4bc   :  { %2652 = vmatmul.bf16.vlgmr.msra.gmra.mxu2 %v2464_v41  ;;  %2665 = vmatmul.bf16.vlgmr.msra.gmra.mxu3 %v2464_v41 }
 0x4bd   :  { %2765 = vmatpush.bf16.msrb.mxu2 %v6747_v21  ;;  %2778 = vmatpush.bf16.msrb.mxu3 %v6748_v51 }
 0x4be   :  { %2678 = vmatmul.bf16.vlgmr.msra.gmra.mxu0 %v2464_v41  ;;  %2691 = vmatmul.bf16.vlgmr.msrb.gmra.mxu1 %v2464_v41  ;;  %v6776_v41 = vld [vmem:[#allocation48_spill] sm:$0xff] }
 0x4bf   :  { %2791 = vmatpush.bf16.msrb.mxu0 %v6749_v16  ;;  %2804 = vmatpush.bf16.msra.mxu1 %v6750_v15 }
 0x4c1   :  { %2766 = vmatpush.bf16.msrb.mxu2 %v6751_v5  ;;  %2779 = vmatpush.bf16.msrb.mxu3 %v6752_v53 }
 0x4c3   :  { %2792 = vmatpush.bf16.msrb.mxu0 %v6753_v35  ;;  %2805 = vmatpush.bf16.msra.mxu1 %v6754_v29  ;;  %v6816_v35 = vld [vmem:[#allocation22_spill] sm:$0xff] }
 0x4c5   :  { %2767 = vmatpush.bf16.msrb.mxu2 %v6755_v11  ;;  %2780 = vmatpush.bf16.msrb.mxu3 %v6756_v38  ;;  %v6813_v38 = vld [vmem:[#allocation93_spill] sm:$0xff] }
 0x4c7   :  { %2793 = vmatpush.bf16.msrb.mxu0 %v6757_v55  ;;  %2806 = vmatpush.bf16.msra.mxu1 %v6758_v7 }
 0x4c9   :  { %2768 = vmatpush.bf16.msrb.mxu2 %v6759_v63  ;;  %2781 = vmatpush.bf16.msrb.mxu3 %v6760_v50 }
 0x4cb   :  { %2794 = vmatpush.bf16.msrb.mxu0 %v6761_v3  ;;  %2807 = vmatpush.bf16.msra.mxu1 %v6762_v30 }
 0x4cd   :  { %2769 = vmatpush.bf16.msrb.mxu2 %v6763_v9  ;;  %2782 = vmatpush.bf16.msrb.mxu3 %v6764_v19 }
 0x4cf   :  { %2795 = vmatpush.bf16.msrb.mxu0 %v6765_v31  ;;  %2808 = vmatpush.bf16.msra.mxu1 %v6766_v18  ;;  %v6777_v18 = vld [vmem:[#allocation52_spill] sm:$0xff] }
 0x4d1   :  { %2770 = vmatpush.bf16.msrb.mxu2 %v6767_v33  ;;  %2783 = vmatpush.bf16.msrb.mxu3 %v6768_v54  ;;  %v6778_v33 = vld [vmem:[#allocation54_spill] sm:$0xff]  ;;  %v6779_v54 = vld [vmem:[#allocation49_spill] sm:$0xff] }
 0x4d3   :  { %2796 = vmatpush.bf16.msrb.mxu0 %v6769_v47  ;;  %2809 = vmatpush.bf16.msra.mxu1 %v6770_v4  ;;  %v6780_v47 = vld [vmem:[#allocation50_spill] sm:$0xff]  ;;  %v6781_v4 = vld [vmem:[#allocation55_spill] sm:$0xff] }
 0x4d5   :  { %2771 = vmatpush.bf16.msrb.mxu2 %v6771_v0  ;;  %2784 = vmatpush.bf16.msrb.mxu3 %v6772_v28  ;;  %v6782_v0 = vld [vmem:[#allocation56_spill] sm:$0xff]  ;;  %v6783_v28 = vld [vmem:[#allocation57_spill] sm:$0xff] }
 0x4d7   :  { %2797 = vmatpush.bf16.msrb.mxu0 %v6773_v36  ;;  %2810 = vmatpush.bf16.msra.mxu1 %v6774_v44  ;;  %v6784_v36 = vld [vmem:[#allocation58_spill] sm:$0xff]  ;;  %v6785_v44 = vld [vmem:[#allocation59_spill] sm:$0xff] }
 0x4d9   :  { %2772 = vmatpush.bf16.msrb.mxu2 %v6775_v61  ;;  %2785 = vmatpush.bf16.msrb.mxu3 %v6776_v41  ;;  %v6786_v61 = vld [vmem:[#allocation60_spill] sm:$0xff]  ;;  %v6787_v41 = vld [vmem:[#allocation61_spill] sm:$0xff] }
 0x4db   :  { %2798 = vmatpush.bf16.msrb.mxu0 %v6779_v54  ;;  %2811 = vmatpush.bf16.msra.mxu1 %v6780_v47  ;;  %v6790_v54 = vld [vmem:[#allocation65_spill] sm:$0xff]  ;;  %v6791_v47 = vld [vmem:[#allocation67_spill] sm:$0xff] }
 0x4dd   :  { %2817 = vmatpush.bf16.msra.mxu2 %v6777_v18  ;;  %2830 = vmatpush.bf16.msra.mxu3 %v6778_v33  ;;  %v6788_v18 = vld [vmem:[#allocation62_spill] sm:$0xff]  ;;  %v6789_v33 = vld [vmem:[#allocation63_spill] sm:$0xff] }
 0x4df   :  { %2843 = vmatpush.bf16.msra.mxu0 %v6781_v4  ;;  %2856 = vmatpush.bf16.msrb.mxu1 %v6782_v0  ;;  %v6792_v4 = vld [vmem:[#allocation68_spill] sm:$0xff]  ;;  %v6793_v0 = vld [vmem:[#allocation69_spill] sm:$0xff] }
 0x4e1   :  { %2818 = vmatpush.bf16.msra.mxu2 %v6783_v28  ;;  %2831 = vmatpush.bf16.msra.mxu3 %v6784_v36  ;;  %v6794_v28 = vld [vmem:[#allocation70_spill] sm:$0xff]  ;;  %v6795_v36 = vld [vmem:[#allocation71_spill] sm:$0xff] }
 0x4e3   :  { %2844 = vmatpush.bf16.msra.mxu0 %v6785_v44  ;;  %2857 = vmatpush.bf16.msrb.mxu1 %v6786_v61  ;;  %v6796_v44 = vld [vmem:[#allocation72_spill] sm:$0xff]  ;;  %v6797_v61 = vld [vmem:[#allocation73_spill] sm:$0xff] }
 0x4e5   :  { %2819 = vmatpush.bf16.msra.mxu2 %v6787_v41  ;;  %2832 = vmatpush.bf16.msra.mxu3 %v6788_v18  ;;  %v6798_v41 = vld [vmem:[#allocation75_spill] sm:$0xff]  ;;  %v6799_v18 = vld [vmem:[#allocation77_spill] sm:$0xff] }
 0x4e7   :  { %2845 = vmatpush.bf16.msra.mxu0 %v6789_v33  ;;  %2858 = vmatpush.bf16.msrb.mxu1 %v6790_v54  ;;  %v6800_v33 = vld [vmem:[#allocation78_spill] sm:$0xff]  ;;  %v6801_v54 = vld [vmem:[#allocation79_spill] sm:$0xff] }
 0x4e9   :  { %2820 = vmatpush.bf16.msra.mxu2 %v6791_v47  ;;  %2833 = vmatpush.bf16.msra.mxu3 %v6792_v4  ;;  %v6802_v47 = vld [vmem:[#allocation80_spill] sm:$0xff]  ;;  %v6803_v4 = vld [vmem:[#allocation81_spill] sm:$0xff] }
 0x4eb   :  { %2846 = vmatpush.bf16.msra.mxu0 %v6793_v0  ;;  %2859 = vmatpush.bf16.msrb.mxu1 %v6794_v28  ;;  %v6804_v0 = vld [vmem:[#allocation82_spill] sm:$0xff]  ;;  %v6805_v28 = vld [vmem:[#allocation83_spill] sm:$0xff] }
 0x4ed   :  { %2821 = vmatpush.bf16.msra.mxu2 %v6795_v36  ;;  %2834 = vmatpush.bf16.msra.mxu3 %v6796_v44  ;;  %v6806_v36 = vld [vmem:[#allocation85_spill] sm:$0xff]  ;;  %v6807_v44 = vld [vmem:[#allocation87_spill] sm:$0xff] }
 0x4ef   :  { %2847 = vmatpush.bf16.msra.mxu0 %v6797_v61  ;;  %2860 = vmatpush.bf16.msrb.mxu1 %v6798_v41  ;;  %v6808_v61 = vld [vmem:[#allocation88_spill] sm:$0xff]  ;;  %v6809_v41 = vld [vmem:[#allocation89_spill] sm:$0xff] }
 0x4f1   :  { %2822 = vmatpush.bf16.msra.mxu2 %v6799_v18  ;;  %2835 = vmatpush.bf16.msra.mxu3 %v6800_v33  ;;  %v6810_v18 = vld [vmem:[#allocation90_spill] sm:$0xff] }
 0x4f3   :  { %2848 = vmatpush.bf16.msra.mxu0 %v6801_v54  ;;  %2861 = vmatpush.bf16.msrb.mxu1 %v6802_v47 }
 0x4f5   :  { %2823 = vmatpush.bf16.msra.mxu2 %v6803_v4  ;;  %2836 = vmatpush.bf16.msra.mxu3 %v6804_v0 }
 0x4f7   :  { %2849 = vmatpush.bf16.msra.mxu0 %v6805_v28  ;;  %2862 = vmatpush.bf16.msrb.mxu1 %v6806_v36  ;;  %v6811_v36 = vld [vmem:[#allocation91_spill] sm:$0xff] }
 0x4f9   :  { %2824 = vmatpush.bf16.msra.mxu2 %v6807_v44  ;;  %2837 = vmatpush.bf16.msra.mxu3 %v6808_v61 }
 0x4fb   :  { %2850 = vmatpush.bf16.msra.mxu0 %v6809_v41  ;;  %2863 = vmatpush.bf16.msrb.mxu1 %v6810_v18  ;;  %v6812_v18 = vld [vmem:[#allocation92_spill] sm:$0xff] }
 0x519   :  { %v2501_v33 = vpop.f32.mrf.mxu0  ;;  %v2514_v54 = vpop.f32.mrf.mxu1 }
 0x51e   :  { %v2475_v31 = vpop.f32.mrf.mxu2  ;;  %v2488_v47 = vpop.f32.mrf.mxu3 }
 0x521   :  { %v2503_v19 = vpop.f32.mrf.mxu0  ;;  %v2516_v4 = vpop.f32.mrf.mxu1 }
 0x526   :  { %v2477_v9 = vpop.f32.mrf.mxu2  ;;  %v2490_v0 = vpop.f32.mrf.mxu3 }
 0x529   :  { %v2553_v30 = vpop.f32.mrf.mxu0  ;;  %v2566_v28 = vpop.f32.mrf.mxu1 }
 0x52a   :  { %v2567_v3 = vadd.f32 %v2566_v28, %v2514_v54 }
 0x52c   :  { %v2573_v50 = vadd.f32 %v2567_v3, %v6811_v36 }
 0x52e   :  { %v4116_v44 = vmul.f32 -1.442695, %v2573_v50  ;;  %v2527_v63 = vpop.f32.mrf.mxu2  ;;  %v2540_v61 = vpop.f32.mrf.mxu3  ;;  %v6814_v50 = vld [vmem:[#allocation66_spill] sm:$0xff] }
 0x52f   :  { %v2528_v7 = vadd.f32 %v2527_v63, %v2475_v31  ;;  %v2541_v41 = vadd.f32 %v2540_v61, %v2488_v47  ;;  %v2643_v36 = vunpack.c.h.bf16 %v6814_v50 }
 0x530   :  { %4422 = vpow2.f32 %v4116_v44 }
 0x531   :  { %v2570_v55 = vadd.f32 %v2528_v7, %v6812_v18  ;;  %v2571_v11 = vadd.f32 %v2541_v41, %v6813_v38  ;;  %v2555_v29 = vpop.f32.mrf.mxu0  ;;  %v2568_v19 = vpop.f32.mrf.mxu1 }
 0x533   :  { %v4114_v4 = vmul.f32 -1.442695, %v2570_v55  ;;  %v4115_v9 = vmul.f32 -1.442695, %v2571_v11  ;;  %v6815_v55 = vld [vmem:[#allocation64_spill] sm:$0xff] }
 0x534   :  { %v2640_v41 = vunpack.c.l.bf16 %v6815_v55 }
 0x535   :  { %4424 = vpow2.f32 %v4114_v4  ;;  %v2641_v4 = vunpack.c.h.bf16 %v6815_v55 }
 0x536   :  { %v4423_v0 = vpop.eup %4422  ;;  %4426 = vpow2.f32 %v4115_v9  ;;  %v2529_v54 = vpop.f32.mrf.mxu2 }
 0x537   :  { %v2542_v28 = vpop.f32.mrf.mxu3  ;;  %v5863_v3 = vadd.f32 1.0, %v4423_v0  ;;  %v2554_v0 = vadd.f32 %v2553_v30, %v2501_v33 }
 0x539   :  { %4428 = vrcp.f32 %v5863_v3  ;;  %vm2622_vm6 = vweird.f32 %v5863_v3 }
 0x53b   :  { %v5866_v63 = vpop.f32.mrf.mxu0  ;;  %v2692_v31 = vpop.f32.mrf.mxu1 }
 0x53c   :  { %v4425_v47 = vpop.eup %4424  ;;  %v2699_v7 = vadd.f32 %v2692_v31, %v2643_v36 }
 0x53d   :  { %v4427_v44 = vpop.eup %4426  ;;  %v2577_v61 = vadd.f32 1.0, %v4425_v47 }
 0x53e   :  { %v2596_v29 = vadd.f32 1.0, %v4427_v44  ;;  %v4119_v11 = vmul.f32 -1.442695, %v2699_v7  ;;  %v2572_v7 = vadd.f32 %v2554_v0, %v6816_v35 }
 0x53f   :  { %4430 = vrcp.f32 %v2577_v61  ;;  %v2653_v19 = vpop.f32.mrf.mxu2  ;;  %v2666_v9 = vpop.f32.mrf.mxu3  ;;  %vm2583_vm15 = vweird.f32 %v2577_v61 }
 0x540   :  { %4432 = vrcp.f32 %v2596_v29  ;;  %v2696_v54 = vadd.f32 %v2653_v19, %v2640_v41  ;;  %v2697_v28 = vadd.f32 %v2666_v9, %v2641_v4  ;;  %v5871_v31 = vpop.eup %4428  ;;  %v2589_v41 = vand.u32 2147483648, %v2577_v61 }
 0x541   :  { %4434 = vpow2.f32 %v4119_v11  ;;  %v2618_v30 = vmul.f32 %v5871_v31, %v5863_v3  ;;  %v2587_v9 = vand.u32 2147483647, %v2577_v61  ;;  %vm2602_vm1 = vweird.f32 %v2596_v29 }
 0x542   :  { %v4117_v47 = vmul.f32 -1.442695, %v2696_v54  ;;  %v4118_v18 = vmul.f32 -1.442695, %v2697_v28  ;;  %v2608_v54 = vand.u32 2147483648, %v2596_v29  ;;  %vm2623_vm5 = vweird.f32 %v5871_v31 }
 0x543   :  { %v2681_v38 = vpop.f32.mrf.mxu0  ;;  %v2694_v36 = vpop.f32.mrf.mxu1  ;;  %v2606_v28 = vand.u32 2147483647, %v2596_v29  ;;  %vm2588_vm2 = vcmp.eq.f32.partialorder %v2587_v9, 8.507059e+37  ;;  %vm5894_vm7 = vmor %vm2622_vm6, %vm2623_vm5 }
 0x544   :  { %4436 = vpow2.f32 %v4117_v47  ;;  %v2619_v47 = vsub.f32 1.0, %v2618_v30 }
 0x545   :  { %v4431_v44 = vpop.eup %4430  ;;  %4438 = vpow2.f32 %v4118_v18  ;;  %vm2607_vm4 = vcmp.eq.f32.partialorder %v2606_v28, 8.507059e+37 }
 0x546   :  { %v4433_v53 = vpop.eup %4432  ;;  %v2579_v5 = vmul.f32 %v4431_v44, %v2577_v61  ;;  %4440 = vtanh.f32 %v2572_v7  ;;  %vm2584_vm13 = vweird.f32 %v4431_v44  ;;  %v2620_v61 = vmul.f32 %v5871_v31, %v2619_v47 }
 0x547   :  { %v2598_v15 = vmul.f32 %v4433_v53, %v2596_v29  ;;  %v2655_v55 = vpop.f32.mrf.mxu2  ;;  %v2668_v11 = vpop.f32.mrf.mxu3  ;;  %vm2603_vm14 = vweird.f32 %v4433_v53  ;;  %vm2585_vm0 = vmor %vm2583_vm15, %vm2584_vm13 }
 0x548   :  { %v2580_v33 = vsub.f32 1.0, %v2579_v5  ;;  %v4435_v38 = vpop.eup %4434  ;;  %v2590_v55 = vor.u32 1.1754944e-38, %v2589_v41  ;;  %vm2604_vm3 = vmor %vm2602_vm1, %vm2603_vm14  ;;  %v2621_v9 = vadd.f32 %v5871_v31, %v2620_v61 }
 0x549   :  { %v2599_v19 = vsub.f32 1.0, %v2598_v15  ;;  %v5876_v35 = vadd.f32 1.0, %v4435_v38 }
 0x54a   :  { %v2581_v4 = vmul.f32 %v4431_v44, %v2580_v33  ;;  %v4437_v36 = vpop.eup %4436  ;;  %v2609_v33 = vor.u32 1.1754944e-38, %v2608_v54 }
 0x54b   :  { %v2600_v0 = vmul.f32 %v4433_v53, %v2599_v19  ;;  %v4439_v5 = vpop.eup %4438  ;;  %v2703_v7 = vadd.f32 1.0, %v4437_v36 }
 0x54c   :  { %v2582_v18 = vadd.f32 %v4431_v44, %v2581_v4  ;;  %v2722_v19 = vadd.f32 1.0, %v4439_v5  ;;  %v4441_v16 = vpop.eup %4440  ;;  %v2628_v4 = vand.u32 2147483648, %v5863_v3 }
 0x54d   :  { %v2601_v11 = vadd.f32 %v4433_v53, %v2600_v0  ;;  %4442 = vrcp.f32 %v2703_v7  ;;  %v2715_v5 = vand.u32 2147483648, %v2703_v7  ;;  %vm2709_vm10 = vweird.f32 %v2703_v7 }
 0x54e   :  { %v2586_v15 = vsel %vm2585_vm0, %v4431_v44, %v2582_v18  ;;  %4444 = vrcp.f32 %v5876_v35  ;;  %v2642_v44 = vunpack.c.l.bf16 %v6814_v50  ;;  %v2629_v36 = vor.u32 1.1754944e-38, %v2628_v4 }
 0x54f   :  { %v2591_v51 = vsel %vm2588_vm2, %v2590_v55, %v2586_v15  ;;  %v2605_v21 = vsel %vm2604_vm3, %v4433_v53, %v2601_v11  ;;  %4446 = vrcp.f32 %v2722_v19  ;;  %v2713_v18 = vand.u32 2147483647, %v2703_v7 }
 0x550   :  { %v2633_v30 = vmul.f32 %v4441_v16, %v2591_v51  ;;  %v2610_v38 = vsel %vm2607_vm4, %v2609_v33, %v2605_v21  ;;  %v2698_v54 = vadd.f32 %v5866_v63, %v2642_v44  ;;  %v2626_v51 = vand.u32 2147483647, %v5863_v3 }
 0x551   :  { %v2632_v29 = vmul.f32 %v2610_v38, %v5733_v22  ;;  %v2625_v63 = vsel %vm5894_vm7, %v5871_v31, %v2621_v9  ;;  %v2732_v15 = vand.u32 2147483647, %v2722_v19  ;;  %v2734_v33 = vand.u32 2147483648, %v2722_v19 }
 0x552   :  { %vm2627_vm9 = vcmp.eq.f32.partialorder %v2626_v51, 8.507059e+37  ;;  %vm2714_vm13 = vcmp.eq.f32.partialorder %v2713_v18, 8.507059e+37  ;;  %v2716_v44 = vor.u32 1.1754944e-38, %v2715_v5  ;;  %vm2728_vm14 = vweird.f32 %v2722_v19 }
 0x553   :  { %v5883_v41 = vadd.f32 %v2633_v30, %v2632_v29  ;;  %v4443_v53 = vpop.eup %4442  ;;  %v2630_v61 = vsel %vm2627_vm9, %v2629_v36, %v2625_v63  ;;  %v2735_v51 = vor.u32 1.1754944e-38, %v2734_v33  ;;  %vm2733_vm0 = vcmp.eq.f32.partialorder %v2732_v15, 8.507059e+37  ;;  %v6821_v15 = vld [vmem:[#allocation15_spill] sm:$0xff]  ;;  %v6822_v33 = vld [vmem:[#allocation16_spill] sm:$0xff] }
 0x554   :  { %v5890_v21 = vpop.eup %4444  ;;  %v2705_v22 = vmul.f32 %v4443_v53, %v2703_v7  ;;  %vm2710_vm8 = vweird.f32 %v4443_v53  ;;  %vm2748_vm2 = vweird.f32 %v5876_v35 }
 0x555   :  { %4448 = vtanh.f32 %v5883_v41  ;;  %v4447_v16 = vpop.eup %4446  ;;  %v2744_v47 = vmul.f32 %v5890_v21, %v5876_v35  ;;  %vm2711_vm12 = vmor %vm2709_vm10, %vm2710_vm8  ;;  %vm2749_vm1 = vweird.f32 %v5890_v21 }
 0x556   :  { %v2706_v0 = vsub.f32 1.0, %v2705_v22  ;;  %v2724_v28 = vmul.f32 %v4447_v16, %v2722_v19  ;;  %4450 = vtanh.f32 %v2698_v54  ;;  %vm2729_vm11 = vweird.f32 %v4447_v16  ;;  %vm2750_vm3 = vmor %vm2748_vm2, %vm2749_vm1 }
 0x557   :  { %v2745_v29 = vsub.f32 1.0, %v2744_v47  ;;  %vm2730_vm15 = vmor %vm2728_vm14, %vm2729_vm11 }
 0x558   :  { %v2707_v55 = vmul.f32 %v4443_v53, %v2706_v0  ;;  %v2725_v3 = vsub.f32 1.0, %v2724_v28 }
 0x559   :  { %v2746_v28 = vmul.f32 %v5890_v21, %v2745_v29  ;;  %v6827_v29 = vld [vmem:[#allocation23_spill] sm:$0xff] }
 0x55a   :  { %v2708_v30 = vadd.f32 %v4443_v53, %v2707_v55  ;;  %v2726_v38 = vmul.f32 %v4447_v16, %v2725_v3 }
 0x55b   :  { %v4449_v11 = vpop.eup %4448 }
 0x55c   :  { %v2636_v31 = vmul.f32 %v4449_v11, %v2630_v61  ;;  %v2712_v4 = vsel %vm2711_vm12, %v4443_v53, %v2708_v30  ;;  %v2727_v9 = vadd.f32 %v4447_v16, %v2726_v38  ;;  %v4451_v22 = vpop.eup %4450  ;;  %v2747_v53 = vadd.f32 %v5890_v21, %v2746_v28  ;;  %v6820_v11 = vld [vmem:[#allocation14_spill] sm:$0xff]  ;;  %v6823_v61 = vld [vmem:[#allocation17_spill] sm:$0xff]  ;;  %v6825_v38 = vld [vmem:[#allocation19_spill] sm:$0xff] }
 0x55d   :  { %v2717_v50 = vsel %vm2714_vm13, %v2716_v44, %v2712_v4  ;;  %v6824_v30 = vld [vmem:[#allocation18_spill] sm:$0xff]  ;;  %v6828_v44 = vld [vmem:[#allocation24_spill] sm:$0xff]  ;;  %v6829_v4 = vld [vmem:[#allocation25_spill] sm:$0xff] }
 0x55e   :  { %v2764_v54 = vpack.c.bf16 %v2636_v31, %v2636_v31  ;;  %v2759_v7 = vmul.f32 %v4451_v22, %v2717_v50  ;;  %v2731_v0 = vsel %vm2730_vm15, %v4447_v16, %v2727_v9  ;;  %v2754_v16 = vand.u32 2147483648, %v5876_v35  ;;  %v6826_v31 = vld [vmem:[#allocation20_spill] sm:$0xff]  ;;  %v6830_v9 = vld [vmem:[#allocation26_spill] sm:$0xff]  ;;  %v6833_v50 = vld [vmem:[#allocation29_spill] sm:$0xff] }
 0x55f   :  { %v2736_v63 = vsel %vm2733_vm0, %v2735_v51, %v2731_v0  ;;  %v2751_v47 = vsel %vm2750_vm3, %v5890_v21, %v2747_v53  ;;  %v6819_v21 = vld [vmem:[#allocation13_spill] sm:$0xff]  ;;  %v6832_v22 = vld [vmem:[#allocation28_spill] sm:$0xff]  ;;  %v6834_v51 = vld [vmem:[#allocation30_spill] sm:$0xff] }
 0x560   :  { %2773 = vmatmul.bf16.vlgmr.msrb.gmra.mxu2 %v2764_v54  ;;  %2786 = vmatmul.bf16.vlgmr.msrb.gmra.mxu3 %v2764_v54  ;;  %v2758_v36 = vmul.f32 %v2736_v63, %v5759_v23  ;;  %v2752_v23 = vand.u32 2147483647, %v5876_v35  ;;  %v2755_v18 = vor.u32 1.1754944e-38, %v2754_v16  ;;  %v6836_v0 = vld [vmem:[#allocation34_spill] sm:$0xff]  ;;  %v6837_v28 = vld [vmem:[#allocation35_spill] sm:$0xff]  ;;  %v6838_v63 = vld [vmem:[#allocation36_spill] sm:$0xff] }
 0x561   :  { %2799 = vmatmul.bf16.vlgmr.msrb.gmra.mxu0 %v2764_v54  ;;  %2812 = vmatmul.bf16.vlgmr.msra.gmra.mxu1 %v2764_v54  ;;  %v6831_v54 = vld [vmem:[#allocation27_spill] sm:$0xff]  ;;  %v6840_v53 = vld [vmem:[#allocation38_spill] sm:$0xff] }
 0x562   :  { %2943 = vmatpush.bf16.msrb.mxu2 %v4732_v43  ;;  %2956 = vmatpush.bf16.msrb.mxu3 %v4729_v39  ;;  %v5909_v19 = vadd.f32 %v2759_v7, %v2758_v36  ;;  %vm2753_vm4 = vcmp.eq.f32.partialorder %v2752_v23, 8.507059e+37  ;;  %v6835_v7 = vld [vmem:[#allocation33_spill] sm:$0xff]  ;;  %v6841_v16 = vld [vmem:[#allocation39_spill] sm:$0xff]  ;;  %v6842_v23 = vld [vmem:[#allocation40_spill] sm:$0xff] }
 0x563   :  { %2969 = vmatpush.bf16.msrb.mxu0 %v4751_v60  ;;  %2982 = vmatpush.bf16.msra.mxu1 %v4793_v57  ;;  %v2756_v55 = vsel %vm2753_vm4, %v2755_v18, %v2751_v47  ;;  %v6839_v36 = vld [vmem:[#allocation37_spill] sm:$0xff]  ;;  %v6843_v47 = vld [vmem:[#allocation43_spill] sm:$0xff]  ;;  %v6844_v18 = vld [vmem:[#allocation44_spill] sm:$0xff] }
 0x564   :  { %4452 = vtanh.f32 %v5909_v19 }
 0x566   :  { %2944 = vmatpush.bf16.msrb.mxu2 %v4738_v48  ;;  %2957 = vmatpush.bf16.msrb.mxu3 %v4734_v45 }
 0x567   :  { %2970 = vmatpush.bf16.msrb.mxu0 %v4762_v10  ;;  %2983 = vmatpush.bf16.msra.mxu1 %v4802_v2 }
 0x56a   :  { %2945 = vmatpush.bf16.msrb.mxu2 %v4749_v56  ;;  %2958 = vmatpush.bf16.msrb.mxu3 %v4741_v52  ;;  %v4453_v5 = vpop.eup %4452 }
 0x56b   :  { %2971 = vmatpush.bf16.msrb.mxu0 %v4771_v20  ;;  %2984 = vmatpush.bf16.msra.mxu1 %v4811_v13  ;;  %v2762_v35 = vmul.f32 %v4453_v5, %v2756_v55  ;;  %v6845_v5 = vld [vmem:[#allocation45_spill] sm:$0xff]  ;;  %v6846_v55 = vld [vmem:[#allocation46_spill] sm:$0xff] }
 0x56d   :  { %v2763_v3 = vpack.c.bf16 %v2762_v35, %v2762_v35  ;;  %v6847_v35 = vld [vmem:[#allocation47_spill] sm:$0xff] }
 0x56e   :  { %2946 = vmatpush.bf16.msrb.mxu2 %v4760_v8  ;;  %2959 = vmatpush.bf16.msrb.mxu3 %v4754_v62 }
 0x56f   :  { %2972 = vmatpush.bf16.msrb.mxu0 %v4785_v37  ;;  %2985 = vmatpush.bf16.msra.mxu1 %v4820_v27 }
 0x570   :  { %2825 = vmatmul.bf16.vlgmr.msra.gmra.mxu2 %v2763_v3  ;;  %2838 = vmatmul.bf16.vlgmr.msra.gmra.mxu3 %v2763_v3 }
 0x571   :  { %2851 = vmatmul.bf16.vlgmr.msra.gmra.mxu0 %v2763_v3  ;;  %2864 = vmatmul.bf16.vlgmr.msrb.gmra.mxu1 %v2763_v3 }
 0x572   :  { %2947 = vmatpush.bf16.msrb.mxu2 %v4768_v17  ;;  %2960 = vmatpush.bf16.msrb.mxu3 %v4766_v14 }
 0x573   :  { %2973 = vmatpush.bf16.msrb.mxu0 %v4791_v49  ;;  %2986 = vmatpush.bf16.msra.mxu1 %v4824_v34 }
 0x576   :  { %2948 = vmatpush.bf16.msrb.mxu2 %v4774_v24  ;;  %2961 = vmatpush.bf16.msrb.mxu3 %v4777_v26 }
 0x577   :  { %2974 = vmatpush.bf16.msrb.mxu0 %v4800_v1  ;;  %2987 = vmatpush.bf16.msra.mxu1 %v4827_v40 }
 0x57a   :  { %2949 = vmatpush.bf16.msrb.mxu2 %v4783_v32  ;;  %2962 = vmatpush.bf16.msrb.mxu3 %v4796_v59 }
 0x57b   :  { %2975 = vmatpush.bf16.msrb.mxu0 %v4808_v12  ;;  %2988 = vmatpush.bf16.msra.mxu1 %v4830_v46 }
 0x57e   :  { %2950 = vmatpush.bf16.msrb.mxu2 %v4789_v42  ;;  %2963 = vmatpush.bf16.msrb.mxu3 %v4805_v6 }
 0x57f   :  { %2976 = vmatpush.bf16.msrb.mxu0 %v4817_v25  ;;  %2989 = vmatpush.bf16.msra.mxu1 %v4835_v58 }
 0x581   :  { %2951 = vmatmul.bf16.vlgmr.msrb.gmra.mxu2 %v2763_v3  ;;  %2964 = vmatmul.bf16.vlgmr.msrb.gmra.mxu3 %v2763_v3 }
 0x582   :  { %3064 = vmatpush.bf16.msra.mxu2 %v6819_v21  ;;  %3077 = vmatpush.bf16.msra.mxu3 %v6820_v11 }
 0x583   :  { %2977 = vmatmul.bf16.vlgmr.msrb.gmra.mxu0 %v2763_v3  ;;  %2990 = vmatmul.bf16.vlgmr.msra.gmra.mxu1 %v2763_v3  ;;  %v6848_v3 = vld [vmem:[#allocation48_spill] sm:$0xff] }
 0x584   :  { %3090 = vmatpush.bf16.msra.mxu0 %v6821_v15  ;;  %3103 = vmatpush.bf16.msrb.mxu1 %v6822_v33 }
 0x586   :  { %3065 = vmatpush.bf16.msra.mxu2 %v6823_v61  ;;  %3078 = vmatpush.bf16.msra.mxu3 %v6824_v30 }
 0x588   :  { %3091 = vmatpush.bf16.msra.mxu0 %v6825_v38  ;;  %3104 = vmatpush.bf16.msrb.mxu1 %v6826_v31  ;;  %v6888_v38 = vld [vmem:[#allocation22_spill] sm:$0xff] }
 0x58a   :  { %3066 = vmatpush.bf16.msra.mxu2 %v6827_v29  ;;  %3079 = vmatpush.bf16.msra.mxu3 %v6828_v44  ;;  %v6885_v44 = vld [vmem:[#allocation93_spill] sm:$0xff] }
 0x58c   :  { %3092 = vmatpush.bf16.msra.mxu0 %v6829_v4  ;;  %3105 = vmatpush.bf16.msrb.mxu1 %v6830_v9 }
 0x58e   :  { %3067 = vmatpush.bf16.msra.mxu2 %v6831_v54  ;;  %3080 = vmatpush.bf16.msra.mxu3 %v6832_v22 }
 0x590   :  { %3093 = vmatpush.bf16.msra.mxu0 %v6833_v50  ;;  %3106 = vmatpush.bf16.msrb.mxu1 %v6834_v51 }
 0x592   :  { %3068 = vmatpush.bf16.msra.mxu2 %v6835_v7  ;;  %3081 = vmatpush.bf16.msra.mxu3 %v6836_v0 }
 0x594   :  { %3094 = vmatpush.bf16.msra.mxu0 %v6837_v28  ;;  %3107 = vmatpush.bf16.msrb.mxu1 %v6838_v63  ;;  %v6849_v63 = vld [vmem:[#allocation52_spill] sm:$0xff] }
 0x596   :  { %3069 = vmatpush.bf16.msra.mxu2 %v6839_v36  ;;  %3082 = vmatpush.bf16.msra.mxu3 %v6840_v53  ;;  %v6850_v36 = vld [vmem:[#allocation54_spill] sm:$0xff]  ;;  %v6851_v53 = vld [vmem:[#allocation49_spill] sm:$0xff] }
 0x598   :  { %3095 = vmatpush.bf16.msra.mxu0 %v6841_v16  ;;  %3108 = vmatpush.bf16.msrb.mxu1 %v6842_v23  ;;  %v6852_v16 = vld [vmem:[#allocation50_spill] sm:$0xff]  ;;  %v6853_v23 = vld [vmem:[#allocation55_spill] sm:$0xff] }
 0x59a   :  { %3070 = vmatpush.bf16.msra.mxu2 %v6843_v47  ;;  %3083 = vmatpush.bf16.msra.mxu3 %v6844_v18  ;;  %v6854_v47 = vld [vmem:[#allocation56_spill] sm:$0xff]  ;;  %v6855_v18 = vld [vmem:[#allocation57_spill] sm:$0xff] }
 0x59c   :  { %3096 = vmatpush.bf16.msra.mxu0 %v6845_v5  ;;  %3109 = vmatpush.bf16.msrb.mxu1 %v6846_v55  ;;  %v6856_v5 = vld [vmem:[#allocation58_spill] sm:$0xff]  ;;  %v6857_v55 = vld [vmem:[#allocation59_spill] sm:$0xff] }
 0x59e   :  { %3071 = vmatpush.bf16.msra.mxu2 %v6847_v35  ;;  %3084 = vmatpush.bf16.msra.mxu3 %v6848_v3  ;;  %v6858_v35 = vld [vmem:[#allocation60_spill] sm:$0xff]  ;;  %v6859_v3 = vld [vmem:[#allocation61_spill] sm:$0xff] }
 0x5a0   :  { %3097 = vmatpush.bf16.msra.mxu0 %v6851_v53  ;;  %3110 = vmatpush.bf16.msrb.mxu1 %v6852_v16  ;;  %v6862_v53 = vld [vmem:[#allocation65_spill] sm:$0xff]  ;;  %v6863_v16 = vld [vmem:[#allocation67_spill] sm:$0xff] }
 0x5a2   :  { %3116 = vmatpush.bf16.msrb.mxu2 %v6849_v63  ;;  %3129 = vmatpush.bf16.msrb.mxu3 %v6850_v36  ;;  %v6860_v63 = vld [vmem:[#allocation62_spill] sm:$0xff]  ;;  %v6861_v36 = vld [vmem:[#allocation63_spill] sm:$0xff] }
 0x5a4   :  { %3142 = vmatpush.bf16.msrb.mxu0 %v6853_v23  ;;  %3155 = vmatpush.bf16.msra.mxu1 %v6854_v47  ;;  %v6864_v23 = vld [vmem:[#allocation68_spill] sm:$0xff]  ;;  %v6865_v47 = vld [vmem:[#allocation69_spill] sm:$0xff] }
 0x5a6   :  { %3117 = vmatpush.bf16.msrb.mxu2 %v6855_v18  ;;  %3130 = vmatpush.bf16.msrb.mxu3 %v6856_v5  ;;  %v6866_v18 = vld [vmem:[#allocation70_spill] sm:$0xff]  ;;  %v6867_v5 = vld [vmem:[#allocation71_spill] sm:$0xff] }
 0x5a8   :  { %3143 = vmatpush.bf16.msrb.mxu0 %v6857_v55  ;;  %3156 = vmatpush.bf16.msra.mxu1 %v6858_v35  ;;  %v6868_v55 = vld [vmem:[#allocation72_spill] sm:$0xff]  ;;  %v6869_v35 = vld [vmem:[#allocation73_spill] sm:$0xff] }
 0x5aa   :  { %3118 = vmatpush.bf16.msrb.mxu2 %v6859_v3  ;;  %3131 = vmatpush.bf16.msrb.mxu3 %v6860_v63  ;;  %v6870_v3 = vld [vmem:[#allocation75_spill] sm:$0xff]  ;;  %v6871_v63 = vld [vmem:[#allocation77_spill] sm:$0xff] }
 0x5ac   :  { %3144 = vmatpush.bf16.msrb.mxu0 %v6861_v36  ;;  %3157 = vmatpush.bf16.msra.mxu1 %v6862_v53  ;;  %v6872_v36 = vld [vmem:[#allocation78_spill] sm:$0xff]  ;;  %v6873_v53 = vld [vmem:[#allocation79_spill] sm:$0xff] }
 0x5ae   :  { %3119 = vmatpush.bf16.msrb.mxu2 %v6863_v16  ;;  %3132 = vmatpush.bf16.msrb.mxu3 %v6864_v23  ;;  %v6874_v16 = vld [vmem:[#allocation80_spill] sm:$0xff]  ;;  %v6875_v23 = vld [vmem:[#allocation81_spill] sm:$0xff] }
 0x5b0   :  { %3145 = vmatpush.bf16.msrb.mxu0 %v6865_v47  ;;  %3158 = vmatpush.bf16.msra.mxu1 %v6866_v18  ;;  %v6876_v47 = vld [vmem:[#allocation82_spill] sm:$0xff]  ;;  %v6877_v18 = vld [vmem:[#allocation83_spill] sm:$0xff] }
 0x5b2   :  { %3120 = vmatpush.bf16.msrb.mxu2 %v6867_v5  ;;  %3133 = vmatpush.bf16.msrb.mxu3 %v6868_v55  ;;  %v6878_v5 = vld [vmem:[#allocation85_spill] sm:$0xff]  ;;  %v6879_v55 = vld [vmem:[#allocation87_spill] sm:$0xff] }
 0x5b4   :  { %3146 = vmatpush.bf16.msrb.mxu0 %v6869_v35  ;;  %3159 = vmatpush.bf16.msra.mxu1 %v6870_v3  ;;  %v6880_v35 = vld [vmem:[#allocation88_spill] sm:$0xff]  ;;  %v6881_v3 = vld [vmem:[#allocation89_spill] sm:$0xff] }
 0x5b6   :  { %3121 = vmatpush.bf16.msrb.mxu2 %v6871_v63  ;;  %3134 = vmatpush.bf16.msrb.mxu3 %v6872_v36  ;;  %v6882_v63 = vld [vmem:[#allocation90_spill] sm:$0xff] }
 0x5b8   :  { %3147 = vmatpush.bf16.msrb.mxu0 %v6873_v53  ;;  %3160 = vmatpush.bf16.msra.mxu1 %v6874_v16 }
 0x5ba   :  { %3122 = vmatpush.bf16.msrb.mxu2 %v6875_v23  ;;  %3135 = vmatpush.bf16.msrb.mxu3 %v6876_v47 }
 0x5bc   :  { %3148 = vmatpush.bf16.msrb.mxu0 %v6877_v18  ;;  %3161 = vmatpush.bf16.msra.mxu1 %v6878_v5  ;;  %v6883_v5 = vld [vmem:[#allocation91_spill] sm:$0xff] }
 0x5be   :  { %3123 = vmatpush.bf16.msrb.mxu2 %v6879_v55  ;;  %3136 = vmatpush.bf16.msrb.mxu3 %v6880_v35 }
 0x5c0   :  { %3149 = vmatpush.bf16.msrb.mxu0 %v6881_v3  ;;  %3162 = vmatpush.bf16.msra.mxu1 %v6882_v63  ;;  %v6884_v63 = vld [vmem:[#allocation92_spill] sm:$0xff] }
 0x5de   :  { %v2800_v36 = vpop.f32.mrf.mxu0  ;;  %v2813_v53 = vpop.f32.mrf.mxu1 }
 0x5e3   :  { %v2774_v28 = vpop.f32.mrf.mxu2  ;;  %v2787_v16 = vpop.f32.mrf.mxu3 }
 0x5e6   :  { %v2802_v0 = vpop.f32.mrf.mxu0  ;;  %v2815_v23 = vpop.f32.mrf.mxu1 }
 0x5eb   :  { %v2776_v7 = vpop.f32.mrf.mxu2  ;;  %v2789_v47 = vpop.f32.mrf.mxu3 }
 0x5ee   :  { %v2852_v51 = vpop.f32.mrf.mxu0  ;;  %v2865_v18 = vpop.f32.mrf.mxu1 }
 0x5ef   :  { %v2866_v50 = vadd.f32 %v2865_v18, %v2813_v53 }
 0x5f1   :  { %v2872_v22 = vadd.f32 %v2866_v50, %v6883_v5 }
 0x5f3   :  { %v4122_v55 = vmul.f32 -1.442695, %v2872_v22  ;;  %v2826_v54 = vpop.f32.mrf.mxu2  ;;  %v2839_v35 = vpop.f32.mrf.mxu3  ;;  %v6886_v22 = vld [vmem:[#allocation76_spill] sm:$0xff] }
 0x5f4   :  { %v2827_v9 = vadd.f32 %v2826_v54, %v2774_v28  ;;  %v2840_v3 = vadd.f32 %v2839_v35, %v2787_v16  ;;  %v2942_v5 = vunpack.c.h.bf16 %v6886_v22 }
 0x5f5   :  { %4454 = vpow2.f32 %v4122_v55 }
 0x5f6   :  { %v2869_v4 = vadd.f32 %v2827_v9, %v6884_v63  ;;  %v2870_v29 = vadd.f32 %v2840_v3, %v6885_v44  ;;  %v2854_v31 = vpop.f32.mrf.mxu0  ;;  %v2867_v0 = vpop.f32.mrf.mxu1 }
 0x5f8   :  { %v4120_v23 = vmul.f32 -1.442695, %v2869_v4  ;;  %v4121_v7 = vmul.f32 -1.442695, %v2870_v29  ;;  %v6887_v4 = vld [vmem:[#allocation74_spill] sm:$0xff] }
 0x5f9   :  { %v2939_v3 = vunpack.c.l.bf16 %v6887_v4 }
 0x5fa   :  { %4456 = vpow2.f32 %v4120_v23  ;;  %v2940_v23 = vunpack.c.h.bf16 %v6887_v4 }
 0x5fb   :  { %v4455_v47 = vpop.eup %4454  ;;  %4458 = vpow2.f32 %v4121_v7  ;;  %v2828_v53 = vpop.f32.mrf.mxu2 }
 0x5fc   :  { %v2841_v18 = vpop.f32.mrf.mxu3  ;;  %v6013_v50 = vadd.f32 1.0, %v4455_v47  ;;  %v2853_v47 = vadd.f32 %v2852_v51, %v2800_v36 }
 0x5fe   :  { %4460 = vrcp.f32 %v6013_v50  ;;  %vm2921_vm14 = vweird.f32 %v6013_v50 }
 0x600   :  { %v6016_v54 = vpop.f32.mrf.mxu0  ;;  %v2991_v28 = vpop.f32.mrf.mxu1 }
 0x601   :  { %v4457_v16 = vpop.eup %4456  ;;  %v2998_v9 = vadd.f32 %v2991_v28, %v2942_v5 }
 0x602   :  { %v4459_v55 = vpop.eup %4458  ;;  %v2876_v35 = vadd.f32 1.0, %v4457_v16 }
 0x603   :  { %v2895_v31 = vadd.f32 1.0, %v4459_v55  ;;  %v4125_v29 = vmul.f32 -1.442695, %v2998_v9  ;;  %v2871_v9 = vadd.f32 %v2853_v47, %v6888_v38 }
 0x604   :  { %4462 = vrcp.f32 %v2876_v35  ;;  %v2952_v0 = vpop.f32.mrf.mxu2  ;;  %v2965_v7 = vpop.f32.mrf.mxu3  ;;  %vm2882_vm7 = vweird.f32 %v2876_v35 }
 0x605   :  { %4464 = vrcp.f32 %v2895_v31  ;;  %v2995_v53 = vadd.f32 %v2952_v0, %v2939_v3  ;;  %v2996_v18 = vadd.f32 %v2965_v7, %v2940_v23  ;;  %v6021_v28 = vpop.eup %4460  ;;  %v2888_v3 = vand.u32 2147483648, %v2876_v35 }
 0x606   :  { %4466 = vpow2.f32 %v4125_v29  ;;  %v2917_v51 = vmul.f32 %v6021_v28, %v6013_v50  ;;  %v2886_v7 = vand.u32 2147483647, %v2876_v35  ;;  %vm2901_vm9 = vweird.f32 %v2895_v31 }
 0x607   :  { %v4123_v16 = vmul.f32 -1.442695, %v2995_v53  ;;  %v4124_v63 = vmul.f32 -1.442695, %v2996_v18  ;;  %v2907_v53 = vand.u32 2147483648, %v2895_v31  ;;  %vm2922_vm13 = vweird.f32 %v6021_v28 }
 0x608   :  { %v2980_v44 = vpop.f32.mrf.mxu0  ;;  %v2993_v5 = vpop.f32.mrf.mxu1  ;;  %v2905_v18 = vand.u32 2147483647, %v2895_v31  ;;  %vm2887_vm10 = vcmp.eq.f32.partialorder %v2886_v7, 8.507059e+37  ;;  %vm6044_vm15 = vmor %vm2921_vm14, %vm2922_vm13 }
 0x609   :  { %4468 = vpow2.f32 %v4123_v16  ;;  %v2918_v16 = vsub.f32 1.0, %v2917_v51 }
 0x60a   :  { %v4463_v55 = vpop.eup %4462  ;;  %4470 = vpow2.f32 %v4124_v63  ;;  %vm2906_vm12 = vcmp.eq.f32.partialorder %v2905_v18, 8.507059e+37 }
 0x60b   :  { %v4465_v30 = vpop.eup %4464  ;;  %v2878_v61 = vmul.f32 %v4463_v55, %v2876_v35  ;;  %4472 = vtanh.f32 %v2871_v9  ;;  %vm2883_vm5 = vweird.f32 %v4463_v55  ;;  %v2919_v35 = vmul.f32 %v6021_v28, %v2918_v16 }
 0x60c   :  { %v2897_v33 = vmul.f32 %v4465_v30, %v2895_v31  ;;  %v2954_v4 = vpop.f32.mrf.mxu2  ;;  %v2967_v29 = vpop.f32.mrf.mxu3  ;;  %vm2902_vm6 = vweird.f32 %v4465_v30  ;;  %vm2884_vm8 = vmor %vm2882_vm7, %vm2883_vm5 }
 0x60d   :  { %v2879_v36 = vsub.f32 1.0, %v2878_v61  ;;  %v4467_v44 = vpop.eup %4466  ;;  %v2889_v4 = vor.u32 1.1754944e-38, %v2888_v3  ;;  %vm2903_vm11 = vmor %vm2901_vm9, %vm2902_vm6  ;;  %v2920_v7 = vadd.f32 %v6021_v28, %v2919_v35 }
 0x60e   :  { %v2898_v0 = vsub.f32 1.0, %v2897_v33  ;;  %v6026_v38 = vadd.f32 1.0, %v4467_v44 }
 0x60f   :  { %v2880_v23 = vmul.f32 %v4463_v55, %v2879_v36  ;;  %v4469_v5 = vpop.eup %4468  ;;  %v2908_v36 = vor.u32 1.1754944e-38, %v2907_v53 }
 0x610   :  { %v2899_v47 = vmul.f32 %v4465_v30, %v2898_v0  ;;  %v4471_v61 = vpop.eup %4470  ;;  %v3002_v9 = vadd.f32 1.0, %v4469_v5 }
 0x611   :  { %v2881_v63 = vadd.f32 %v4463_v55, %v2880_v23  ;;  %v3021_v0 = vadd.f32 1.0, %v4471_v61  ;;  %v4473_v15 = vpop.eup %4472  ;;  %v2927_v23 = vand.u32 2147483648, %v6013_v50 }
 0x612   :  { %v2900_v29 = vadd.f32 %v4465_v30, %v2899_v47  ;;  %4474 = vrcp.f32 %v3002_v9  ;;  %v3014_v61 = vand.u32 2147483648, %v3002_v9  ;;  %vm3008_vm2 = vweird.f32 %v3002_v9 }
 0x613   :  { %v2885_v33 = vsel %vm2884_vm8, %v4463_v55, %v2881_v63  ;;  %4476 = vrcp.f32 %v6026_v38  ;;  %v2941_v55 = vunpack.c.l.bf16 %v6886_v22  ;;  %v2928_v5 = vor.u32 1.1754944e-38, %v2927_v23 }
 0x614   :  { %v2890_v11 = vsel %vm2887_vm10, %v2889_v4, %v2885_v33  ;;  %v2904_v21 = vsel %vm2903_vm11, %v4465_v30, %v2900_v29  ;;  %4478 = vrcp.f32 %v3021_v0  ;;  %v3012_v63 = vand.u32 2147483647, %v3002_v9 }
 0x615   :  { %v2932_v51 = vmul.f32 %v4473_v15, %v2890_v11  ;;  %v2909_v44 = vsel %vm2906_vm12, %v2908_v36, %v2904_v21  ;;  %v2997_v53 = vadd.f32 %v6016_v54, %v2941_v55  ;;  %v2925_v11 = vand.u32 2147483647, %v6013_v50 }
 0x616   :  { %v2931_v31 = vmul.f32 %v2909_v44, %v5883_v41  ;;  %v2924_v54 = vsel %vm6044_vm15, %v6021_v28, %v2920_v7  ;;  %v3031_v33 = vand.u32 2147483647, %v3021_v0  ;;  %v3033_v36 = vand.u32 2147483648, %v3021_v0 }
 0x617   :  { %vm2926_vm1 = vcmp.eq.f32.partialorder %v2925_v11, 8.507059e+37  ;;  %vm3013_vm5 = vcmp.eq.f32.partialorder %v3012_v63, 8.507059e+37  ;;  %v3015_v55 = vor.u32 1.1754944e-38, %v3014_v61  ;;  %vm3027_vm6 = vweird.f32 %v3021_v0  ;;  %v6920_v63 = vld [vmem:[#allocation48_spill] sm:$0xff] }
 0x618   :  { %v6033_v3 = vadd.f32 %v2932_v51, %v2931_v31  ;;  %v4475_v30 = vpop.eup %4474  ;;  %v2929_v35 = vsel %vm2926_vm1, %v2928_v5, %v2924_v54  ;;  %v3034_v11 = vor.u32 1.1754944e-38, %v3033_v36  ;;  %vm3032_vm8 = vcmp.eq.f32.partialorder %v3031_v33, 8.507059e+37  ;;  %v6921_v61 = vld [vmem:[#allocation52_spill] sm:$0xff]  ;;  %v6925_v33 = vld [vmem:[#allocation55_spill] sm:$0xff] }
 0x619   :  { %v6040_v21 = vpop.eup %4476  ;;  %v3004_v41 = vmul.f32 %v4475_v30, %v3002_v9  ;;  %vm3009_vm0 = vweird.f32 %v4475_v30  ;;  %vm3047_vm10 = vweird.f32 %v6026_v38  ;;  %v6926_v36 = vld [vmem:[#allocation56_spill] sm:$0xff] }
 0x61a   :  { %4480 = vtanh.f32 %v6033_v3  ;;  %v4479_v15 = vpop.eup %4478  ;;  %v3043_v16 = vmul.f32 %v6040_v21, %v6026_v38  ;;  %vm3010_vm4 = vmor %vm3008_vm2, %vm3009_vm0  ;;  %vm3048_vm9 = vweird.f32 %v6040_v21 }
 0x61b   :  { %v3005_v47 = vsub.f32 1.0, %v3004_v41  ;;  %v3023_v18 = vmul.f32 %v4479_v15, %v3021_v0  ;;  %4482 = vtanh.f32 %v2997_v53  ;;  %vm3028_vm3 = vweird.f32 %v4479_v15  ;;  %vm3049_vm11 = vmor %vm3047_vm10, %vm3048_vm9 }
 0x61c   :  { %v3044_v31 = vsub.f32 1.0, %v3043_v16  ;;  %vm3029_vm7 = vmor %vm3027_vm6, %vm3028_vm3  ;;  %v6919_v16 = vld [vmem:[#allocation47_spill] sm:$0xff] }
 0x61d   :  { %v3006_v4 = vmul.f32 %v4475_v30, %v3005_v47  ;;  %v3024_v50 = vsub.f32 1.0, %v3023_v18 }
 0x61e   :  { %v3045_v18 = vmul.f32 %v6040_v21, %v3044_v31  ;;  %v6931_v31 = vld [vmem:[#allocation61_spill] sm:$0xff] }
 0x61f   :  { %v3007_v51 = vadd.f32 %v4475_v30, %v3006_v4  ;;  %v3025_v44 = vmul.f32 %v4479_v15, %v3024_v50  ;;  %v6922_v4 = vld [vmem:[#allocation54_spill] sm:$0xff]  ;;  %v6923_v50 = vld [vmem:[#allocation49_spill] sm:$0xff] }
 0x620   :  { %v4481_v29 = vpop.eup %4480 }
 0x621   :  { %v2935_v28 = vmul.f32 %v4481_v29, %v2929_v35  ;;  %v3011_v23 = vsel %vm3010_vm4, %v4475_v30, %v3007_v51  ;;  %v3026_v7 = vadd.f32 %v4479_v15, %v3025_v44  ;;  %v4483_v41 = vpop.eup %4482  ;;  %v3046_v30 = vadd.f32 %v6040_v21, %v3045_v18  ;;  %v6924_v29 = vld [vmem:[#allocation50_spill] sm:$0xff]  ;;  %v6927_v35 = vld [vmem:[#allocation57_spill] sm:$0xff]  ;;  %v6929_v44 = vld [vmem:[#allocation59_spill] sm:$0xff] }
 0x622   :  { %v3016_v22 = vsel %vm3013_vm5, %v3015_v55, %v3011_v23  ;;  %v6928_v51 = vld [vmem:[#allocation58_spill] sm:$0xff]  ;;  %v6933_v23 = vld [vmem:[#allocation63_spill] sm:$0xff]  ;;  %v6941_v18 = vld [vmem:[#allocation73_spill] sm:$0xff] }
 0x623   :  { %v3063_v53 = vpack.c.bf16 %v2935_v28, %v2935_v28  ;;  %v3058_v9 = vmul.f32 %v4483_v41, %v3016_v22  ;;  %v3030_v47 = vsel %vm3029_vm7, %v4479_v15, %v3026_v7  ;;  %v3053_v15 = vand.u32 2147483648, %v6026_v38  ;;  %v6930_v28 = vld [vmem:[#allocation60_spill] sm:$0xff]  ;;  %v6932_v55 = vld [vmem:[#allocation62_spill] sm:$0xff]  ;;  %v6934_v7 = vld [vmem:[#allocation65_spill] sm:$0xff] }
 0x624   :  { %v3035_v54 = vsel %vm3032_vm8, %v3034_v11, %v3030_v47  ;;  %v6936_v41 = vld [vmem:[#allocation68_spill] sm:$0xff]  ;;  %v6937_v22 = vld [vmem:[#allocation69_spill] sm:$0xff]  ;;  %v6938_v11 = vld [vmem:[#allocation70_spill] sm:$0xff] }
 0x625   :  { %3072 = vmatmul.bf16.vlgmr.msra.gmra.mxu2 %v3063_v53  ;;  %3085 = vmatmul.bf16.vlgmr.msra.gmra.mxu3 %v3063_v53  ;;  %v3057_v5 = vmul.f32 %v3035_v54, %v5909_v19  ;;  %v6916_v19 = vld [vmem:[#allocation44_spill] sm:$0xff]  ;;  %v6942_v54 = vld [vmem:[#allocation75_spill] sm:$0xff] }
 0x626   :  { %3098 = vmatmul.bf16.vlgmr.msra.gmra.mxu0 %v3063_v53  ;;  %3111 = vmatmul.bf16.vlgmr.msrb.gmra.mxu1 %v3063_v53  ;;  %v6935_v53 = vld [vmem:[#allocation67_spill] sm:$0xff]  ;;  %v6940_v47 = vld [vmem:[#allocation72_spill] sm:$0xff] }
 0x627   :  { %3242 = vmatpush.bf16.msra.mxu2 %v4732_v43  ;;  %3255 = vmatpush.bf16.msra.mxu3 %v4729_v39  ;;  %v6059_v0 = vadd.f32 %v3058_v9, %v3057_v5  ;;  %v3051_v39 = vand.u32 2147483647, %v6026_v38  ;;  %v3050_v43 = vsel %vm3049_vm11, %v6040_v21, %v3046_v30  ;;  %v6917_v38 = vld [vmem:[#allocation45_spill] sm:$0xff]  ;;  %v6918_v21 = vld [vmem:[#allocation46_spill] sm:$0xff]  ;;  %v6939_v9 = vld [vmem:[#allocation71_spill] sm:$0xff] }
 0x628   :  { %3268 = vmatpush.bf16.msra.mxu0 %v4751_v60  ;;  %3281 = vmatpush.bf16.msrb.mxu1 %v4793_v57  ;;  %v3054_v60 = vor.u32 1.1754944e-38, %v3053_v15  ;;  %v6943_v5 = vld [vmem:[#allocation77_spill] sm:$0xff]  ;;  %v6944_v30 = vld [vmem:[#allocation78_spill] sm:$0xff]  ;;  %v6945_v15 = vld [vmem:[#allocation79_spill] sm:$0xff] }
 0x629   :  { %4484 = vtanh.f32 %v6059_v0  ;;  %vm3052_vm12 = vcmp.eq.f32.partialorder %v3051_v39, 8.507059e+37  ;;  %v6946_v39 = vld [vmem:[#allocation80_spill] sm:$0xff] }
 0x62b   :  { %3243 = vmatpush.bf16.msra.mxu2 %v4738_v48  ;;  %3256 = vmatpush.bf16.msra.mxu3 %v4734_v45  ;;  %v3055_v48 = vsel %vm3052_vm12, %v3054_v60, %v3050_v43  ;;  %v6947_v43 = vld [vmem:[#allocation81_spill] sm:$0xff]  ;;  %v6948_v60 = vld [vmem:[#allocation82_spill] sm:$0xff] }
 0x62c   :  { %3269 = vmatpush.bf16.msra.mxu0 %v4762_v10  ;;  %3282 = vmatpush.bf16.msrb.mxu1 %v4802_v2  ;;  %v6906_v2 = vld [vmem:[#allocation30_spill] sm:$0xff] }
 0x62f   :  { %3244 = vmatpush.bf16.msra.mxu2 %v4749_v56  ;;  %3257 = vmatpush.bf16.msra.mxu3 %v4741_v52  ;;  %v4485_v45 = vpop.eup %4484  ;;  %v6891_v52 = vld [vmem:[#allocation13_spill] sm:$0xff]  ;;  %v6892_v56 = vld [vmem:[#allocation14_spill] sm:$0xff] }
 0x630   :  { %3270 = vmatpush.bf16.msra.mxu0 %v4771_v20  ;;  %3283 = vmatpush.bf16.msrb.mxu1 %v4811_v13  ;;  %v3061_v57 = vmul.f32 %v4485_v45, %v3055_v48  ;;  %v6897_v20 = vld [vmem:[#allocation19_spill] sm:$0xff]  ;;  %v6950_v48 = vld [vmem:[#allocation85_spill] sm:$0xff] }
 0x631   :  { %v6909_v13 = vld [vmem:[#allocation35_spill] sm:$0xff] }
 0x632   :  { %v3062_v10 = vpack.c.bf16 %v3061_v57, %v3061_v57  ;;  %v6949_v45 = vld [vmem:[#allocation83_spill] sm:$0xff] }
 0x633   :  { %3245 = vmatpush.bf16.msra.mxu2 %v4760_v8  ;;  %3258 = vmatpush.bf16.msra.mxu3 %v4754_v62  ;;  %v6893_v62 = vld [vmem:[#allocation15_spill] sm:$0xff]  ;;  %v6894_v8 = vld [vmem:[#allocation16_spill] sm:$0xff] }
 0x634   :  { %3271 = vmatpush.bf16.msra.mxu0 %v4785_v37  ;;  %3284 = vmatpush.bf16.msrb.mxu1 %v4820_v27  ;;  %v6901_v37 = vld [vmem:[#allocation25_spill] sm:$0xff]  ;;  %v6951_v57 = vld [vmem:[#allocation87_spill] sm:$0xff] }
 0x635   :  { %3124 = vmatmul.bf16.vlgmr.msrb.gmra.mxu2 %v3062_v10  ;;  %3137 = vmatmul.bf16.vlgmr.msrb.gmra.mxu3 %v3062_v10  ;;  %v6911_v27 = vld [vmem:[#allocation37_spill] sm:$0xff] }
 0x636   :  { %3150 = vmatmul.bf16.vlgmr.msrb.gmra.mxu0 %v3062_v10  ;;  %3163 = vmatmul.bf16.vlgmr.msra.gmra.mxu1 %v3062_v10 }
 0x637   :  { %3246 = vmatpush.bf16.msra.mxu2 %v4768_v17  ;;  %3259 = vmatpush.bf16.msra.mxu3 %v4766_v14  ;;  %v6895_v14 = vld [vmem:[#allocation17_spill] sm:$0xff]  ;;  %v6896_v17 = vld [vmem:[#allocation18_spill] sm:$0xff] }
 0x638   :  { %3272 = vmatpush.bf16.msra.mxu0 %v4791_v49  ;;  %3285 = vmatpush.bf16.msrb.mxu1 %v4824_v34  ;;  %v6903_v49 = vld [vmem:[#allocation27_spill] sm:$0xff]  ;;  %v6912_v34 = vld [vmem:[#allocation38_spill] sm:$0xff] }
 0x63b   :  { %3247 = vmatpush.bf16.msra.mxu2 %v4774_v24  ;;  %3260 = vmatpush.bf16.msra.mxu3 %v4777_v26  ;;  %v6898_v24 = vld [vmem:[#allocation20_spill] sm:$0xff]  ;;  %v6899_v26 = vld [vmem:[#allocation23_spill] sm:$0xff] }
 0x63c   :  { %3273 = vmatpush.bf16.msra.mxu0 %v4800_v1  ;;  %3286 = vmatpush.bf16.msrb.mxu1 %v4827_v40  ;;  %v6905_v1 = vld [vmem:[#allocation29_spill] sm:$0xff]  ;;  %v6913_v40 = vld [vmem:[#allocation39_spill] sm:$0xff] }
 0x63f   :  { %3248 = vmatpush.bf16.msra.mxu2 %v4783_v32  ;;  %3261 = vmatpush.bf16.msra.mxu3 %v4796_v59  ;;  %v6900_v32 = vld [vmem:[#allocation24_spill] sm:$0xff] }
 0x640   :  { %3274 = vmatpush.bf16.msra.mxu0 %v4808_v12  ;;  %3287 = vmatpush.bf16.msrb.mxu1 %v4830_v46  ;;  %v6904_v59 = vld [vmem:[#allocation28_spill] sm:$0xff]  ;;  %v6908_v12 = vld [vmem:[#allocation34_spill] sm:$0xff] }
 0x641   :  { %v6914_v46 = vld [vmem:[#allocation40_spill] sm:$0xff] }
 0x643   :  { %3249 = vmatpush.bf16.msra.mxu2 %v4789_v42  ;;  %3262 = vmatpush.bf16.msra.mxu3 %v4805_v6  ;;  %v6902_v42 = vld [vmem:[#allocation26_spill] sm:$0xff]  ;;  %v6907_v6 = vld [vmem:[#allocation33_spill] sm:$0xff] }
 0x644   :  { %3275 = vmatpush.bf16.msra.mxu0 %v4817_v25  ;;  %3288 = vmatpush.bf16.msrb.mxu1 %v4835_v58  ;;  %v6910_v25 = vld [vmem:[#allocation36_spill] sm:$0xff]  ;;  %v6915_v58 = vld [vmem:[#allocation43_spill] sm:$0xff] }
 0x646   :  { %3250 = vmatmul.bf16.vlgmr.msra.gmra.mxu2 %v3062_v10  ;;  %3263 = vmatmul.bf16.vlgmr.msra.gmra.mxu3 %v3062_v10 }
 0x647   :  { %3363 = vmatpush.bf16.msrb.mxu2 %v6891_v52  ;;  %3376 = vmatpush.bf16.msrb.mxu3 %v6892_v56  ;;  %v6953_v52 = vld [vmem:[#allocation89_spill] sm:$0xff]  ;;  %v6954_v56 = vld [vmem:[#allocation90_spill] sm:$0xff] }
 0x648   :  { %3276 = vmatmul.bf16.vlgmr.msra.gmra.mxu0 %v3062_v10  ;;  %3289 = vmatmul.bf16.vlgmr.msrb.gmra.mxu1 %v3062_v10  ;;  %v6952_v10 = vld [vmem:[#allocation88_spill] sm:$0xff] }
 0x649   :  { %3389 = vmatpush.bf16.msrb.mxu0 %v6893_v62  ;;  %3402 = vmatpush.bf16.msra.mxu1 %v6894_v8 }
 0x64b   :  { %3364 = vmatpush.bf16.msrb.mxu2 %v6895_v14  ;;  %3377 = vmatpush.bf16.msrb.mxu3 %v6896_v17 }
 0x64d   :  { %3390 = vmatpush.bf16.msrb.mxu0 %v6897_v20  ;;  %3403 = vmatpush.bf16.msra.mxu1 %v6898_v24 }
 0x64f   :  { %3365 = vmatpush.bf16.msrb.mxu2 %v6899_v26  ;;  %3378 = vmatpush.bf16.msrb.mxu3 %v6900_v32 }
 0x651   :  { %3391 = vmatpush.bf16.msrb.mxu0 %v6901_v37  ;;  %3404 = vmatpush.bf16.msra.mxu1 %v6902_v42 }
 0x653   :  { %3366 = vmatpush.bf16.msrb.mxu2 %v6903_v49  ;;  %3379 = vmatpush.bf16.msrb.mxu3 %v6904_v59  ;;  %v6955_v59 = vld [vmem:[#allocation91_spill] sm:$0xff] }
 0x655   :  { %3392 = vmatpush.bf16.msrb.mxu0 %v6905_v1  ;;  %3405 = vmatpush.bf16.msra.mxu1 %v6906_v2 }
 0x657   :  { %3367 = vmatpush.bf16.msrb.mxu2 %v6907_v6  ;;  %3380 = vmatpush.bf16.msrb.mxu3 %v6908_v12 }
 0x659   :  { %3393 = vmatpush.bf16.msrb.mxu0 %v6909_v13  ;;  %3406 = vmatpush.bf16.msra.mxu1 %v6910_v25 }
 0x65b   :  { %3368 = vmatpush.bf16.msrb.mxu2 %v6911_v27  ;;  %3381 = vmatpush.bf16.msrb.mxu3 %v6912_v34  ;;  %v6956_v27 = vld [vmem:[#allocation92_spill] sm:$0xff] }
 0x65d   :  { %3394 = vmatpush.bf16.msrb.mxu0 %v6913_v40  ;;  %3407 = vmatpush.bf16.msra.mxu1 %v6914_v46  ;;  %v6957_v40 = vld [vmem:[#allocation93_spill] sm:$0xff] }
 0x65f   :  { %3369 = vmatpush.bf16.msrb.mxu2 %v6915_v58  ;;  %3382 = vmatpush.bf16.msrb.mxu3 %v6916_v19 }
 0x661   :  { %3395 = vmatpush.bf16.msrb.mxu0 %v6917_v38  ;;  %3408 = vmatpush.bf16.msra.mxu1 %v6918_v21 }
 0x663   :  { %3370 = vmatpush.bf16.msrb.mxu2 %v6919_v16  ;;  %3383 = vmatpush.bf16.msrb.mxu3 %v6920_v63 }
 0x665   :  { %3396 = vmatpush.bf16.msrb.mxu0 %v6923_v50  ;;  %3409 = vmatpush.bf16.msra.mxu1 %v6924_v29  ;;  %v6958_v50 = vld [vmem:[#allocation86_spill] sm:$0xff] }
 0x666   :  { %v3241_v29 = vunpack.c.h.bf16 %v6958_v50 }
 0x667   :  { %3415 = vmatpush.bf16.msra.mxu2 %v6921_v61  ;;  %3428 = vmatpush.bf16.msra.mxu3 %v6922_v4 }
 0x669   :  { %3441 = vmatpush.bf16.msra.mxu0 %v6925_v33  ;;  %3454 = vmatpush.bf16.msrb.mxu1 %v6926_v36 }
 0x66b   :  { %3416 = vmatpush.bf16.msra.mxu2 %v6927_v35  ;;  %3429 = vmatpush.bf16.msra.mxu3 %v6928_v51 }
 0x66d   :  { %3442 = vmatpush.bf16.msra.mxu0 %v6929_v44  ;;  %3455 = vmatpush.bf16.msrb.mxu1 %v6930_v28 }
 0x66f   :  { %3417 = vmatpush.bf16.msra.mxu2 %v6931_v31  ;;  %3430 = vmatpush.bf16.msra.mxu3 %v6932_v55 }
 0x671   :  { %3443 = vmatpush.bf16.msra.mxu0 %v6933_v23  ;;  %3456 = vmatpush.bf16.msrb.mxu1 %v6934_v7  ;;  %v6959_v23 = vld [vmem:[#allocation84_spill] sm:$0xff] }
 0x672   :  { %v3238_v7 = vunpack.c.l.bf16 %v6959_v23 }
 0x673   :  { %3418 = vmatpush.bf16.msra.mxu2 %v6935_v53  ;;  %3431 = vmatpush.bf16.msra.mxu3 %v6936_v41  ;;  %v3239_v41 = vunpack.c.h.bf16 %v6959_v23 }
 0x675   :  { %3444 = vmatpush.bf16.msra.mxu0 %v6937_v22  ;;  %3457 = vmatpush.bf16.msrb.mxu1 %v6938_v11 }
 0x677   :  { %3419 = vmatpush.bf16.msra.mxu2 %v6939_v9  ;;  %3432 = vmatpush.bf16.msra.mxu3 %v6940_v47 }
 0x679   :  { %3445 = vmatpush.bf16.msra.mxu0 %v6941_v18  ;;  %3458 = vmatpush.bf16.msrb.mxu1 %v6942_v54 }
 0x67b   :  { %3420 = vmatpush.bf16.msra.mxu2 %v6943_v5  ;;  %3433 = vmatpush.bf16.msra.mxu3 %v6944_v30 }
 0x67d   :  { %3446 = vmatpush.bf16.msra.mxu0 %v6945_v15  ;;  %3459 = vmatpush.bf16.msrb.mxu1 %v6946_v39 }
 0x67f   :  { %3421 = vmatpush.bf16.msra.mxu2 %v6947_v43  ;;  %3434 = vmatpush.bf16.msra.mxu3 %v6948_v60  ;;  %v6960_v43 = vld [vmem:[#allocation22_spill] sm:$0xff] }
 0x681   :  { %3447 = vmatpush.bf16.msra.mxu0 %v6949_v45  ;;  %3460 = vmatpush.bf16.msrb.mxu1 %v6950_v48 }
 0x683   :  { %3422 = vmatpush.bf16.msra.mxu2 %v6951_v57  ;;  %3435 = vmatpush.bf16.msra.mxu3 %v6952_v10 }
 0x685   :  { %3448 = vmatpush.bf16.msra.mxu0 %v6953_v52  ;;  %3461 = vmatpush.bf16.msrb.mxu1 %v6954_v56 }
 0x6a3   :  { %v3099_v62 = vpop.f32.mrf.mxu0  ;;  %v3112_v8 = vpop.f32.mrf.mxu1 }
 0x6a8   :  { %v3073_v14 = vpop.f32.mrf.mxu2  ;;  %v3086_v17 = vpop.f32.mrf.mxu3 }
 0x6ab   :  { %v3101_v20 = vpop.f32.mrf.mxu0  ;;  %v3114_v24 = vpop.f32.mrf.mxu1 }
 0x6b0   :  { %v3075_v26 = vpop.f32.mrf.mxu2  ;;  %v3088_v32 = vpop.f32.mrf.mxu3 }
 0x6b3   :  { %v3151_v37 = vpop.f32.mrf.mxu0  ;;  %v3164_v42 = vpop.f32.mrf.mxu1 }
 0x6b4   :  { %v3165_v49 = vadd.f32 %v3164_v42, %v3112_v8  ;;  %v3152_v11 = vadd.f32 %v3151_v37, %v3099_v62 }
 0x6b6   :  { %v3171_v1 = vadd.f32 %v3165_v49, %v6955_v59  ;;  %v3170_v60 = vadd.f32 %v3152_v11, %v6960_v43 }
 0x6b8   :  { %v4128_v2 = vmul.f32 -1.442695, %v3171_v1  ;;  %v3125_v6 = vpop.f32.mrf.mxu2  ;;  %v3138_v12 = vpop.f32.mrf.mxu3 }
 0x6b9   :  { %v3126_v13 = vadd.f32 %v3125_v6, %v3073_v14  ;;  %v3139_v25 = vadd.f32 %v3138_v12, %v3086_v17 }
 0x6ba   :  { %4486 = vpow2.f32 %v4128_v2 }
 0x6bb   :  { %v3168_v34 = vadd.f32 %v3126_v13, %v6956_v27  ;;  %v3169_v46 = vadd.f32 %v3139_v25, %v6957_v40  ;;  %v3153_v58 = vpop.f32.mrf.mxu0  ;;  %v3166_v19 = vpop.f32.mrf.mxu1 }
 0x6bd   :  { %v4126_v38 = vmul.f32 -1.442695, %v3168_v34  ;;  %v4127_v21 = vmul.f32 -1.442695, %v3169_v46 }
 0x6bf   :  { %4488 = vpow2.f32 %v4126_v38 }
 0x6c0   :  { %v4487_v16 = vpop.eup %4486  ;;  %4490 = vpow2.f32 %v4127_v21  ;;  %v3127_v63 = vpop.f32.mrf.mxu2 }
 0x6c1   :  { %v3140_v61 = vpop.f32.mrf.mxu3  ;;  %v6163_v4 = vadd.f32 1.0, %v4487_v16 }
 0x6c3   :  { %4492 = vrcp.f32 %v6163_v4  ;;  %vm3220_vm6 = vweird.f32 %v6163_v4 }
 0x6c5   :  { %v6166_v33 = vpop.f32.mrf.mxu0  ;;  %v3290_v36 = vpop.f32.mrf.mxu1 }
 0x6c6   :  { %v4489_v35 = vpop.eup %4488  ;;  %v3297_v51 = vadd.f32 %v3290_v36, %v3241_v29  ;;  %v3240_v36 = vunpack.c.l.bf16 %v6958_v50  ;;  %v3224_v50 = vand.u32 2147483647, %v6163_v4 }
 0x6c7   :  { %v4491_v44 = vpop.eup %4490  ;;  %v3175_v28 = vadd.f32 1.0, %v4489_v35 }
 0x6c8   :  { %v3194_v31 = vadd.f32 1.0, %v4491_v44  ;;  %v4131_v55 = vmul.f32 -1.442695, %v3297_v51  ;;  %v3226_v51 = vand.u32 2147483648, %v6163_v4  ;;  %vm3225_vm9 = vcmp.eq.f32.partialorder %v3224_v50, 8.507059e+37 }
 0x6c9   :  { %4494 = vrcp.f32 %v3175_v28  ;;  %v3251_v53 = vpop.f32.mrf.mxu2  ;;  %v3264_v22 = vpop.f32.mrf.mxu3  ;;  %v3187_v14 = vand.u32 2147483648, %v3175_v28  ;;  %v3185_v24 = vand.u32 2147483647, %v3175_v28  ;;  %vm3181_vm15 = vweird.f32 %v3175_v28 }
 0x6ca   :  { %4496 = vrcp.f32 %v3194_v31  ;;  %v3294_v9 = vadd.f32 %v3251_v53, %v3238_v7  ;;  %v3295_v47 = vadd.f32 %v3264_v22, %v3239_v41  ;;  %v6171_v5 = vpop.eup %4492  ;;  %v3206_v26 = vand.u32 2147483648, %v3194_v31 }
 0x6cb   :  { %4498 = vpow2.f32 %v4131_v55  ;;  %v3216_v10 = vmul.f32 %v6171_v5, %v6163_v4  ;;  %v3204_v37 = vand.u32 2147483647, %v3194_v31  ;;  %v3188_v12 = vor.u32 1.1754944e-38, %v3187_v14 }
 0x6cc   :  { %v4129_v30 = vmul.f32 -1.442695, %v3294_v9  ;;  %v4130_v15 = vmul.f32 -1.442695, %v3295_v47  ;;  %vm3200_vm1 = vweird.f32 %v3194_v31  ;;  %vm3186_vm2 = vcmp.eq.f32.partialorder %v3185_v24, 8.507059e+37 }
 0x6cd   :  { %v3279_v18 = vpop.f32.mrf.mxu0  ;;  %v3292_v54 = vpop.f32.mrf.mxu1  ;;  %v3217_v49 = vsub.f32 1.0, %v3216_v10  ;;  %v3207_v46 = vor.u32 1.1754944e-38, %v3206_v26  ;;  %vm3205_vm4 = vcmp.eq.f32.partialorder %v3204_v37, 8.507059e+37  ;;  %vm3221_vm5 = vweird.f32 %v6171_v5 }
 0x6ce   :  { %4500 = vpow2.f32 %v4129_v30  ;;  %vm6194_vm7 = vmor %vm3220_vm6, %vm3221_vm5  ;;  %v3227_v22 = vor.u32 1.1754944e-38, %v3226_v51 }
 0x6cf   :  { %v4495_v39 = vpop.eup %4494  ;;  %4502 = vpow2.f32 %v4130_v15  ;;  %v3218_v16 = vmul.f32 %v6171_v5, %v3217_v49 }
 0x6d0   :  { %v4497_v45 = vpop.eup %4496  ;;  %v3177_v48 = vmul.f32 %v4495_v39, %v3175_v28  ;;  %4504 = vtanh.f32 %v3170_v60  ;;  %vm3182_vm13 = vweird.f32 %v4495_v39 }
 0x6d1   :  { %v3196_v57 = vmul.f32 %v4497_v45, %v3194_v31  ;;  %v3253_v56 = vpop.f32.mrf.mxu2  ;;  %v3266_v62 = vpop.f32.mrf.mxu3  ;;  %vm3201_vm14 = vweird.f32 %v4497_v45  ;;  %vm3183_vm0 = vmor %vm3181_vm15, %vm3182_vm13  ;;  %v3219_v44 = vadd.f32 %v6171_v5, %v3218_v16  ;;  %v3296_v31 = vadd.f32 %v6166_v33, %v3240_v36 }
 0x6d2   :  { %v3178_v52 = vsub.f32 1.0, %v3177_v48  ;;  %v4499_v8 = vpop.eup %4498  ;;  %vm3202_vm3 = vmor %vm3200_vm1, %vm3201_vm14 }
 0x6d3   :  { %v3197_v17 = vsub.f32 1.0, %v3196_v57  ;;  %v6176_v2 = vadd.f32 1.0, %v4499_v8  ;;  %v3223_v33 = vsel %vm6194_vm7, %v6171_v5, %v3219_v44 }
 0x6d4   :  { %v3179_v20 = vmul.f32 %v4495_v39, %v3178_v52  ;;  %v4501_v42 = vpop.eup %4500 }
 0x6d5   :  { %v3198_v32 = vmul.f32 %v4497_v45, %v3197_v17  ;;  %v4503_v6 = vpop.eup %4502  ;;  %v3301_v25 = vadd.f32 1.0, %v4501_v42  ;;  %v3352_v49 = vand.u32 2147483648, %v6176_v2 }
 0x6d6   :  { %v3180_v1 = vadd.f32 %v4495_v39, %v3179_v20  ;;  %v3320_v58 = vadd.f32 1.0, %v4503_v6  ;;  %v4505_v19 = vpop.eup %4504 }
 0x6d7   :  { %v3199_v13 = vadd.f32 %v4497_v45, %v3198_v32  ;;  %4506 = vrcp.f32 %v3301_v25  ;;  %v3311_v9 = vand.u32 2147483647, %v3301_v25  ;;  %v3313_v47 = vand.u32 2147483648, %v3301_v25 }
 0x6d8   :  { %v3184_v34 = vsel %vm3183_vm0, %v4495_v39, %v3180_v1  ;;  %4508 = vrcp.f32 %v6176_v2  ;;  %vm3307_vm10 = vweird.f32 %v3301_v25  ;;  %v3330_v30 = vand.u32 2147483647, %v3320_v58 }
 0x6d9   :  { %v3189_v38 = vsel %vm3186_vm2, %v3188_v12, %v3184_v34  ;;  %v3203_v21 = vsel %vm3202_vm3, %v4497_v45, %v3199_v13  ;;  %4510 = vrcp.f32 %v3320_v58  ;;  %v3332_v15 = vand.u32 2147483648, %v3320_v58 }
 0x6da   :  { %v3231_v63 = vmul.f32 %v4505_v19, %v3189_v38  ;;  %v3208_v61 = vsel %vm3205_vm4, %v3207_v46, %v3203_v21  ;;  %v3228_v39 = vsel %vm3225_vm9, %v3227_v22, %v3223_v33  ;;  %vm3312_vm13 = vcmp.eq.f32.partialorder %v3311_v9, 8.507059e+37 }
 0x6db   :  { %v3230_v29 = vmul.f32 %v3208_v61, %v6033_v3  ;;  %v3314_v57 = vor.u32 1.1754944e-38, %v3313_v47  ;;  %vm3326_vm14 = vweird.f32 %v3320_v58  ;;  %v3333_v14 = vor.u32 1.1754944e-38, %v3332_v15 }
 0x6dc   :  { %vm3331_vm0 = vcmp.eq.f32.partialorder %v3330_v30, 8.507059e+37  ;;  %vm3346_vm2 = vweird.f32 %v6176_v2  ;;  %v3350_v1 = vand.u32 2147483647, %v6176_v2 }
 0x6dd   :  { %v6183_v35 = vadd.f32 %v3231_v63, %v3230_v29  ;;  %v4507_v28 = vpop.eup %4506 }
 0x6de   :  { %v6190_v55 = vpop.eup %4508  ;;  %v3303_v3 = vmul.f32 %v4507_v28, %v3301_v25  ;;  %vm3308_vm8 = vweird.f32 %v4507_v28  ;;  %vm3351_vm4 = vcmp.eq.f32.partialorder %v3350_v1, 8.507059e+37 }
 0x6df   :  { %4512 = vtanh.f32 %v6183_v35  ;;  %v4511_v23 = vpop.eup %4510  ;;  %v3342_v11 = vmul.f32 %v6190_v55, %v6176_v2  ;;  %vm3309_vm12 = vmor %vm3307_vm10, %vm3308_vm8  ;;  %vm3347_vm1 = vweird.f32 %v6190_v55 }
 0x6e0   :  { %v3304_v53 = vsub.f32 1.0, %v3303_v3  ;;  %v3322_v41 = vmul.f32 %v4511_v23, %v3320_v58  ;;  %4514 = vtanh.f32 %v3296_v31  ;;  %vm3327_vm11 = vweird.f32 %v4511_v23  ;;  %vm3348_vm3 = vmor %vm3346_vm2, %vm3347_vm1 }
 0x6e1   :  { %v3343_v48 = vsub.f32 1.0, %v3342_v11  ;;  %vm3328_vm15 = vmor %vm3326_vm14, %vm3327_vm11 }
 0x6e2   :  { %v3305_v18 = vmul.f32 %v4507_v28, %v3304_v53  ;;  %v3323_v4 = vsub.f32 1.0, %v3322_v41 }
 0x6e3   :  { %v3344_v24 = vmul.f32 %v6190_v55, %v3343_v48 }
 0x6e4   :  { %v3306_v60 = vadd.f32 %v4507_v28, %v3305_v18  ;;  %v3324_v45 = vmul.f32 %v4511_v23, %v3323_v4 }
 0x6e5   :  { %v4513_v54 = vpop.eup %4512  ;;  %v3345_v42 = vadd.f32 %v6190_v55, %v3344_v24 }
 0x6e6   :  { %v3234_v5 = vmul.f32 %v4513_v54, %v3228_v39  ;;  %v3310_v10 = vsel %vm3309_vm12, %v4507_v28, %v3306_v60  ;;  %v3325_v52 = vadd.f32 %v4511_v23, %v3324_v45  ;;  %v4515_v62 = vpop.eup %4514 }
 0x6e7   :  { %v3315_v8 = vsel %vm3312_vm13, %v3314_v57, %v3310_v10  ;;  %v3349_v6 = vsel %vm3348_vm3, %v6190_v55, %v3345_v42 }
 0x6e8   :  { %v3362_v56 = vpack.c.bf16 %v3234_v5, %v3234_v5  ;;  %v3357_v17 = vmul.f32 %v4515_v62, %v3315_v8  ;;  %v3329_v20 = vsel %vm3328_vm15, %v4511_v23, %v3325_v52 }
 0x6e9   :  { %v3334_v26 = vsel %vm3331_vm0, %v3333_v14, %v3329_v20 }
 0x6ea   :  { %3371 = vmatmul.bf16.vlgmr.msrb.gmra.mxu2 %v3362_v56  ;;  %3384 = vmatmul.bf16.vlgmr.msrb.gmra.mxu3 %v3362_v56  ;;  %v3356_v32 = vmul.f32 %v3334_v26, %v6059_v0  ;;  %v3353_v0 = vor.u32 1.1754944e-38, %v3352_v49 }
 0x6eb   :  { %3397 = vmatmul.bf16.vlgmr.msrb.gmra.mxu0 %v3362_v56  ;;  %3410 = vmatmul.bf16.vlgmr.msra.gmra.mxu1 %v3362_v56 }
 0x6ec   :  { %v3358_v37 = vadd.f32 %v3357_v17, %v3356_v32  ;;  %v3354_v13 = vsel %vm3351_vm4, %v3353_v0, %v3349_v6 }
 0x6ee   :  { %3536 = vst [vmem:[%s6238_s10] sm:$0xff] %v3358_v37  ;;  %4516 = vtanh.f32 %v3358_v37 }
 0x6f4   :  { %v4517_v12 = vpop.eup %4516 }
 0x6f5   :  { %v3360_v25 = vmul.f32 %v4517_v12, %v3354_v13 }
 0x6f7   :  { %v3361_v34 = vpack.c.bf16 %v3360_v25, %v3360_v25  ;;  %3534 = vst [vmem:[%s6237_s9] sm:$0xff] %v3360_v25 }
 0x6fa   :  { %3423 = vmatmul.bf16.vlgmr.msra.gmra.mxu2 %v3361_v34  ;;  %3436 = vmatmul.bf16.vlgmr.msra.gmra.mxu3 %v3361_v34 }
 0x6fb   :  { %3449 = vmatmul.bf16.vlgmr.msra.gmra.mxu0 %v3361_v34  ;;  %3462 = vmatmul.bf16.vlgmr.msrb.gmra.mxu1 %v3361_v34 }
 0x768   :  { %v3398_v46 = vpop.f32.mrf.mxu0  ;;  %v3411_v58 = vpop.f32.mrf.mxu1 }
 0x76d   :  { %v3372_v2 = vpop.f32.mrf.mxu2  ;;  %v3385_v19 = vpop.f32.mrf.mxu3 }
 0x770   :  { %v3400_v38 = vpop.f32.mrf.mxu0  ;;  %v3413_v21 = vpop.f32.mrf.mxu1 }
 0x775   :  { %v3374_v16 = vpop.f32.mrf.mxu2  ;;  %v3387_v63 = vpop.f32.mrf.mxu3 }
 0x778   :  { %v3450_v61 = vpop.f32.mrf.mxu0  ;;  %v3463_v29 = vpop.f32.mrf.mxu1 }
 0x779   :  { %v3464_v36 = vadd.f32 %v3463_v29, %v3411_v58 }
 0x77b   :  { %v3470_v51 = vadd.f32 %v3464_v36, %v6955_v59 }
 0x77d   :  { %v4134_v44 = vmul.f32 -1.442695, %v3470_v51  ;;  %v3424_v28 = vpop.f32.mrf.mxu2  ;;  %v3437_v31 = vpop.f32.mrf.mxu3 }
 0x77e   :  { %v3425_v55 = vadd.f32 %v3424_v28, %v3372_v2  ;;  %v3438_v3 = vadd.f32 %v3437_v31, %v3385_v19 }
 0x77f   :  { %4518 = vpow2.f32 %v4134_v44 }
 0x780   :  { %v3467_v50 = vadd.f32 %v3425_v55, %v6956_v27  ;;  %v3468_v23 = vadd.f32 %v3438_v3, %v6957_v40  ;;  %v3452_v7 = vpop.f32.mrf.mxu0  ;;  %v3465_v53 = vpop.f32.mrf.mxu1  ;;  %v3451_v27 = vadd.f32 %v3450_v61, %v3398_v46 }
 0x782   :  { %v4132_v41 = vmul.f32 -1.442695, %v3467_v50  ;;  %v4133_v33 = vmul.f32 -1.442695, %v3468_v23  ;;  %v3469_v15 = vadd.f32 %v3451_v27, %v6960_v43 }
 0x784   :  { %4520 = vpow2.f32 %v4132_v41 }
 0x785   :  { %v4519_v22 = vpop.eup %4518  ;;  %4522 = vpow2.f32 %v4133_v33  ;;  %v3426_v11 = vpop.f32.mrf.mxu2 }
 0x786   :  { %v3439_v9 = vpop.f32.mrf.mxu3  ;;  %v3513_v59 = vadd.f32 1.0, %v4519_v22 }
 0x788   :  { %4524 = vrcp.f32 %v3513_v59  ;;  %v3525_v34 = vand.u32 2147483648, %v3513_v59  ;;  %vm3519_vm14 = vweird.f32 %v3513_v59  ;;  %v3523_v46 = vand.u32 2147483647, %v3513_v59 }
 0x78a   :  { %v4521_v47 = vpop.eup %4520  ;;  %v3526_v2 = vor.u32 1.1754944e-38, %v3525_v34  ;;  %vm3524_vm0 = vcmp.eq.f32.partialorder %v3523_v46, 8.507059e+37 }
 0x78b   :  { %v4523_v18 = vpop.eup %4522  ;;  %v3474_v4 = vadd.f32 1.0, %v4521_v47 }
 0x78c   :  { %v3493_v54 = vadd.f32 1.0, %v4523_v18 }
 0x78d   :  { %4526 = vrcp.f32 %v3474_v4  ;;  %v3486_v57 = vand.u32 2147483648, %v3474_v4  ;;  %v3484_v56 = vand.u32 2147483647, %v3474_v4  ;;  %vm3480_vm7 = vweird.f32 %v3474_v4 }
 0x78e   :  { %4528 = vrcp.f32 %v3493_v54  ;;  %v4525_v30 = vpop.eup %4524  ;;  %v3505_v62 = vand.u32 2147483648, %v3493_v54  ;;  %v3503_v14 = vand.u32 2147483647, %v3493_v54  ;;  %vm3499_vm9 = vweird.f32 %v3493_v54 }
 0x78f   :  { %v3515_v5 = vmul.f32 %v4525_v30, %v3513_v59  ;;  %4530 = vtanh.f32 %v3469_v15  ;;  %v3487_v43 = vor.u32 1.1754944e-38, %v3486_v57  ;;  %vm3485_vm10 = vcmp.eq.f32.partialorder %v3484_v56, 8.507059e+37 }
 0x790   :  { %v3506_v32 = vor.u32 1.1754944e-38, %v3505_v62  ;;  %vm3504_vm12 = vcmp.eq.f32.partialorder %v3503_v14, 8.507059e+37  ;;  %vm3520_vm13 = vweird.f32 %v4525_v30 }
 0x791   :  { %v3516_v17 = vsub.f32 1.0, %v3515_v5  ;;  %vm3521_vm15 = vmor %vm3519_vm14, %vm3520_vm13 }
 0x793   :  { %v4527_v40 = vpop.eup %4526  ;;  %v3517_v1 = vmul.f32 %v4525_v30, %v3516_v17 }
 0x794   :  { %v4529_v39 = vpop.eup %4528  ;;  %v3476_v60 = vmul.f32 %v4527_v40, %v3474_v4  ;;  %vm3481_vm5 = vweird.f32 %v4527_v40 }
 0x795   :  { %v3495_v45 = vmul.f32 %v4529_v39, %v3493_v54  ;;  %vm3500_vm6 = vweird.f32 %v4529_v39  ;;  %vm3482_vm8 = vmor %vm3480_vm7, %vm3481_vm5  ;;  %v4531_v37 = vpop.eup %4530  ;;  %v3518_v25 = vadd.f32 %v4525_v30, %v3517_v1 }
 0x796   :  { %v3477_v48 = vsub.f32 1.0, %v3476_v60  ;;  %vm3501_vm11 = vmor %vm3499_vm9, %vm3500_vm6 }
 0x797   :  { %v3496_v10 = vsub.f32 1.0, %v3495_v45  ;;  %v3522_v58 = vsel %vm3521_vm15, %v4525_v30, %v3518_v25 }
 0x798   :  { %v3478_v52 = vmul.f32 %v4527_v40, %v3477_v48  ;;  %v3527_v38 = vsel %vm3524_vm0, %v3526_v2, %v3522_v58 }
 0x799   :  { %v3497_v8 = vmul.f32 %v4529_v39, %v3496_v10 }
 0x79a   :  { %v3479_v20 = vadd.f32 %v4527_v40, %v3478_v52 }
 0x79b   :  { %v3498_v24 = vadd.f32 %v4529_v39, %v3497_v8 }
 0x79c   :  { %v3483_v26 = vsel %vm3482_vm8, %v4527_v40, %v3479_v20 }
 0x79d   :  { %v3488_v42 = vsel %vm3485_vm10, %v3487_v43, %v3483_v26  ;;  %v3502_v49 = vsel %vm3501_vm11, %v4529_v39, %v3498_v24 }
 0x79e   :  { %v3530_v6 = vmul.f32 %v4531_v37, %v3488_v42  ;;  %v3507_v0 = vsel %vm3504_vm12, %v3506_v32, %v3502_v49 }
 0x79f   :  { %v3529_v12 = vmul.f32 %v3507_v0, %v6183_v35 }
 0x7a1   :  { %v3531_v13 = vadd.f32 %v3530_v6, %v3529_v12 }
 0x7a3   :  { %4532 = vtanh.f32 %v3531_v13  ;;  %4136 = vst [vmem:[%s6238_s10 + $0x8] sm:$0xff] %v3531_v13 }
 0x7a9   :  { %v4533_v19 = vpop.eup %4532 }
 0x7aa   :  { %v3533_v21 = vmul.f32 %v4533_v19, %v3527_v38 }
 0x7ac   :  { %4135 = vst [vmem:[%s6237_s9 + $0x8] sm:$0xff] %v3533_v21 }
 0x7ad   :  { %3546 = vsyncpa [#allocation4], 1 }
 0x7ae   :  { %3547 = vsyncpa [#allocation6], 1 }
 0x7af   :  { %3548 = vsyncpa [#allocation9], 1 }

</bundles_post_ra>
